<compile_context>
chip_gen: v7x
topology: tpu7x:2x2x1
jax: 0.10.0
libtpu: 0.0.40
codegen_flags: <defaults>
</compile_context>

<pallas_src>
import functools

import jax
import jax.numpy as jnp
from jax.experimental import pallas as pl
from jax.experimental.pallas import tpu as pltpu

_HIGHEST = jax.lax.Precision.HIGHEST

_ILV_CHUNK = 128  # input columns interleaved per scatter-matmul chunk


# ----------------------------------------------------------------------------
# In-kernel building blocks (operate on channels-first (C, L) f32 values).
# ----------------------------------------------------------------------------
def _shift_prev(x):
    """Column t holds x[:, t-1]; column 0 is zero (left conv halo)."""
    c, l = x.shape
    zero = jnp.zeros((c, 1), x.dtype)
    if l == 1:
        return zero
    return jnp.concatenate([zero, x[:, : l - 1]], axis=1)


def _shift_next(x):
    """Column t holds x[:, t+1]; last column is zero (right conv halo)."""
    c, l = x.shape
    zero = jnp.zeros((c, 1), x.dtype)
    if l == 1:
        return zero
    return jnp.concatenate([x[:, 1:], zero], axis=1)


def _interleave(ye, yo, se, so):
    """(C, L), (C, L) -> (C, 2L): even lanes <- ye, odd lanes <- yo.

    Chunked scatter-matmul against fixed 0/1 matrices se/so (128, 256) that are
    passed once as replicated inputs: O(C * L * 256) MACs (linear in L), no
    per-iteration iota/compare/select work, no O(T^2) matrices in VMEM.
    """
    _, l = ye.shape
    pieces = []
    for start in range(0, l, _ILV_CHUNK):
        w = min(_ILV_CHUNK, l - start)
        pieces.append(
            jnp.dot(ye[:, start:start + w], se[:w, : 2 * w],
                    preferred_element_type=jnp.float32)
            + jnp.dot(yo[:, start:start + w], so[:w, : 2 * w],
                      preferred_element_type=jnp.float32))
    if len(pieces) == 1:
        return pieces[0]
    return jnp.concatenate(pieces, axis=1)


def _convt_k4s2p1(x, wstack, b, se, so, *, relu):
    """ConvTranspose1d(Cin, Cout, 4, stride=2, padding=1), channels-first.

    x: (Cin, L); wstack: (4*Cout, Cin) = [W1^T; W3^T; W2^T; W0^T]; b: (Cout, 1).
        y[:, 2m]   = W1^T x[:, m] + W3^T x[:, m-1] + b
        y[:, 2m+1] = W2^T x[:, m] + W0^T x[:, m+1] + b
    One MXU matmul covers all four taps; the +/-1 halo shifts are applied to
    the (Cout, L) tap results, so the activation is never replicated along
    sublanes.  Returns (Cout, 2L).
    """
    cout = wstack.shape[0] // 4
    p = jnp.dot(wstack, x, preferred_element_type=jnp.float32)   # (4*Cout, L)
    ye = p[:cout] + _shift_prev(p[cout:2 * cout]) + b
    yo = p[2 * cout:3 * cout] + _shift_next(p[3 * cout:]) + b
    if relu:
        ye = jnp.maximum(ye, 0.0)
        yo = jnp.maximum(yo, 0.0)
    return _interleave(ye, yo, se, so)


def _conv1d_k3p1_relu(x, wstack, b):
    """Conv1d(Cin, Cout, 3, padding=1) + ReLU, channels-first.

    x: (Cin, L); wstack: (3*Cout, Cin) = [W1; W0; W2]; b: (Cout, 1).
    """
    cout = wstack.shape[0] // 3
    p = jnp.dot(wstack, x, preferred_element_type=jnp.float32)   # (3*Cout, L)
    y = (p[:cout] + _shift_prev(p[cout:2 * cout])
         + _shift_next(p[2 * cout:]) + b)
    return jnp.maximum(y, 0.0)


# ----------------------------------------------------------------------------
# Fused decoder kernel: one grid step == one batch element, all layers fused.
# ----------------------------------------------------------------------------
def _spectro_decoder_kernel(
    z_ref, wl_ref, bl_ref, mask_ref, se_ref, so_ref,
    w0_ref, b0_ref, w1_ref, b1_ref, w2_ref, b2_ref,
    wm_ref, bm_ref,
    w3_ref, b3_ref, w4_ref, b4_ref, w5_ref, b5_ref,
    out_ref,
):
    se = se_ref[...]
    so = so_ref[...]
    num_pos = bl_ref.shape[1]                       # L0 = time_steps // 64

    # Linear + ReLU emitted directly in channels-first (256, L0) layout:
    # one MXU dot of the pre-packed weight against a block-diagonal z built
    # from a precomputed 0/1 mask (nn.Unflatten is free).
    z_col = z_ref[0]                                              # (latent, 1)
    z_rep = (z_col if num_pos == 1
             else jnp.concatenate([z_col] * num_pos, axis=0))     # (L0*lat, 1)
    zbd = z_rep * mask_ref[...]                                   # (L0*lat, L0)
    h = jnp.dot(wl_ref[...], zbd, preferred_element_type=jnp.float32)
    x = jnp.maximum(h + bl_ref[...], 0.0)                         # (256, L0)

    # Upsampling chain (each ConvT doubles L); activations never leave VMEM.
    x = _convt_k4s2p1(x, w0_ref[...], b0_ref[...], se, so, relu=True)
    x = _convt_k4s2p1(x, w1_ref[...], b1_ref[...], se, so, relu=True)
    x = _convt_k4s2p1(x, w2_ref[...], b2_ref[...], se, so, relu=True)
    x = _conv1d_k3p1_relu(x, wm_ref[...], bm_ref[...])
    x = _convt_k4s2p1(x, w3_ref[...], b3_ref[...], se, so, relu=True)
    x = _convt_k4s2p1(x, w4_ref[...], b4_ref[...], se, so, relu=True)
    x = _convt_k4s2p1(x, w5_ref[...], b5_ref[...], se, so, relu=False)

    # (n_mels, time_steps): lane-dense store, already PyTorch's NCL layout.
    out_ref[0] = x.astype(out_ref.dtype)


# ----------------------------------------------------------------------------
# Host-side weight preparation (torch layouts -> kernel layouts).
# ----------------------------------------------------------------------------
def _prep_linear(w, b, num_pos):
    """torch Linear weight (256*L0, latent) -> (256, L0*latent), (256, L0).

    Unflatten maps output index o to (channel c = o // L0, position l = o % L0),
    so Wp[c, l*latent + k] = w[c*L0 + l, k] is just a reshape.
    """
    ch = w.shape[0] // num_pos
    latent = w.shape[1]
    return w.reshape(ch, num_pos * latent), b.reshape(ch, num_pos)


def _make_linear_mask(num_pos, latent):
    """0/1 mask (L0*latent, L0) with mask[l*latent+k, l'] = (l == l')."""
    pos = jnp.repeat(jnp.arange(num_pos), latent)
    return (pos[:, None] == jnp.arange(num_pos)[None, :]).astype(jnp.float32)


def _make_interleave_mats():
    """Fixed even/odd scatter matrices (128, 256), shared by all layers."""
    j = jnp.arange(_ILV_CHUNK)[:, None]
    t = jnp.arange(2 * _ILV_CHUNK)[None, :]
    se = (t == 2 * j).astype(jnp.float32)
    so = (t == 2 * j + 1).astype(jnp.float32)
    return se, so


def _prep_convt(w, b):
    """torch ConvTranspose1d weight (Cin, Cout, 4) -> (4*Cout, Cin) tap stack."""
    taps = [w[:, :, k].T for k in range(4)]                       # (Cout, Cin)
    wstack = jnp.concatenate([taps[1], taps[3], taps[2], taps[0]], axis=0)
    return wstack, b.reshape(-1, 1)


def _prep_conv3(w, b):
    """torch Conv1d weight (Cout, Cin, 3) -> (3*Cout, Cin) tap stack."""
    wstack = jnp.concatenate([w[:, :, 1], w[:, :, 0], w[:, :, 2]], axis=0)
    return wstack, b.reshape(-1, 1)


# ----------------------------------------------------------------------------
# Forward pass (matches SpectroDecoder.forward semantics).
# ----------------------------------------------------------------------------
def spectro_decoder_forward(params, z, *, n_mels, time_steps):
    if time_steps % 64 != 0:
        raise ValueError("time_steps must be divisible by 64 (decoder upsample).")
    B, latent = z.shape
    L0 = time_steps // 64

    wl, bl = _prep_linear(params["lin_w"], params["lin_b"], L0)
    mask = _make_linear_mask(L0, latent)
    se, so = _make_interleave_mats()
    ct = [_prep_convt(params[f"ct{i}_w"], params[f"ct{i}_b"]) for i in range(6)]
    wm, bm = _prep_conv3(params["c_mid_w"], params["c_mid_b"])

    operands = [z[:, :, None], wl, bl, mask, se, so,
                *ct[0], *ct[1], *ct[2], wm, bm, *ct[3], *ct[4], *ct[5]]

    def replicated(a):
        nd = a.ndim
        return pl.BlockSpec(a.shape, lambda b, _nd=nd: (0,) * _nd)

    # z: tiny (1, latent, 1) block per grid step (column layout, no in-kernel
    # transpose); all weights / constant matrices are replicated, so they are
    # DMA'd into VMEM exactly once for the whole grid.
    in_specs = [pl.BlockSpec((1, latent, 1), lambda b: (b, 0, 0))]
    in_specs += [replicated(a) for a in operands[1:]]

    # VMEM budget derived from the real footprint: v5e's default scoped limit
    # (16 MiB) is too small for a fused whole-network kernel, v7x physically
    # has only 64 MiB, so clamp to [32 MiB, 64 MiB].
    operand_bytes = sum(int(a.size) * a.dtype.itemsize for a in operands)
    out_block_bytes = n_mels * time_steps * 4
    vmem_limit = int(min(64 * 2 ** 20,
                         max(32 * 2 ** 20,
                             2 * (operand_bytes + out_block_bytes) + 16 * 2 ** 20)))

    out = pl.pallas_call(
        _spectro_decoder_kernel,
        grid=(B,),
        in_specs=in_specs,
        out_specs=pl.BlockSpec((1, n_mels, time_steps), lambda b: (b, 0, 0)),
        out_shape=jax.ShapeDtypeStruct((B, n_mels, time_steps), jnp.float32),
        compiler_params=pltpu.CompilerParams(
            dimension_semantics=("parallel",),
            vmem_limit_bytes=vmem_limit,
        ),
    )(*operands)
    return out[:, None, :, :]


# ----------------------------------------------------------------------------
# Pure-JAX reference (validated even/odd ConvT decomposition).
# ----------------------------------------------------------------------------
def _ref_convt(x, w, b, relu):
    B, L, _ = x.shape
    xp = jnp.pad(x, ((0, 0), (1, 1), (0, 0)))
    x_prev, x_cur, x_next = xp[:, :L], xp[:, 1:L + 1], xp[:, 2:L + 2]
    ye = (jnp.einsum("blc,cd->bld", x_cur, w[:, :, 1], precision=_HIGHEST)
          + jnp.einsum("blc,cd->bld", x_prev, w[:, :, 3], precision=_HIGHEST)
          + b)
    yo = (jnp.einsum("blc,cd->bld", x_cur, w[:, :, 2], precision=_HIGHEST)
          + jnp.einsum("blc,cd->bld", x_next, w[:, :, 0], precision=_HIGHEST)
          + b)
    y = jnp.stack([ye, yo], axis=2).reshape(B, 2 * L, -1)
    return jnp.maximum(y, 0.0) if relu else y


def _ref_conv3(x, w, b):
    B, L, _ = x.shape
    xp = jnp.pad(x, ((0, 0), (1, 1), (0, 0)))
    y = (jnp.einsum("blc,dc->bld", xp[:, :L], w[:, :, 0], precision=_HIGHEST)
         + jnp.einsum("blc,dc->bld", xp[:, 1:L + 1], w[:, :, 1], precision=_HIGHEST)
         + jnp.einsum("blc,dc->bld", xp[:, 2:L + 2], w[:, :, 2], precision=_HIGHEST)
         + b)
    return jnp.maximum(y, 0.0)


def spectro_decoder_reference(params, z, *, n_mels, time_steps):
    B = z.shape[0]
    L0 = time_steps // 64
    h = jnp.maximum(
        jnp.dot(z, params["lin_w"].T, precision=_HIGHEST) + params["lin_b"], 0.0)
    x = jnp.transpose(h.reshape(B, 256, L0), (0, 2, 1))        # (B, L0, 256)
    x = _ref_convt(x, params["ct0_w"], params["ct0_b"], True)
    x = _ref_convt(x, params["ct1_w"], params["ct1_b"], True)
    x = _ref_convt(x, params["ct2_w"], params["ct2_b"], True)
    x = _ref_conv3(x, params["c_mid_w"], params["c_mid_b"])
    x = _ref_convt(x, params["ct3_w"], params["ct3_b"], True)
    x = _ref_convt(x, params["ct4_w"], params["ct4_b"], True)
    x = _ref_convt(x, params["ct5_w"], params["ct5_b"], False)
    return jnp.transpose(x, (0, 2, 1))[:, None, :, :]


# ----------------------------------------------------------------------------
# Deterministic parameter init (torch layouts, mirrors module shapes).
# ----------------------------------------------------------------------------
def init_params(key, latent_dim, n_mels, time_steps):
    assert time_steps % 64 == 0
    L0 = time_steps // 64
    keys = jax.random.split(key, 20)

    def w_init(k, shape, fan_in):
        return jax.random.normal(k, shape, jnp.float32) / jnp.sqrt(float(fan_in))

    def b_init(k, shape):
        return 0.05 * jax.random.normal(k, shape, jnp.float32)

    p = {}
    p["lin_w"] = w_init(keys[0], (256 * L0, latent_dim), latent_dim)
    p["lin_b"] = b_init(keys[1], (256 * L0,))
    ct_channels = [(256, 128), (128, 64), (64, 64), (64, 32),
                   (32, n_mels), (n_mels, n_mels)]
    for i, (cin, cout) in enumerate(ct_channels):
        p[f"ct{i}_w"] = w_init(keys[2 + 2 * i], (cin, cout, 4), cin * 4)
        p[f"ct{i}_b"] = b_init(keys[3 + 2 * i], (cout,))
    p["c_mid_w"] = w_init(keys[14], (64, 64, 3), 64 * 3)
    p["c_mid_b"] = b_init(keys[15], (64,))
    return p


# ----------------------------------------------------------------------------
if __name__ == "__main__":
    # Small shapes consistent with the module (time_steps % 64 == 0).
    batch = 2
    latent_dim = 32
    n_mels = 16
    time_steps = 128

    key = jax.random.PRNGKey(0)
    k_params, k_data = jax.random.split(key)
    params = init_params(k_params, latent_dim, n_mels, time_steps)
    z = jax.random.normal(k_data, (batch, latent_dim), jnp.float32)

    fwd = jax.jit(functools.partial(spectro_decoder_forward,
                                    n_mels=n_mels, time_steps=time_steps))
    recon = jax.block_until_ready(fwd(params, z))
    assert recon.shape == (batch, 1, n_mels, time_steps), recon.shape
    assert bool(jnp.all(jnp.isfinite(recon)))

    ref_fn = jax.jit(functools.partial(spectro_decoder_reference,
                                       n_mels=n_mels, time_steps=time_steps))
    ref = jax.block_until_ready(ref_fn(params, z))
    max_err = float(jnp.max(jnp.abs(recon - ref)))
    scale = float(jnp.max(jnp.abs(ref)))
    assert max_err <= 5e-2 * (1.0 + scale), (max_err, scale)

    print("KERNEL_OK")
</pallas_src>

<mosaic_0001>
module attributes {stable_mosaic.version = 11 : i64} {
  func.func @_spectro_decoder_kernel(%arg0: i32, %arg1: memref<1x32x1xf32, #tpu.memory_space<vmem>>, %arg2: memref<256x64xf32, #tpu.memory_space<vmem>>, %arg3: memref<256x2xf32, #tpu.memory_space<vmem>>, %arg4: memref<64x2xf32, #tpu.memory_space<vmem>>, %arg5: memref<128x256xf32, #tpu.memory_space<vmem>>, %arg6: memref<128x256xf32, #tpu.memory_space<vmem>>, %arg7: memref<512x256xf32, #tpu.memory_space<vmem>>, %arg8: memref<128x1xf32, #tpu.memory_space<vmem>>, %arg9: memref<256x128xf32, #tpu.memory_space<vmem>>, %arg10: memref<64x1xf32, #tpu.memory_space<vmem>>, %arg11: memref<256x64xf32, #tpu.memory_space<vmem>>, %arg12: memref<64x1xf32, #tpu.memory_space<vmem>>, %arg13: memref<192x64xf32, #tpu.memory_space<vmem>>, %arg14: memref<64x1xf32, #tpu.memory_space<vmem>>, %arg15: memref<128x64xf32, #tpu.memory_space<vmem>>, %arg16: memref<32x1xf32, #tpu.memory_space<vmem>>, %arg17: memref<64x32xf32, #tpu.memory_space<vmem>>, %arg18: memref<16x1xf32, #tpu.memory_space<vmem>>, %arg19: memref<64x16xf32, #tpu.memory_space<vmem>>, %arg20: memref<16x1xf32, #tpu.memory_space<vmem>>, %arg21: memref<1x16x128xf32, #tpu.memory_space<vmem>>) attributes {dimension_semantics = [#tpu.dimension_semantics<parallel>], iteration_bounds = array<i64: 2>, scalar_prefetch = 0 : i64, scratch_operands = 0 : i64, tpu.core_type = #tpu.core_type<tc>, window_params = [{transform_indices = @transform_0, window_bounds = array<i64: 1, 32, 1>}, {pipeline_mode = #tpu.pipeline_mode<synchronous>, transform_indices = @transform_1, window_bounds = array<i64: 256, 64>}, {pipeline_mode = #tpu.pipeline_mode<synchronous>, transform_indices = @transform_2, window_bounds = array<i64: 256, 2>}, {pipeline_mode = #tpu.pipeline_mode<synchronous>, transform_indices = @transform_3, window_bounds = array<i64: 64, 2>}, {pipeline_mode = #tpu.pipeline_mode<synchronous>, transform_indices = @transform_4, window_bounds = array<i64: 128, 256>}, {pipeline_mode = #tpu.pipeline_mode<synchronous>, transform_indices = @transform_5, window_bounds = array<i64: 128, 256>}, {pipeline_mode = #tpu.pipeline_mode<synchronous>, transform_indices = @transform_6, window_bounds = array<i64: 512, 256>}, {pipeline_mode = #tpu.pipeline_mode<synchronous>, transform_indices = @transform_7, window_bounds = array<i64: 128, 1>}, {pipeline_mode = #tpu.pipeline_mode<synchronous>, transform_indices = @transform_8, window_bounds = array<i64: 256, 128>}, {pipeline_mode = #tpu.pipeline_mode<synchronous>, transform_indices = @transform_9, window_bounds = array<i64: 64, 1>}, {pipeline_mode = #tpu.pipeline_mode<synchronous>, transform_indices = @transform_10, window_bounds = array<i64: 256, 64>}, {pipeline_mode = #tpu.pipeline_mode<synchronous>, transform_indices = @transform_11, window_bounds = array<i64: 64, 1>}, {pipeline_mode = #tpu.pipeline_mode<synchronous>, transform_indices = @transform_12, window_bounds = array<i64: 192, 64>}, {pipeline_mode = #tpu.pipeline_mode<synchronous>, transform_indices = @transform_13, window_bounds = array<i64: 64, 1>}, {pipeline_mode = #tpu.pipeline_mode<synchronous>, transform_indices = @transform_14, window_bounds = array<i64: 128, 64>}, {pipeline_mode = #tpu.pipeline_mode<synchronous>, transform_indices = @transform_15, window_bounds = array<i64: 32, 1>}, {pipeline_mode = #tpu.pipeline_mode<synchronous>, transform_indices = @transform_16, window_bounds = array<i64: 64, 32>}, {pipeline_mode = #tpu.pipeline_mode<synchronous>, transform_indices = @transform_17, window_bounds = array<i64: 16, 1>}, {pipeline_mode = #tpu.pipeline_mode<synchronous>, transform_indices = @transform_18, window_bounds = array<i64: 64, 16>}, {pipeline_mode = #tpu.pipeline_mode<synchronous>, transform_indices = @transform_19, window_bounds = array<i64: 16, 1>}, {transform_indices = @transform_20, window_bounds = array<i64: 1, 16, 128>}]} {
    %c0 = arith.constant 0 : index
    %c0_0 = arith.constant 0 : index
    %0 = vector.load %arg5[%c0, %c0_0] : memref<128x256xf32, #tpu.memory_space<vmem>>, vector<128x256xf32>
    %c0_1 = arith.constant 0 : index
    %c0_2 = arith.constant 0 : index
    %1 = vector.load %arg6[%c0_1, %c0_2] : memref<128x256xf32, #tpu.memory_space<vmem>>, vector<128x256xf32>
    %c0_3 = arith.constant 0 : index
    %c0_4 = arith.constant 0 : index
    %c0_5 = arith.constant 0 : index
    %2 = vector.load %arg1[%c0_3, %c0_4, %c0_5] : memref<1x32x1xf32, #tpu.memory_space<vmem>>, vector<1x32x1xf32>
    %3 = vector.shape_cast %2 : vector<1x32x1xf32> to vector<32x1xf32>
    %4 = tpu.concatenate %3, %3 in 0 : vector<32x1xf32>, vector<32x1xf32> -> vector<64x1xf32>
    %c0_6 = arith.constant 0 : index
    %c0_7 = arith.constant 0 : index
    %5 = vector.load %arg4[%c0_6, %c0_7] : memref<64x2xf32, #tpu.memory_space<vmem>>, vector<64x2xf32>
    %6 = vector.broadcast %4 : vector<64x1xf32> to vector<64x2xf32>
    %7 = arith.mulf %6, %5 : vector<64x2xf32>
    %c0_8 = arith.constant 0 : index
    %c0_9 = arith.constant 0 : index
    %8 = vector.load %arg2[%c0_8, %c0_9] : memref<256x64xf32, #tpu.memory_space<vmem>>, vector<256x64xf32>
    %cst = arith.constant dense<0.000000e+00> : vector<256x2xf32>
    %9 = tpu.matmul %8, %7, %cst {dimension_numbers = #tpu.dot_dimension_numbers<[1], [0], [0], [1], [0, 0, 1, 1], [], []>} : vector<256x64xf32>, vector<64x2xf32>, vector<256x2xf32> -> vector<256x2xf32>
    %c0_10 = arith.constant 0 : index
    %c0_11 = arith.constant 0 : index
    %10 = vector.load %arg3[%c0_10, %c0_11] : memref<256x2xf32, #tpu.memory_space<vmem>>, vector<256x2xf32>
    %11 = arith.addf %9, %10 : vector<256x2xf32>
    %cst_12 = arith.constant 0.000000e+00 : f32
    %12 = vector.broadcast %cst_12 : f32 to vector<256x2xf32>
    %13 = arith.maximumf %11, %12 : vector<256x2xf32>
    %c0_13 = arith.constant 0 : index
    %c0_14 = arith.constant 0 : index
    %14 = vector.load %arg7[%c0_13, %c0_14] : memref<512x256xf32, #tpu.memory_space<vmem>>, vector<512x256xf32>
    %c0_15 = arith.constant 0 : index
    %c0_16 = arith.constant 0 : index
    %15 = vector.load %arg8[%c0_15, %c0_16] : memref<128x1xf32, #tpu.memory_space<vmem>>, vector<128x1xf32>
    %cst_17 = arith.constant dense<0.000000e+00> : vector<512x2xf32>
    %16 = tpu.matmul %14, %13, %cst_17 {dimension_numbers = #tpu.dot_dimension_numbers<[1], [0], [0], [1], [0, 0, 1, 1], [], []>} : vector<512x256xf32>, vector<256x2xf32>, vector<512x2xf32> -> vector<512x2xf32>
    %17 = vector.extract_strided_slice %16 {offsets = [0, 0], sizes = [128, 2], strides = [1, 1]} : vector<512x2xf32> to vector<128x2xf32>
    %18 = vector.extract_strided_slice %16 {offsets = [128, 0], sizes = [128, 2], strides = [1, 1]} : vector<512x2xf32> to vector<128x2xf32>
    %cst_18 = arith.constant 0.000000e+00 : f32
    %19 = vector.broadcast %cst_18 : f32 to vector<128x1xf32>
    %20 = vector.extract_strided_slice %18 {offsets = [0, 0], sizes = [128, 1], strides = [1, 1]} : vector<128x2xf32> to vector<128x1xf32>
    %21 = tpu.concatenate %19, %20 in 1 : vector<128x1xf32>, vector<128x1xf32> -> vector<128x2xf32>
    %22 = arith.addf %17, %21 : vector<128x2xf32>
    %23 = vector.broadcast %15 : vector<128x1xf32> to vector<128x2xf32>
    %24 = arith.addf %22, %23 : vector<128x2xf32>
    %25 = vector.extract_strided_slice %16 {offsets = [256, 0], sizes = [128, 2], strides = [1, 1]} : vector<512x2xf32> to vector<128x2xf32>
    %26 = vector.extract_strided_slice %16 {offsets = [384, 0], sizes = [128, 2], strides = [1, 1]} : vector<512x2xf32> to vector<128x2xf32>
    %cst_19 = arith.constant 0.000000e+00 : f32
    %27 = vector.broadcast %cst_19 : f32 to vector<128x1xf32>
    %28 = vector.extract_strided_slice %26 {offsets = [0, 1], sizes = [128, 1], strides = [1, 1]} : vector<128x2xf32> to vector<128x1xf32>
    %29 = tpu.concatenate %28, %27 in 1 : vector<128x1xf32>, vector<128x1xf32> -> vector<128x2xf32>
    %30 = arith.addf %25, %29 : vector<128x2xf32>
    %31 = vector.broadcast %15 : vector<128x1xf32> to vector<128x2xf32>
    %32 = arith.addf %30, %31 : vector<128x2xf32>
    %cst_20 = arith.constant 0.000000e+00 : f32
    %33 = vector.broadcast %cst_20 : f32 to vector<128x2xf32>
    %34 = arith.maximumf %24, %33 : vector<128x2xf32>
    %cst_21 = arith.constant 0.000000e+00 : f32
    %35 = vector.broadcast %cst_21 : f32 to vector<128x2xf32>
    %36 = arith.maximumf %32, %35 : vector<128x2xf32>
    %37 = vector.extract_strided_slice %0 {offsets = [0, 0], sizes = [2, 4], strides = [1, 1]} : vector<128x256xf32> to vector<2x4xf32>
    %cst_22 = arith.constant dense<0.000000e+00> : vector<128x4xf32>
    %38 = tpu.matmul %34, %37, %cst_22 {dimension_numbers = #tpu.dot_dimension_numbers<[1], [0], [0], [1], [0, 0, 1, 1], [], []>} : vector<128x2xf32>, vector<2x4xf32>, vector<128x4xf32> -> vector<128x4xf32>
    %39 = vector.extract_strided_slice %1 {offsets = [0, 0], sizes = [2, 4], strides = [1, 1]} : vector<128x256xf32> to vector<2x4xf32>
    %cst_23 = arith.constant dense<0.000000e+00> : vector<128x4xf32>
    %40 = tpu.matmul %36, %39, %cst_23 {dimension_numbers = #tpu.dot_dimension_numbers<[1], [0], [0], [1], [0, 0, 1, 1], [], []>} : vector<128x2xf32>, vector<2x4xf32>, vector<128x4xf32> -> vector<128x4xf32>
    %41 = arith.addf %38, %40 : vector<128x4xf32>
    %c0_24 = arith.constant 0 : index
    %c0_25 = arith.constant 0 : index
    %42 = vector.load %arg9[%c0_24, %c0_25] : memref<256x128xf32, #tpu.memory_space<vmem>>, vector<256x128xf32>
    %c0_26 = arith.constant 0 : index
    %c0_27 = arith.constant 0 : index
    %43 = vector.load %arg10[%c0_26, %c0_27] : memref<64x1xf32, #tpu.memory_space<vmem>>, vector<64x1xf32>
    %cst_28 = arith.constant dense<0.000000e+00> : vector<256x4xf32>
    %44 = tpu.matmul %42, %41, %cst_28 {dimension_numbers = #tpu.dot_dimension_numbers<[1], [0], [0], [1], [0, 0, 1, 1], [], []>} : vector<256x128xf32>, vector<128x4xf32>, vector<256x4xf32> -> vector<256x4xf32>
    %45 = vector.extract_strided_slice %44 {offsets = [0, 0], sizes = [64, 4], strides = [1, 1]} : vector<256x4xf32> to vector<64x4xf32>
    %46 = vector.extract_strided_slice %44 {offsets = [64, 0], sizes = [64, 4], strides = [1, 1]} : vector<256x4xf32> to vector<64x4xf32>
    %cst_29 = arith.constant 0.000000e+00 : f32
    %47 = vector.broadcast %cst_29 : f32 to vector<64x1xf32>
    %48 = vector.extract_strided_slice %46 {offsets = [0, 0], sizes = [64, 3], strides = [1, 1]} : vector<64x4xf32> to vector<64x3xf32>
    %49 = tpu.concatenate %47, %48 in 1 : vector<64x1xf32>, vector<64x3xf32> -> vector<64x4xf32>
    %50 = arith.addf %45, %49 : vector<64x4xf32>
    %51 = vector.broadcast %43 : vector<64x1xf32> to vector<64x4xf32>
    %52 = arith.addf %50, %51 : vector<64x4xf32>
    %53 = vector.extract_strided_slice %44 {offsets = [128, 0], sizes = [64, 4], strides = [1, 1]} : vector<256x4xf32> to vector<64x4xf32>
    %54 = vector.extract_strided_slice %44 {offsets = [192, 0], sizes = [64, 4], strides = [1, 1]} : vector<256x4xf32> to vector<64x4xf32>
    %cst_30 = arith.constant 0.000000e+00 : f32
    %55 = vector.broadcast %cst_30 : f32 to vector<64x1xf32>
    %56 = vector.extract_strided_slice %54 {offsets = [0, 1], sizes = [64, 3], strides = [1, 1]} : vector<64x4xf32> to vector<64x3xf32>
    %57 = tpu.concatenate %56, %55 in 1 : vector<64x3xf32>, vector<64x1xf32> -> vector<64x4xf32>
    %58 = arith.addf %53, %57 : vector<64x4xf32>
    %59 = vector.broadcast %43 : vector<64x1xf32> to vector<64x4xf32>
    %60 = arith.addf %58, %59 : vector<64x4xf32>
    %cst_31 = arith.constant 0.000000e+00 : f32
    %61 = vector.broadcast %cst_31 : f32 to vector<64x4xf32>
    %62 = arith.maximumf %52, %61 : vector<64x4xf32>
    %cst_32 = arith.constant 0.000000e+00 : f32
    %63 = vector.broadcast %cst_32 : f32 to vector<64x4xf32>
    %64 = arith.maximumf %60, %63 : vector<64x4xf32>
    %65 = vector.extract_strided_slice %0 {offsets = [0, 0], sizes = [4, 8], strides = [1, 1]} : vector<128x256xf32> to vector<4x8xf32>
    %cst_33 = arith.constant dense<0.000000e+00> : vector<64x8xf32>
    %66 = tpu.matmul %62, %65, %cst_33 {dimension_numbers = #tpu.dot_dimension_numbers<[1], [0], [0], [1], [0, 0, 1, 1], [], []>} : vector<64x4xf32>, vector<4x8xf32>, vector<64x8xf32> -> vector<64x8xf32>
    %67 = vector.extract_strided_slice %1 {offsets = [0, 0], sizes = [4, 8], strides = [1, 1]} : vector<128x256xf32> to vector<4x8xf32>
    %cst_34 = arith.constant dense<0.000000e+00> : vector<64x8xf32>
    %68 = tpu.matmul %64, %67, %cst_34 {dimension_numbers = #tpu.dot_dimension_numbers<[1], [0], [0], [1], [0, 0, 1, 1], [], []>} : vector<64x4xf32>, vector<4x8xf32>, vector<64x8xf32> -> vector<64x8xf32>
    %69 = arith.addf %66, %68 : vector<64x8xf32>
    %c0_35 = arith.constant 0 : index
    %c0_36 = arith.constant 0 : index
    %70 = vector.load %arg11[%c0_35, %c0_36] : memref<256x64xf32, #tpu.memory_space<vmem>>, vector<256x64xf32>
    %c0_37 = arith.constant 0 : index
    %c0_38 = arith.constant 0 : index
    %71 = vector.load %arg12[%c0_37, %c0_38] : memref<64x1xf32, #tpu.memory_space<vmem>>, vector<64x1xf32>
    %cst_39 = arith.constant dense<0.000000e+00> : vector<256x8xf32>
    %72 = tpu.matmul %70, %69, %cst_39 {dimension_numbers = #tpu.dot_dimension_numbers<[1], [0], [0], [1], [0, 0, 1, 1], [], []>} : vector<256x64xf32>, vector<64x8xf32>, vector<256x8xf32> -> vector<256x8xf32>
    %73 = vector.extract_strided_slice %72 {offsets = [0, 0], sizes = [64, 8], strides = [1, 1]} : vector<256x8xf32> to vector<64x8xf32>
    %74 = vector.extract_strided_slice %72 {offsets = [64, 0], sizes = [64, 8], strides = [1, 1]} : vector<256x8xf32> to vector<64x8xf32>
    %cst_40 = arith.constant 0.000000e+00 : f32
    %75 = vector.broadcast %cst_40 : f32 to vector<64x1xf32>
    %76 = vector.extract_strided_slice %74 {offsets = [0, 0], sizes = [64, 7], strides = [1, 1]} : vector<64x8xf32> to vector<64x7xf32>
    %77 = tpu.concatenate %75, %76 in 1 : vector<64x1xf32>, vector<64x7xf32> -> vector<64x8xf32>
    %78 = arith.addf %73, %77 : vector<64x8xf32>
    %79 = vector.broadcast %71 : vector<64x1xf32> to vector<64x8xf32>
    %80 = arith.addf %78, %79 : vector<64x8xf32>
    %81 = vector.extract_strided_slice %72 {offsets = [128, 0], sizes = [64, 8], strides = [1, 1]} : vector<256x8xf32> to vector<64x8xf32>
    %82 = vector.extract_strided_slice %72 {offsets = [192, 0], sizes = [64, 8], strides = [1, 1]} : vector<256x8xf32> to vector<64x8xf32>
    %cst_41 = arith.constant 0.000000e+00 : f32
    %83 = vector.broadcast %cst_41 : f32 to vector<64x1xf32>
    %84 = vector.extract_strided_slice %82 {offsets = [0, 1], sizes = [64, 7], strides = [1, 1]} : vector<64x8xf32> to vector<64x7xf32>
    %85 = tpu.concatenate %84, %83 in 1 : vector<64x7xf32>, vector<64x1xf32> -> vector<64x8xf32>
    %86 = arith.addf %81, %85 : vector<64x8xf32>
    %87 = vector.broadcast %71 : vector<64x1xf32> to vector<64x8xf32>
    %88 = arith.addf %86, %87 : vector<64x8xf32>
    %cst_42 = arith.constant 0.000000e+00 : f32
    %89 = vector.broadcast %cst_42 : f32 to vector<64x8xf32>
    %90 = arith.maximumf %80, %89 : vector<64x8xf32>
    %cst_43 = arith.constant 0.000000e+00 : f32
    %91 = vector.broadcast %cst_43 : f32 to vector<64x8xf32>
    %92 = arith.maximumf %88, %91 : vector<64x8xf32>
    %93 = vector.extract_strided_slice %0 {offsets = [0, 0], sizes = [8, 16], strides = [1, 1]} : vector<128x256xf32> to vector<8x16xf32>
    %cst_44 = arith.constant dense<0.000000e+00> : vector<64x16xf32>
    %94 = tpu.matmul %90, %93, %cst_44 {dimension_numbers = #tpu.dot_dimension_numbers<[1], [0], [0], [1], [0, 0, 1, 1], [], []>} : vector<64x8xf32>, vector<8x16xf32>, vector<64x16xf32> -> vector<64x16xf32>
    %95 = vector.extract_strided_slice %1 {offsets = [0, 0], sizes = [8, 16], strides = [1, 1]} : vector<128x256xf32> to vector<8x16xf32>
    %cst_45 = arith.constant dense<0.000000e+00> : vector<64x16xf32>
    %96 = tpu.matmul %92, %95, %cst_45 {dimension_numbers = #tpu.dot_dimension_numbers<[1], [0], [0], [1], [0, 0, 1, 1], [], []>} : vector<64x8xf32>, vector<8x16xf32>, vector<64x16xf32> -> vector<64x16xf32>
    %97 = arith.addf %94, %96 : vector<64x16xf32>
    %c0_46 = arith.constant 0 : index
    %c0_47 = arith.constant 0 : index
    %98 = vector.load %arg13[%c0_46, %c0_47] : memref<192x64xf32, #tpu.memory_space<vmem>>, vector<192x64xf32>
    %c0_48 = arith.constant 0 : index
    %c0_49 = arith.constant 0 : index
    %99 = vector.load %arg14[%c0_48, %c0_49] : memref<64x1xf32, #tpu.memory_space<vmem>>, vector<64x1xf32>
    %cst_50 = arith.constant dense<0.000000e+00> : vector<192x16xf32>
    %100 = tpu.matmul %98, %97, %cst_50 {dimension_numbers = #tpu.dot_dimension_numbers<[1], [0], [0], [1], [0, 0, 1, 1], [], []>} : vector<192x64xf32>, vector<64x16xf32>, vector<192x16xf32> -> vector<192x16xf32>
    %101 = vector.extract_strided_slice %100 {offsets = [0, 0], sizes = [64, 16], strides = [1, 1]} : vector<192x16xf32> to vector<64x16xf32>
    %102 = vector.extract_strided_slice %100 {offsets = [64, 0], sizes = [64, 16], strides = [1, 1]} : vector<192x16xf32> to vector<64x16xf32>
    %cst_51 = arith.constant 0.000000e+00 : f32
    %103 = vector.broadcast %cst_51 : f32 to vector<64x1xf32>
    %104 = vector.extract_strided_slice %102 {offsets = [0, 0], sizes = [64, 15], strides = [1, 1]} : vector<64x16xf32> to vector<64x15xf32>
    %105 = tpu.concatenate %103, %104 in 1 : vector<64x1xf32>, vector<64x15xf32> -> vector<64x16xf32>
    %106 = arith.addf %101, %105 : vector<64x16xf32>
    %107 = vector.extract_strided_slice %100 {offsets = [128, 0], sizes = [64, 16], strides = [1, 1]} : vector<192x16xf32> to vector<64x16xf32>
    %cst_52 = arith.constant 0.000000e+00 : f32
    %108 = vector.broadcast %cst_52 : f32 to vector<64x1xf32>
    %109 = vector.extract_strided_slice %107 {offsets = [0, 1], sizes = [64, 15], strides = [1, 1]} : vector<64x16xf32> to vector<64x15xf32>
    %110 = tpu.concatenate %109, %108 in 1 : vector<64x15xf32>, vector<64x1xf32> -> vector<64x16xf32>
    %111 = arith.addf %106, %110 : vector<64x16xf32>
    %112 = vector.broadcast %99 : vector<64x1xf32> to vector<64x16xf32>
    %113 = arith.addf %111, %112 : vector<64x16xf32>
    %cst_53 = arith.constant 0.000000e+00 : f32
    %114 = vector.broadcast %cst_53 : f32 to vector<64x16xf32>
    %115 = arith.maximumf %113, %114 : vector<64x16xf32>
    %c0_54 = arith.constant 0 : index
    %c0_55 = arith.constant 0 : index
    %116 = vector.load %arg15[%c0_54, %c0_55] : memref<128x64xf32, #tpu.memory_space<vmem>>, vector<128x64xf32>
    %c0_56 = arith.constant 0 : index
    %c0_57 = arith.constant 0 : index
    %117 = vector.load %arg16[%c0_56, %c0_57] : memref<32x1xf32, #tpu.memory_space<vmem>>, vector<32x1xf32>
    %cst_58 = arith.constant dense<0.000000e+00> : vector<128x16xf32>
    %118 = tpu.matmul %116, %115, %cst_58 {dimension_numbers = #tpu.dot_dimension_numbers<[1], [0], [0], [1], [0, 0, 1, 1], [], []>} : vector<128x64xf32>, vector<64x16xf32>, vector<128x16xf32> -> vector<128x16xf32>
    %119 = vector.extract_strided_slice %118 {offsets = [0, 0], sizes = [32, 16], strides = [1, 1]} : vector<128x16xf32> to vector<32x16xf32>
    %120 = vector.extract_strided_slice %118 {offsets = [32, 0], sizes = [32, 16], strides = [1, 1]} : vector<128x16xf32> to vector<32x16xf32>
    %cst_59 = arith.constant 0.000000e+00 : f32
    %121 = vector.broadcast %cst_59 : f32 to vector<32x1xf32>
    %122 = vector.extract_strided_slice %120 {offsets = [0, 0], sizes = [32, 15], strides = [1, 1]} : vector<32x16xf32> to vector<32x15xf32>
    %123 = tpu.concatenate %121, %122 in 1 : vector<32x1xf32>, vector<32x15xf32> -> vector<32x16xf32>
    %124 = arith.addf %119, %123 : vector<32x16xf32>
    %125 = vector.broadcast %117 : vector<32x1xf32> to vector<32x16xf32>
    %126 = arith.addf %124, %125 : vector<32x16xf32>
    %127 = vector.extract_strided_slice %118 {offsets = [64, 0], sizes = [32, 16], strides = [1, 1]} : vector<128x16xf32> to vector<32x16xf32>
    %128 = vector.extract_strided_slice %118 {offsets = [96, 0], sizes = [32, 16], strides = [1, 1]} : vector<128x16xf32> to vector<32x16xf32>
    %cst_60 = arith.constant 0.000000e+00 : f32
    %129 = vector.broadcast %cst_60 : f32 to vector<32x1xf32>
    %130 = vector.extract_strided_slice %128 {offsets = [0, 1], sizes = [32, 15], strides = [1, 1]} : vector<32x16xf32> to vector<32x15xf32>
    %131 = tpu.concatenate %130, %129 in 1 : vector<32x15xf32>, vector<32x1xf32> -> vector<32x16xf32>
    %132 = arith.addf %127, %131 : vector<32x16xf32>
    %133 = vector.broadcast %117 : vector<32x1xf32> to vector<32x16xf32>
    %134 = arith.addf %132, %133 : vector<32x16xf32>
    %cst_61 = arith.constant 0.000000e+00 : f32
    %135 = vector.broadcast %cst_61 : f32 to vector<32x16xf32>
    %136 = arith.maximumf %126, %135 : vector<32x16xf32>
    %cst_62 = arith.constant 0.000000e+00 : f32
    %137 = vector.broadcast %cst_62 : f32 to vector<32x16xf32>
    %138 = arith.maximumf %134, %137 : vector<32x16xf32>
    %139 = vector.extract_strided_slice %0 {offsets = [0, 0], sizes = [16, 32], strides = [1, 1]} : vector<128x256xf32> to vector<16x32xf32>
    %cst_63 = arith.constant dense<0.000000e+00> : vector<32x32xf32>
    %140 = tpu.matmul %136, %139, %cst_63 {dimension_numbers = #tpu.dot_dimension_numbers<[1], [0], [0], [1], [0, 0, 1, 1], [], []>} : vector<32x16xf32>, vector<16x32xf32>, vector<32x32xf32> -> vector<32x32xf32>
    %141 = vector.extract_strided_slice %1 {offsets = [0, 0], sizes = [16, 32], strides = [1, 1]} : vector<128x256xf32> to vector<16x32xf32>
    %cst_64 = arith.constant dense<0.000000e+00> : vector<32x32xf32>
    %142 = tpu.matmul %138, %141, %cst_64 {dimension_numbers = #tpu.dot_dimension_numbers<[1], [0], [0], [1], [0, 0, 1, 1], [], []>} : vector<32x16xf32>, vector<16x32xf32>, vector<32x32xf32> -> vector<32x32xf32>
    %143 = arith.addf %140, %142 : vector<32x32xf32>
    %c0_65 = arith.constant 0 : index
    %c0_66 = arith.constant 0 : index
    %144 = vector.load %arg17[%c0_65, %c0_66] : memref<64x32xf32, #tpu.memory_space<vmem>>, vector<64x32xf32>
    %c0_67 = arith.constant 0 : index
    %c0_68 = arith.constant 0 : index
    %145 = vector.load %arg18[%c0_67, %c0_68] : memref<16x1xf32, #tpu.memory_space<vmem>>, vector<16x1xf32>
    %cst_69 = arith.constant dense<0.000000e+00> : vector<64x32xf32>
    %146 = tpu.matmul %144, %143, %cst_69 {dimension_numbers = #tpu.dot_dimension_numbers<[1], [0], [0], [1], [0, 0, 1, 1], [], []>} : vector<64x32xf32>, vector<32x32xf32>, vector<64x32xf32> -> vector<64x32xf32>
    %147 = vector.extract_strided_slice %146 {offsets = [0, 0], sizes = [16, 32], strides = [1, 1]} : vector<64x32xf32> to vector<16x32xf32>
    %148 = vector.extract_strided_slice %146 {offsets = [16, 0], sizes = [16, 32], strides = [1, 1]} : vector<64x32xf32> to vector<16x32xf32>
    %cst_70 = arith.constant 0.000000e+00 : f32
    %149 = vector.broadcast %cst_70 : f32 to vector<16x1xf32>
    %150 = vector.extract_strided_slice %148 {offsets = [0, 0], sizes = [16, 31], strides = [1, 1]} : vector<16x32xf32> to vector<16x31xf32>
    %151 = tpu.concatenate %149, %150 in 1 : vector<16x1xf32>, vector<16x31xf32> -> vector<16x32xf32>
    %152 = arith.addf %147, %151 : vector<16x32xf32>
    %153 = vector.broadcast %145 : vector<16x1xf32> to vector<16x32xf32>
    %154 = arith.addf %152, %153 : vector<16x32xf32>
    %155 = vector.extract_strided_slice %146 {offsets = [32, 0], sizes = [16, 32], strides = [1, 1]} : vector<64x32xf32> to vector<16x32xf32>
    %156 = vector.extract_strided_slice %146 {offsets = [48, 0], sizes = [16, 32], strides = [1, 1]} : vector<64x32xf32> to vector<16x32xf32>
    %cst_71 = arith.constant 0.000000e+00 : f32
    %157 = vector.broadcast %cst_71 : f32 to vector<16x1xf32>
    %158 = vector.extract_strided_slice %156 {offsets = [0, 1], sizes = [16, 31], strides = [1, 1]} : vector<16x32xf32> to vector<16x31xf32>
    %159 = tpu.concatenate %158, %157 in 1 : vector<16x31xf32>, vector<16x1xf32> -> vector<16x32xf32>
    %160 = arith.addf %155, %159 : vector<16x32xf32>
    %161 = vector.broadcast %145 : vector<16x1xf32> to vector<16x32xf32>
    %162 = arith.addf %160, %161 : vector<16x32xf32>
    %cst_72 = arith.constant 0.000000e+00 : f32
    %163 = vector.broadcast %cst_72 : f32 to vector<16x32xf32>
    %164 = arith.maximumf %154, %163 : vector<16x32xf32>
    %cst_73 = arith.constant 0.000000e+00 : f32
    %165 = vector.broadcast %cst_73 : f32 to vector<16x32xf32>
    %166 = arith.maximumf %162, %165 : vector<16x32xf32>
    %167 = vector.extract_strided_slice %0 {offsets = [0, 0], sizes = [32, 64], strides = [1, 1]} : vector<128x256xf32> to vector<32x64xf32>
    %cst_74 = arith.constant dense<0.000000e+00> : vector<16x64xf32>
    %168 = tpu.matmul %164, %167, %cst_74 {dimension_numbers = #tpu.dot_dimension_numbers<[1], [0], [0], [1], [0, 0, 1, 1], [], []>} : vector<16x32xf32>, vector<32x64xf32>, vector<16x64xf32> -> vector<16x64xf32>
    %169 = vector.extract_strided_slice %1 {offsets = [0, 0], sizes = [32, 64], strides = [1, 1]} : vector<128x256xf32> to vector<32x64xf32>
    %cst_75 = arith.constant dense<0.000000e+00> : vector<16x64xf32>
    %170 = tpu.matmul %166, %169, %cst_75 {dimension_numbers = #tpu.dot_dimension_numbers<[1], [0], [0], [1], [0, 0, 1, 1], [], []>} : vector<16x32xf32>, vector<32x64xf32>, vector<16x64xf32> -> vector<16x64xf32>
    %171 = arith.addf %168, %170 : vector<16x64xf32>
    %c0_76 = arith.constant 0 : index
    %c0_77 = arith.constant 0 : index
    %172 = vector.load %arg19[%c0_76, %c0_77] : memref<64x16xf32, #tpu.memory_space<vmem>>, vector<64x16xf32>
    %c0_78 = arith.constant 0 : index
    %c0_79 = arith.constant 0 : index
    %173 = vector.load %arg20[%c0_78, %c0_79] : memref<16x1xf32, #tpu.memory_space<vmem>>, vector<16x1xf32>
    %cst_80 = arith.constant dense<0.000000e+00> : vector<64x64xf32>
    %174 = tpu.matmul %172, %171, %cst_80 {dimension_numbers = #tpu.dot_dimension_numbers<[1], [0], [0], [1], [0, 0, 1, 1], [], []>} : vector<64x16xf32>, vector<16x64xf32>, vector<64x64xf32> -> vector<64x64xf32>
    %175 = vector.extract_strided_slice %174 {offsets = [0, 0], sizes = [16, 64], strides = [1, 1]} : vector<64x64xf32> to vector<16x64xf32>
    %176 = vector.extract_strided_slice %174 {offsets = [16, 0], sizes = [16, 64], strides = [1, 1]} : vector<64x64xf32> to vector<16x64xf32>
    %cst_81 = arith.constant 0.000000e+00 : f32
    %177 = vector.broadcast %cst_81 : f32 to vector<16x1xf32>
    %178 = vector.extract_strided_slice %176 {offsets = [0, 0], sizes = [16, 63], strides = [1, 1]} : vector<16x64xf32> to vector<16x63xf32>
    %179 = tpu.concatenate %177, %178 in 1 : vector<16x1xf32>, vector<16x63xf32> -> vector<16x64xf32>
    %180 = arith.addf %175, %179 : vector<16x64xf32>
    %181 = vector.broadcast %173 : vector<16x1xf32> to vector<16x64xf32>
    %182 = arith.addf %180, %181 : vector<16x64xf32>
    %183 = vector.extract_strided_slice %174 {offsets = [32, 0], sizes = [16, 64], strides = [1, 1]} : vector<64x64xf32> to vector<16x64xf32>
    %184 = vector.extract_strided_slice %174 {offsets = [48, 0], sizes = [16, 64], strides = [1, 1]} : vector<64x64xf32> to vector<16x64xf32>
    %cst_82 = arith.constant 0.000000e+00 : f32
    %185 = vector.broadcast %cst_82 : f32 to vector<16x1xf32>
    %186 = vector.extract_strided_slice %184 {offsets = [0, 1], sizes = [16, 63], strides = [1, 1]} : vector<16x64xf32> to vector<16x63xf32>
    %187 = tpu.concatenate %186, %185 in 1 : vector<16x63xf32>, vector<16x1xf32> -> vector<16x64xf32>
    %188 = arith.addf %183, %187 : vector<16x64xf32>
    %189 = vector.broadcast %173 : vector<16x1xf32> to vector<16x64xf32>
    %190 = arith.addf %188, %189 : vector<16x64xf32>
    %191 = vector.extract_strided_slice %0 {offsets = [0, 0], sizes = [64, 128], strides = [1, 1]} : vector<128x256xf32> to vector<64x128xf32>
    %cst_83 = arith.constant dense<0.000000e+00> : vector<16x128xf32>
    %192 = tpu.matmul %182, %191, %cst_83 {dimension_numbers = #tpu.dot_dimension_numbers<[1], [0], [0], [1], [0, 0, 1, 1], [], []>} : vector<16x64xf32>, vector<64x128xf32>, vector<16x128xf32> -> vector<16x128xf32>
    %193 = vector.extract_strided_slice %1 {offsets = [0, 0], sizes = [64, 128], strides = [1, 1]} : vector<128x256xf32> to vector<64x128xf32>
    %cst_84 = arith.constant dense<0.000000e+00> : vector<16x128xf32>
    %194 = tpu.matmul %190, %193, %cst_84 {dimension_numbers = #tpu.dot_dimension_numbers<[1], [0], [0], [1], [0, 0, 1, 1], [], []>} : vector<16x64xf32>, vector<64x128xf32>, vector<16x128xf32> -> vector<16x128xf32>
    %195 = arith.addf %192, %194 : vector<16x128xf32>
    %c0_85 = arith.constant 0 : index
    %c0_86 = arith.constant 0 : index
    %c0_87 = arith.constant 0 : index
    %196 = vector.load %arg21[%c0_85, %c0_86, %c0_87] : memref<1x16x128xf32, #tpu.memory_space<vmem>>, vector<1x16x128xf32>
    %197 = vector.shape_cast %196 : vector<1x16x128xf32> to vector<16x128xf32>
    %198 = vector.shape_cast %195 : vector<16x128xf32> to vector<1x16x128xf32>
    tpu.vector_store %arg21[%c0_85, %c0_86, %c0_87], %198 {strides = array<i32>} : memref<1x16x128xf32, #tpu.memory_space<vmem>>, vector<1x16x128xf32>,
    return
  }
  func.func @transform_0(%arg0: i32) -> (i32, i32, i32) {
    %c0_i32 = arith.constant 0 : i32
    %c0_i32_0 = arith.constant 0 : i32
    %c0_i32_1 = arith.constant 0 : i32
    return %arg0, %c0_i32, %c0_i32_0 : i32, i32, i32
  }
  func.func @transform_1(%arg0: i32) -> (i32, i32) {
    %c0_i32 = arith.constant 0 : i32
    %c0_i32_0 = arith.constant 0 : i32
    %c0_i32_1 = arith.constant 0 : i32
    return %c0_i32, %c0_i32_0 : i32, i32
  }
  func.func @transform_2(%arg0: i32) -> (i32, i32) {
    %c0_i32 = arith.constant 0 : i32
    %c0_i32_0 = arith.constant 0 : i32
    %c0_i32_1 = arith.constant 0 : i32
    return %c0_i32, %c0_i32_0 : i32, i32
  }
  func.func @transform_3(%arg0: i32) -> (i32, i32) {
    %c0_i32 = arith.constant 0 : i32
    %c0_i32_0 = arith.constant 0 : i32
    %c0_i32_1 = arith.constant 0 : i32
    return %c0_i32, %c0_i32_0 : i32, i32
  }
  func.func @transform_4(%arg0: i32) -> (i32, i32) {
    %c0_i32 = arith.constant 0 : i32
    %c0_i32_0 = arith.constant 0 : i32
    %c0_i32_1 = arith.constant 0 : i32
    return %c0_i32, %c0_i32_0 : i32, i32
  }
  func.func @transform_5(%arg0: i32) -> (i32, i32) {
    %c0_i32 = arith.constant 0 : i32
    %c0_i32_0 = arith.constant 0 : i32
    %c0_i32_1 = arith.constant 0 : i32
    return %c0_i32, %c0_i32_0 : i32, i32
  }
  func.func @transform_6(%arg0: i32) -> (i32, i32) {
    %c0_i32 = arith.constant 0 : i32
    %c0_i32_0 = arith.constant 0 : i32
    %c0_i32_1 = arith.constant 0 : i32
    return %c0_i32, %c0_i32_0 : i32, i32
  }
  func.func @transform_7(%arg0: i32) -> (i32, i32) {
    %c0_i32 = arith.constant 0 : i32
    %c0_i32_0 = arith.constant 0 : i32
    %c0_i32_1 = arith.constant 0 : i32
    return %c0_i32, %c0_i32_0 : i32, i32
  }
  func.func @transform_8(%arg0: i32) -> (i32, i32) {
    %c0_i32 = arith.constant 0 : i32
    %c0_i32_0 = arith.constant 0 : i32
    %c0_i32_1 = arith.constant 0 : i32
    return %c0_i32, %c0_i32_0 : i32, i32
  }
  func.func @transform_9(%arg0: i32) -> (i32, i32) {
    %c0_i32 = arith.constant 0 : i32
    %c0_i32_0 = arith.constant 0 : i32
    %c0_i32_1 = arith.constant 0 : i32
    return %c0_i32, %c0_i32_0 : i32, i32
  }
  func.func @transform_10(%arg0: i32) -> (i32, i32) {
    %c0_i32 = arith.constant 0 : i32
    %c0_i32_0 = arith.constant 0 : i32
    %c0_i32_1 = arith.constant 0 : i32
    return %c0_i32, %c0_i32_0 : i32, i32
  }
  func.func @transform_11(%arg0: i32) -> (i32, i32) {
    %c0_i32 = arith.constant 0 : i32
    %c0_i32_0 = arith.constant 0 : i32
    %c0_i32_1 = arith.constant 0 : i32
    return %c0_i32, %c0_i32_0 : i32, i32
  }
  func.func @transform_12(%arg0: i32) -> (i32, i32) {
    %c0_i32 = arith.constant 0 : i32
    %c0_i32_0 = arith.constant 0 : i32
    %c0_i32_1 = arith.constant 0 : i32
    return %c0_i32, %c0_i32_0 : i32, i32
  }
  func.func @transform_13(%arg0: i32) -> (i32, i32) {
    %c0_i32 = arith.constant 0 : i32
    %c0_i32_0 = arith.constant 0 : i32
    %c0_i32_1 = arith.constant 0 : i32
    return %c0_i32, %c0_i32_0 : i32, i32
  }
  func.func @transform_14(%arg0: i32) -> (i32, i32) {
    %c0_i32 = arith.constant 0 : i32
    %c0_i32_0 = arith.constant 0 : i32
    %c0_i32_1 = arith.constant 0 : i32
    return %c0_i32, %c0_i32_0 : i32, i32
  }
  func.func @transform_15(%arg0: i32) -> (i32, i32) {
    %c0_i32 = arith.constant 0 : i32
    %c0_i32_0 = arith.constant 0 : i32
    %c0_i32_1 = arith.constant 0 : i32
    return %c0_i32, %c0_i32_0 : i32, i32
  }
  func.func @transform_16(%arg0: i32) -> (i32, i32) {
    %c0_i32 = arith.constant 0 : i32
    %c0_i32_0 = arith.constant 0 : i32
    %c0_i32_1 = arith.constant 0 : i32
    return %c0_i32, %c0_i32_0 : i32, i32
  }
  func.func @transform_17(%arg0: i32) -> (i32, i32) {
    %c0_i32 = arith.constant 0 : i32
    %c0_i32_0 = arith.constant 0 : i32
    %c0_i32_1 = arith.constant 0 : i32
    return %c0_i32, %c0_i32_0 : i32, i32
  }
  func.func @transform_18(%arg0: i32) -> (i32, i32) {
    %c0_i32 = arith.constant 0 : i32
    %c0_i32_0 = arith.constant 0 : i32
    %c0_i32_1 = arith.constant 0 : i32
    return %c0_i32, %c0_i32_0 : i32, i32
  }
  func.func @transform_19(%arg0: i32) -> (i32, i32) {
    %c0_i32 = arith.constant 0 : i32
    %c0_i32_0 = arith.constant 0 : i32
    %c0_i32_1 = arith.constant 0 : i32
    return %c0_i32, %c0_i32_0 : i32, i32
  }
  func.func @transform_20(%arg0: i32) -> (i32, i32, i32) {
    %c0_i32 = arith.constant 0 : i32
    %c0_i32_0 = arith.constant 0 : i32
    %c0_i32_1 = arith.constant 0 : i32
    return %arg0, %c0_i32, %c0_i32_0 : i32, i32, i32
  }
}

</mosaic_0001>

<bundles_post_ra>
// kernel: eq.22
= control target key start
LH: loop header
LB: loop body
LE: loop exit
PB: predicated region body
PF: predicated region fallthrough
CT: control target
= control target key end

     0   :  { %vm7_vm0 = vcmask 261120   ;;  %vm13_vm1 = vcmask 523520   ;;  %s39_s0 = inlined_call_operand.vmem [shape: s32[2,32], index: 0, kind: input, shape index: {}]   ;;  %s40_s1 = inlined_call_operand.vmem [shape: s32[64], index: 1, kind: output, shape index: {}]  }
   0x1   :  { %v4_v0 = vld [vmem:[%s39_s0] sm:$0x3]  ;;  %s22_s0 = smov 32  }
   0x2   :  { %5 = vst [vmem:[#allocation1] sm:$0x3] %v4_v0 }
   0x9   :  { %v10_v1 = vld [vmem:[#allocation1 + $0x1] sm:$0x1]   ;;  %v6_v2 = vld [vmem:[#allocation1] sm:$0x1]  }
   0xa   :  { %11 = vrot.lane.b32.xlu0 %v10_v1, %s22_s0  ;;  %8 = vst.msk [vmem:[#allocation0] sm:$0x1] %vm7_vm0, %v6_v2  }
  0x7c   :  { %v12_v3 = vpop.permute.xlu0 %11  }
  0x7d   :  { %14 = vst.msk [vmem:[#allocation0] sm:$0x1] %vm13_vm1, %v12_v3  }
  0x84   :  { %v18_v4 = vld [vmem:[#allocation0] sm:$0x1] }
  0x85   :  { %20 = vst [vmem:[%s40_s1] sm:$0x1] %v18_v4 }

// kernel: spectro_decoder_forward.1
= control target key start
LH: loop header
LB: loop body
LE: loop exit
PB: predicated region body
PF: predicated region fallthrough
CT: control target
= control target key end

     0   :  { %s9246_s0 = inlined_call_operand.vmem [shape: f32[2,32,1], index: 0, kind: input, shape index: {}]   ;;  %s9247_s1 = inlined_call_operand.vmem [shape: f32[256,64], index: 1, kind: input, shape index: {}]   ;;  %s9248_s2 = inlined_call_operand.vmem [shape: f32[256,2], index: 2, kind: input, shape index: {}]   ;;  %s9249_s3 = inlined_call_operand.vmem [shape: f32[64,2], index: 3, kind: input, shape index: {}]   ;;  %s9250_s4 = inlined_call_operand.vmem [shape: f32[128,256], index: 4, kind: input, shape index: {}]   ;;  %s9251_s5 = inlined_call_operand.vmem [shape: f32[128,256], index: 5, kind: input, shape index: {}]   ;;  %s9252_s6 = inlined_call_operand.vmem [shape: f32[512,256], index: 6, kind: input, shape index: {}]   ;;  %s9253_s7 = inlined_call_operand.vmem [shape: f32[128,1], index: 7, kind: input, shape index: {}]   ;;  %s9254_s8 = inlined_call_operand.vmem [shape: f32[256,128], index: 8, kind: input, shape index: {}]   ;;  %s9255_s9 = inlined_call_operand.vmem [shape: f32[64,1], index: 9, kind: input, shape index: {}]   ;;  %s9256_s10 = inlined_call_operand.vmem [shape: f32[256,64], index: 10, kind: input, shape index: {}]   ;;  %s9257_s11 = inlined_call_operand.vmem [shape: f32[64,1], index: 11, kind: input, shape index: {}]   ;;  %s9258_s12 = inlined_call_operand.vmem [shape: f32[192,64], index: 12, kind: input, shape index: {}]   ;;  %s9259_s13 = inlined_call_operand.vmem [shape: f32[64,1], index: 13, kind: input, shape index: {}]   ;;  %s9260_s14 = inlined_call_operand.vmem [shape: f32[128,64], index: 14, kind: input, shape index: {}]   ;;  %s9261_s15 = inlined_call_operand.vmem [shape: f32[32,1], index: 15, kind: input, shape index: {}]   ;;  %s9262_s16 = inlined_call_operand.vmem [shape: f32[64,32], index: 16, kind: input, shape index: {}]   ;;  %s9263_s17 = inlined_call_operand.vmem [shape: f32[16,1], index: 17, kind: input, shape index: {}]   ;;  %s9264_s18 = inlined_call_operand.vmem [shape: f32[64,16], index: 18, kind: input, shape index: {}]   ;;  %s9265_s19 = inlined_call_operand.vmem [shape: f32[16,1], index: 19, kind: input, shape index: {}]   ;;  %s9266_s20 = inlined_call_operand.hbm [shape: f32[2,16,128], index: 20, kind: output, shape index: {}]  }
   0x1   :  { %9282 = sst [smem:[#allocation10_spill]] %s9246_s0 }
   0x2   :  { %9283 = sst [smem:[#allocation11_spill]] %s9247_s1 }
   0x3   :  { %9284 = sst [smem:[#allocation12_spill]] %s9248_s2 }
   0x4   :  { %9285 = sst [smem:[#allocation13_spill]] %s9249_s3 }
   0x5   :  { %9286 = sst [smem:[#allocation14_spill]] %s9250_s4 }
   0x6   :  { %9287 = sst [smem:[#allocation15_spill]] %s9252_s6 }
   0x7   :  { %9288 = sst [smem:[#allocation16_spill]] %s9253_s7 }
   0x8   :  { %9289 = sst [smem:[#allocation17_spill]] %s9254_s8 }
   0x9   :  { %9290 = sst [smem:[#allocation18_spill]] %s9266_s20 }
   0xa   :  { %25 = vsyncpa [#allocation3], 0 }
   0xb   :  { %27 = vsyncpa [#allocation3 + $0x1], 0  ;;  %s7117_s1 = smov 0   ;;  %s7119_s22 = smov 0  }
   0xc   :  { %s7121_s23 = smov 0   ;;  %s7123_s24 = smov 0  }
   0xd LB: > { %9291 = sst [smem:[#allocation5_spill]] %s6991_s1  ;;  %s7138_s2 = sadd.s32 4294967295, %s7003_s24   ;;  %s7003_s24 = sphi %s7123_s24, %s9312_s24   ;;  %s6999_s23 = sphi %s7121_s23, %s9314_s23   ;;  %s6995_s22 = sphi %s7119_s22, %s9316_s22   ;;  %s6991_s1 = sphi %s7117_s1, %s9315_s1  }
   0xe   : > { %9292 = sst [smem:[#allocation6_spill]] %s6999_s23  ;;  %s5546_s25 = sadd.s32 4294967294, %s7003_s24  }
   0xf   : > { %s7142_s3 = sadd.s32 1, %s7003_s24   ;;  %s465_s26 = sadd.s32 1, %s6999_s23 }
  0x10   : > { %9293 = sst [smem:[#allocation7_spill]] %s7142_s3  ;;  %s462_s27 = ssub.s32 %s7003_s24, %s7142_s3 }
  0x11   : > { %p475_p0 = scmp.ne.s32.totalorder %s6999_s23, %s6995_s22  ;;  %p463_p1 = scmp.eq.s32.totalorder %s462_s27, 0 }
  0x12   : > { %p476_p2 = scmp.eq.s32.totalorder %s7138_s2, 1  ;;  %p481_p3 = scmp.ne.s32.totalorder %s6995_s22, %s6991_s1 }
  0x13   : > { %p482_p4 = scmp.eq.s32.totalorder %s5546_s25, 1  ;;  %p5549_p7 = scmp.ge.s32.totalorder %s7003_s24, 1 }
  0x14   : > { %s7153_s28 = scalar_select %p463_p1, %s6999_s23, %s465_s26  }
  0x15   : > { %p7155_p5 = por %p476_p2, %p475_p0  ;;  %p7159_p6 = por %p482_p4, %p481_p3 }
  0x16   : > { %9294 = sst [smem:[#allocation8_spill]] %s7153_s28  ;;  %p565_p8 = scmp.lt.s32.totalorder %s7003_s24, 3 }
  0x17   : > { %s9296_s29 = scalar_select %p7159_p6, 1, 0 }
  0x18   : > { %p566_p9 = pnand %p5549_p7, %p565_p8 }
  0x19   : > { %9297 = sst [smem:[#allocation9_spill]] %s9296_s29  ;;  %p623_p10 = scmp.lt.s32.totalorder (!%p566_p9), %s7138_s2, 1  ;;  %v7005_v0 = vmov (!%p566_p9), 0   ;;  %vm748_vm0 = vcmask (!%p566_p9), 523264   ;;  %vm2017_vm1 = vcmask (!%p566_p9), 1041408   ;;  %vm1695_vm2 = vcmask (!%p566_p9), 7168  }
  0x1a   : > { %569 = sbr.rel (%p566_p9) target bundleno = 4723 (0x1273), region = 100  ;;  %6938 = vset.pattern.permute.xlu1 (!%p566_p9), %v7005_v0  ;;  %6937 = vset.pattern.permute.xlu0 (!%p566_p9), %v7005_v0  ;;  %s9298_s26 = sld [smem:[#allocation10_spill]] (!%p566_p9)  ;;  %vm1968_vm3 = vcmask (!%p566_p9), 15360   ;;  %vm2821_vm4 = vcmask (!%p566_p9), 1043456   ;;  %vm2755_vm5 = vcmask (!%p566_p9), 23552   ;;  %vm2796_vm6 = vcmask (!%p566_p9), 31744  }
  0x1b   : > { %s9299_s7 = sld [smem:[#allocation16_spill]] (!%p566_p9)  ;;  %s9300_s1 = sld [smem:[#allocation11_spill]] (!%p566_p9)  ;;  %vm3549_vm7 = vcmask (!%p566_p9), 56320   ;;  %vm3590_vm8 = vcmask (!%p566_p9), 64512   ;;  %vm4218_vm9 = vcmask (!%p566_p9), 121856   ;;  %vm4588_vm10 = vcmask (!%p566_p9), 130048  }
  0x1c   : > { %s9303_s6 = sld [smem:[#allocation15_spill]] (!%p566_p9)  ;;  %s9278_s23 = smov (!%p566_p9), 127   ;;  %vm4793_vm11 = vcmask (!%p566_p9), 261120   ;;  %vm4955_vm12 = vcmask (!%p566_p9), 252928   ;;  %vm5299_vm13 = vcmask (!%p566_p9), 515072  }
  0x1d   : > { %s9305_s28 = sld [smem:[#allocation14_spill]] (!%p566_p9)  ;;  %s9280_s29 = smov (!%p566_p9), 1  }
  0x1e   : > { %s9306_s8 = sld [smem:[#allocation17_spill]] (!%p566_p9)  ;;  %s9308_s3 = smov (!%p566_p9), 1  }
  0x21   : > { %s624_s30 = scalar_select %p623_p10, %s7138_s2, 1  ;;  %v1231_v5 = vld [vmem:[%s9299_s7 + $0x8] sm:$0xff]  ;;  %v1230_v6 = vld [vmem:[%s9299_s7] sm:$0xff]  ;;  %v1232_v7 = vld [vmem:[%s9299_s7 + $0x10] sm:$0xff] }
  0x22   : > { %v1233_v8 = vld [vmem:[%s9299_s7 + $0x18] sm:$0xff]  ;;  %v1234_v9 = vld [vmem:[%s9299_s7 + $0x20] sm:$0xff]  ;;  %v1235_v10 = vld [vmem:[%s9299_s7 + $0x28] sm:$0xff]  ;;  %s9301_s20 = smov %s9300_s1 }
  0x23   : > { %s5762_s0 = sshll.u32 %s624_s30, 5  ;;  %v684_v11 = vld [vmem:[%s9300_s1] sm:$0xff]  ;;  %v1236_v12 = vld [vmem:[%s9299_s7 + $0x30] sm:$0xff]  ;;  %v1237_v13 = vld [vmem:[%s9299_s7 + $0x38] sm:$0xff]  ;;  %s9302_s30 = sld [smem:[#allocation13_spill]] }
  0x24   : > { %s627_s27 = scalar_lea.vmem %s9298_s26, %s5762_s0  ;;  %6100 = vmatprep.mubr.msk.f32.mxu0 %vm748_vm0, %v684_v11  ;;  %v1238_v14 = vld [vmem:[%s9299_s7 + $0x40] sm:$0xff]  ;;  %v1239_v15 = vld [vmem:[%s9299_s7 + $0x48] sm:$0xff]  ;;  %v1240_v16 = vld [vmem:[%s9299_s7 + $0x50] sm:$0xff]  ;;  %s9304_s0 = sld [smem:[#allocation12_spill]] }
  0x25   : > { %v646_v1 = vld [vmem:[%s627_s27 + $0x10] sm:$0xff]  ;;  %v644_v2 = vld [vmem:[%s627_s27] sm:$0xff]  ;;  %v647_v3 = vld [vmem:[%s627_s27 + $0x18] sm:$0xff]  ;;  %s9307_s1 = smov 127  }
  0x26   : > { %668 = vperm.xlu1 %6938, %v646_v1   ;;  %658 = vperm.xlu0 %6937, %v644_v2   ;;  %v645_v4 = vld [vmem:[%s627_s27 + $0x8] sm:$0xff]  ;;  %v1241_v17 = vld [vmem:[%s9299_s7 + $0x58] sm:$0xff]  ;;  %v1242_v18 = vld [vmem:[%s9299_s7 + $0x60] sm:$0xff]  ;;  %s9309_s27 = sld [smem:[#allocation18_spill]] }
  0x27   : > { %v1243_v19 = vld [vmem:[%s9299_s7 + $0x68] sm:$0xff]  ;;  %v1244_v20 = vld [vmem:[%s9299_s7 + $0x70] sm:$0xff]  ;;  %v1245_v21 = vld [vmem:[%s9299_s7 + $0x78] sm:$0xff] }
  0x28   : > { %v685_v46 = vld [vmem:[%s9301_s20 + $0x8] sm:$0xff]  ;;  %v686_v47 = vld [vmem:[%s9301_s20 + $0x10] sm:$0xff]  ;;  %v687_v48 = vld [vmem:[%s9301_s20 + $0x18] sm:$0xff] }
  0x29   : > { %v650_v24 = vld [vmem:[%s9302_s30 + $0x10] sm:$0xff]  ;;  %v651_v25 = vld [vmem:[%s9302_s30 + $0x18] sm:$0xff]  ;;  %v648_v26 = vld [vmem:[%s9302_s30] sm:$0xff] }
  0x2a   : > { %673 = vperm.xlu1 %6938, %v647_v3   ;;  %663 = vperm.xlu0 %6937, %v645_v4   ;;  %v649_v27 = vld [vmem:[%s9302_s30 + $0x8] sm:$0xff]  ;;  %v652_v36 = vld [vmem:[%s9302_s30 + $0x20] sm:$0xff]  ;;  %v654_v39 = vld [vmem:[%s9302_s30 + $0x30] sm:$0xff] }
  0x2b   : > { %v653_v34 = vld [vmem:[%s9302_s30 + $0x28] sm:$0xff]  ;;  %v655_v40 = vld [vmem:[%s9302_s30 + $0x38] sm:$0xff]  ;;  %v688_v49 = vld [vmem:[%s9301_s20 + $0x20] sm:$0xff] }
  0x2c   : > { %v689_v50 = vld [vmem:[%s9301_s20 + $0x28] sm:$0xff]  ;;  %v690_v51 = vld [vmem:[%s9301_s20 + $0x30] sm:$0xff]  ;;  %v691_v52 = vld [vmem:[%s9301_s20 + $0x38] sm:$0xff] }
  0x2d   : > { %v692_v53 = vld [vmem:[%s9301_s20 + $0x40] sm:$0xff]  ;;  %v693_v54 = vld [vmem:[%s9301_s20 + $0x48] sm:$0xff]  ;;  %v694_v55 = vld [vmem:[%s9301_s20 + $0x50] sm:$0xff] }
  0x2e   : > { %1735 = vperm.xlu1 %6938, %v1231_v5   ;;  %1730 = vperm.xlu0 %6937, %v1230_v6   ;;  %v695_v56 = vld [vmem:[%s9301_s20 + $0x58] sm:$0xff]  ;;  %v696_v57 = vld [vmem:[%s9301_s20 + $0x60] sm:$0xff]  ;;  %v697_v58 = vld [vmem:[%s9301_s20 + $0x68] sm:$0xff] }
  0x2f   : > { %v698_v59 = vld [vmem:[%s9301_s20 + $0x70] sm:$0xff]  ;;  %v699_v60 = vld [vmem:[%s9301_s20 + $0x78] sm:$0xff]  ;;  %v700_v61 = vld [vmem:[%s9301_s20 + $0x80] sm:$0xff] }
  0x30   : > { %v701_v62 = vld [vmem:[%s9301_s20 + $0x88] sm:$0xff]  ;;  %v702_v63 = vld [vmem:[%s9301_s20 + $0x90] sm:$0xff]  ;;  %v703_v0 = vld [vmem:[%s9301_s20 + $0x98] sm:$0xff] }
  0x31   : > { %v704_v1 = vld [vmem:[%s9301_s20 + $0xa0] sm:$0xff]  ;;  %v705_v2 = vld [vmem:[%s9301_s20 + $0xa8] sm:$0xff]  ;;  %v706_v3 = vld [vmem:[%s9301_s20 + $0xb0] sm:$0xff] }
  0x32   : > { %1740 = vperm.xlu0 %6937, %v1232_v7   ;;  %v707_v4 = vld [vmem:[%s9301_s20 + $0xb8] sm:$0xff]  ;;  %v708_v5 = vld [vmem:[%s9301_s20 + $0xc0] sm:$0xff]  ;;  %v709_v6 = vld [vmem:[%s9301_s20 + $0xc8] sm:$0xff] }
  0x33   : > { %v710_v7 = vld [vmem:[%s9301_s20 + $0xd0] sm:$0xff] }
  0x34   : > { %v714_v11 = vld [vmem:[%s9301_s20 + $0xf0] sm:$0xff] }
  0x36   : > { %1745 = vperm.xlu0 %6937, %v1233_v8   ;;  %v711_v8 = vld [vmem:[%s9301_s20 + $0xd8] sm:$0xff] }
  0x3a   : > { %1750 = vperm.xlu0 %6937, %v1234_v9   ;;  %v712_v9 = vld [vmem:[%s9301_s20 + $0xe0] sm:$0xff] }
  0x3e   : > { %1755 = vperm.xlu0 %6937, %v1235_v10   ;;  %v713_v10 = vld [vmem:[%s9301_s20 + $0xe8] sm:$0xff] }
  0x42   : > { %1760 = vperm.xlu0 %6937, %v1236_v12   ;;  %v715_v12 = vld [vmem:[%s9301_s20 + $0xf8] sm:$0xff] }
  0x46   : > { %1765 = vperm.xlu0 %6937, %v1237_v13   ;;  %v7006_v13 = vmov 0.0|0.0  }
  0x47   : > { %6820 = vmatprep.subr.bf16.mxu1 %v7006_v13 }
  0x4a   : > { %1770 = vperm.xlu0 %6937, %v1238_v14   ;;  %v1109_v14 = vld [vmem:[%s9303_s6 + $0x38] sm:$0xff] }
  0x4b   : > { %1325 = vmatprep.mubr.f32.mxu1 %v1109_v14  ;;  %v730_v14 = vld [vmem:[%s9304_s0 + $0x70] sm:$0xff] }
  0x4e   : > { %1775 = vperm.xlu0 %6937, %v1239_v15   ;;  %v717_v15 = vld [vmem:[%s9304_s0 + $0x8] sm:$0xff] }
  0x52   : > { %1780 = vperm.xlu0 %6937, %v1240_v16   ;;  %v716_v16 = vld [vmem:[%s9304_s0] sm:$0xff] }
  0x56   : > { %1785 = vperm.xlu0 %6937, %v1241_v17  }
  0x5a   : > { %1790 = vperm.xlu0 %6937, %v1242_v18  }
  0x5e   : > { %1795 = vperm.xlu0 %6937, %v1243_v19  }
  0x62   : > { %1800 = vperm.xlu0 %6937, %v1244_v20  }
  0x66   : > { %1805 = vperm.xlu0 %6937, %v1245_v21   ;;  %v719_v21 = vld [vmem:[%s9304_s0 + $0x18] sm:$0xff] }
  0xa5   : > { %v669_v22 = vpop.permute.xlu1 %668  ;;  %v659_v23 = vpop.permute.xlu0 %658 }
  0xa6   : > { %v678_v30 = vmul.f32 %v669_v22, %v650_v24  ;;  %v676_v32 = vmul.f32 %v659_v23, %v648_v26  ;;  %v680_v41 = vmul.f32 %v659_v23, %v652_v36  ;;  %v682_v42 = vmul.f32 %v669_v22, %v654_v39  ;;  %v718_v23 = vld [vmem:[%s9304_s0 + $0x10] sm:$0xff]  ;;  %v723_v39 = vld [vmem:[%s9304_s0 + $0x38] sm:$0xff] }
  0xa9   : > { %v674_v28 = vpop.permute.xlu1 %673  ;;  %v664_v29 = vpop.permute.xlu0 %663 }
  0xaa   : > { %v679_v31 = vmul.f32 %v674_v28, %v651_v25  ;;  %v677_v33 = vmul.f32 %v664_v29, %v649_v27  ;;  %v681_v37 = vmul.f32 %v664_v29, %v653_v34  ;;  %v683_v43 = vmul.f32 %v674_v28, %v655_v40 }
  0xac   : > { %v6608_v35 = vpack.c.bf16 %v677_v33, %v676_v32  ;;  %v6612_v38 = vpack.c.bf16 %v679_v31, %v678_v30  ;;  %v6616_v44 = vpack.c.bf16 %v681_v37, %v680_v41  ;;  %v6620_v45 = vpack.c.bf16 %v683_v43, %v682_v42  ;;  %v721_v30 = vld [vmem:[%s9304_s0 + $0x28] sm:$0xff]  ;;  %v720_v32 = vld [vmem:[%s9304_s0 + $0x20] sm:$0xff]  ;;  %v722_v41 = vld [vmem:[%s9304_s0 + $0x30] sm:$0xff] }
  0xae   : > { %6609 = vmatprep.subr.bf16.mxu0 %v6608_v35 }
  0xaf   : > { %6611 = vmatpush3.bf16.msra.mxu0 %v6608_v35 }
  0xb0   : > { %6613 = vmatprep.subr.bf16.mxu0 %v6612_v38 }
  0xb3   : > { %6615 = vmatpush3.bf16.msra.mxu0 %v6612_v38 }
  0xb4   : > { %6617 = vmatprep.subr.bf16.mxu0 %v6616_v44 }
  0xb7   : > { %6619 = vmatpush3.bf16.msra.mxu0 %v6616_v44 }
  0xb8   : > { %6621 = vmatprep.subr.bf16.mxu0 %v6620_v45 }
  0xbb   : > { %6623 = vmatpush3.bf16.msra.mxu0 %v6620_v45 }
  0xbc   : > { %6624 = vmatprep.subr.bf16.mxu0 %v7006_v13 }
  0xbe   : > { %6101 = vmatmul.mubr.msk.f32.vlgmr.msra.gmra.mrb[0].mxu0 %vm748_vm0, %v685_v46 }
  0xbf   : > { %6103 = vmatprep.mubr.msk.f32.mxu0 %vm748_vm0, %v686_v47 }
  0xc2   : > { %6104 = vmatmul.mubr.msk.f32.gmra.mrb[2].mxu0 %vm748_vm0, %v687_v48  ;;  %v725_v48 = vld [vmem:[%s9304_s0 + $0x48] sm:$0xff] }
  0xc3   : > { %6106 = vmatprep.mubr.msk.f32.mxu0 %vm748_vm0, %v688_v49 }
  0xc6   : > { %6107 = vmatmul.mubr.msk.f32.gmra.mrb[4].mxu0 %vm748_vm0, %v689_v50  ;;  %v724_v50 = vld [vmem:[%s9304_s0 + $0x40] sm:$0xff] }
  0xc7   : > { %6109 = vmatprep.mubr.msk.f32.mxu0 %vm748_vm0, %v690_v51 }
  0xca   : > { %6110 = vmatmul.mubr.msk.f32.gmra.mrb[6].mxu0 %vm748_vm0, %v691_v52 }
  0xcb   : > { %6112 = vmatprep.mubr.msk.f32.mxu0 %vm748_vm0, %v692_v53 }
  0xce   : > { %6113 = vmatmul.mubr.msk.f32.gmra.mrb[8].mxu0 %vm748_vm0, %v693_v54 }
  0xcf   : > { %6115 = vmatprep.mubr.msk.f32.mxu0 %vm748_vm0, %v694_v55 }
  0xd2   : > { %6116 = vmatmul.mubr.msk.f32.gmra.mrb[10].mxu0 %vm748_vm0, %v695_v56 }
  0xd3   : > { %6118 = vmatprep.mubr.msk.f32.mxu0 %vm748_vm0, %v696_v57  ;;  %v727_v57 = vld [vmem:[%s9304_s0 + $0x58] sm:$0xff] }
  0xd6   : > { %6119 = vmatmul.mubr.msk.f32.gmra.mrb[12].mxu0 %vm748_vm0, %v697_v58 }
  0xd7   : > { %6121 = vmatprep.mubr.msk.f32.mxu0 %vm748_vm0, %v698_v59  ;;  %v726_v59 = vld [vmem:[%s9304_s0 + $0x50] sm:$0xff] }
  0xda   : > { %6122 = vmatmul.mubr.msk.f32.gmra.mrb[14].mxu0 %vm748_vm0, %v699_v60 }
  0xdb   : > { %6124 = vmatprep.mubr.msk.f32.mxu0 %vm748_vm0, %v700_v61 }
  0xde   : > { %6125 = vmatmul.mubr.msk.f32.gmra.mrb[16].mxu0 %vm748_vm0, %v701_v62 }
  0xdf   : > { %6127 = vmatprep.mubr.msk.f32.mxu0 %vm748_vm0, %v702_v63 }
  0xe2   : > { %6128 = vmatmul.mubr.msk.f32.gmra.mrb[18].mxu0 %vm748_vm0, %v703_v0 }
  0xe3   : > { %6130 = vmatprep.mubr.msk.f32.mxu0 %vm748_vm0, %v704_v1 }
  0xe6   : > { %6131 = vmatmul.mubr.msk.f32.gmra.mrb[20].mxu0 %vm748_vm0, %v705_v2  ;;  %v729_v2 = vld [vmem:[%s9304_s0 + $0x68] sm:$0xff] }
  0xe7   : > { %6133 = vmatprep.mubr.msk.f32.mxu0 %vm748_vm0, %v706_v3 }
  0xea   : > { %6134 = vmatmul.mubr.msk.f32.gmra.mrb[22].mxu0 %vm748_vm0, %v707_v4  ;;  %v728_v4 = vld [vmem:[%s9304_s0 + $0x60] sm:$0xff] }
  0xeb   : > { %6136 = vmatprep.mubr.msk.f32.mxu0 %vm748_vm0, %v708_v5 }
  0xee   : > { %6137 = vmatmul.mubr.msk.f32.gmra.mrb[24].mxu0 %vm748_vm0, %v709_v6 }
  0xef   : > { %6139 = vmatprep.mubr.msk.f32.mxu0 %vm748_vm0, %v710_v7 }
  0xf2   : > { %6140 = vmatmul.mubr.msk.f32.gmra.mrb[26].mxu0 %vm748_vm0, %v711_v8 }
  0xf3   : > { %6142 = vmatprep.mubr.msk.f32.mxu0 %vm748_vm0, %v712_v9 }
  0xf6   : > { %6143 = vmatmul.mubr.msk.f32.gmra.mrb[28].mxu0 %vm748_vm0, %v713_v10 }
  0xf7   : > { %6145 = vmatprep.mubr.msk.f32.mxu0 %vm748_vm0, %v714_v11  ;;  %v731_v11 = vld [vmem:[%s9304_s0 + $0x78] sm:$0xff] }
  0xfa   : > { %6146 = vmatmul.mubr.msk.f32.gmra.mrb[30].mxu0 %vm748_vm0, %v715_v12 }
 0x191   : > { %v6102_v17 = vpop.f32.mrb[0].mxu0 }
 0x192   : > { %v917_v18 = vadd.f32 %v6102_v17, %v717_v15  ;;  %v911_v19 = vpop.f32.mrb[1].mxu0 }
 0x193   : > { %v912_v20 = vadd.f32 %v911_v19, %v716_v16 }
 0x194   : > { %v1071_v22 = vmax.f32 %v917_v18, 0.0 }
 0x195   : > { %v1070_v24 = vmax.f32 %v912_v20, 0.0  ;;  %v6105_v25 = vpop.f32.mrb[2].mxu0 }
 0x196   : > { %v927_v26 = vadd.f32 %v6105_v25, %v719_v21  ;;  %v921_v27 = vpop.f32.mrb[3].mxu0  ;;  %v733_v21 = vld [vmem:[%s9304_s0 + $0x88] sm:$0xff] }
 0x197   : > { %v6625_v28 = vpack.c.bf16 %v1071_v22, %v1070_v24  ;;  %v922_v29 = vadd.f32 %v921_v27, %v718_v23  ;;  %v732_v23 = vld [vmem:[%s9304_s0 + $0x80] sm:$0xff] }
 0x198   : > { %v1073_v31 = vmax.f32 %v927_v26, 0.0 }
 0x199   : > { %v1072_v33 = vmax.f32 %v922_v29, 0.0  ;;  %v6108_v34 = vpop.f32.mrb[4].mxu0  ;;  %6626 = vmatpush1.bf16.msra.mxu0 %v6625_v28  ;;  %6836 = vmatpush1.bf16.msra.mxu1 %v6625_v28 }
 0x19a   : > { %v937_v35 = vadd.f32 %v6108_v34, %v721_v30  ;;  %v931_v36 = vpop.f32.mrb[5].mxu0  ;;  %6627 = vmatprep.subr.bf16.mxu0 %v7006_v13  ;;  %6821 = vmatprep.subr.bf16.mxu1 %v7006_v13  ;;  %v735_v30 = vld [vmem:[%s9304_s0 + $0x98] sm:$0xff] }
 0x19b   : > { %v6628_v37 = vpack.c.bf16 %v1073_v31, %v1072_v33  ;;  %v932_v38 = vadd.f32 %v931_v36, %v720_v32  ;;  %v734_v32 = vld [vmem:[%s9304_s0 + $0x90] sm:$0xff] }
 0x19c   : > { %v1075_v40 = vmax.f32 %v937_v35, 0.0 }
 0x19d   : > { %v1074_v42 = vmax.f32 %v932_v38, 0.0  ;;  %v6111_v43 = vpop.f32.mrb[6].mxu0  ;;  %6629 = vmatpush1.bf16.msra.mxu0 %v6628_v37  ;;  %6837 = vmatpush1.bf16.msra.mxu1 %v6628_v37 }
 0x19e   : > { %v947_v44 = vadd.f32 %v6111_v43, %v723_v39  ;;  %v941_v45 = vpop.f32.mrb[7].mxu0  ;;  %6630 = vmatprep.subr.bf16.mxu0 %v7006_v13  ;;  %6822 = vmatprep.subr.bf16.mxu1 %v7006_v13  ;;  %v737_v39 = vld [vmem:[%s9304_s0 + $0xa8] sm:$0xff] }
 0x19f   : > { %v6631_v46 = vpack.c.bf16 %v1075_v40, %v1074_v42  ;;  %v942_v47 = vadd.f32 %v941_v45, %v722_v41  ;;  %v736_v41 = vld [vmem:[%s9304_s0 + $0xa0] sm:$0xff] }
 0x1a0   : > { %v1077_v49 = vmax.f32 %v947_v44, 0.0 }
 0x1a1   : > { %v1076_v51 = vmax.f32 %v942_v47, 0.0  ;;  %v6114_v52 = vpop.f32.mrb[8].mxu0  ;;  %6632 = vmatpush1.bf16.msra.mxu0 %v6631_v46  ;;  %6838 = vmatpush1.bf16.msra.mxu1 %v6631_v46 }
 0x1a2   : > { %v957_v53 = vadd.f32 %v6114_v52, %v725_v48  ;;  %v951_v54 = vpop.f32.mrb[9].mxu0  ;;  %6633 = vmatprep.subr.bf16.mxu0 %v7006_v13  ;;  %6823 = vmatprep.subr.bf16.mxu1 %v7006_v13  ;;  %v739_v48 = vld [vmem:[%s9304_s0 + $0xb8] sm:$0xff] }
 0x1a3   : > { %v6634_v55 = vpack.c.bf16 %v1077_v49, %v1076_v51  ;;  %v952_v56 = vadd.f32 %v951_v54, %v724_v50  ;;  %v738_v50 = vld [vmem:[%s9304_s0 + $0xb0] sm:$0xff] }
 0x1a4   : > { %v1079_v58 = vmax.f32 %v957_v53, 0.0 }
 0x1a5   : > { %v1078_v60 = vmax.f32 %v952_v56, 0.0  ;;  %v6117_v61 = vpop.f32.mrb[10].mxu0  ;;  %6635 = vmatpush1.bf16.msra.mxu0 %v6634_v55  ;;  %6839 = vmatpush1.bf16.msra.mxu1 %v6634_v55 }
 0x1a6   : > { %v967_v62 = vadd.f32 %v6117_v61, %v727_v57  ;;  %v961_v63 = vpop.f32.mrb[11].mxu0  ;;  %6636 = vmatprep.subr.bf16.mxu0 %v7006_v13  ;;  %6824 = vmatprep.subr.bf16.mxu1 %v7006_v13  ;;  %v741_v57 = vld [vmem:[%s9304_s0 + $0xc8] sm:$0xff] }
 0x1a7   : > { %v6637_v0 = vpack.c.bf16 %v1079_v58, %v1078_v60  ;;  %v962_v1 = vadd.f32 %v961_v63, %v726_v59  ;;  %v740_v59 = vld [vmem:[%s9304_s0 + $0xc0] sm:$0xff] }
 0x1a8   : > { %v1081_v3 = vmax.f32 %v967_v62, 0.0 }
 0x1a9   : > { %v1080_v5 = vmax.f32 %v962_v1, 0.0  ;;  %v6120_v6 = vpop.f32.mrb[12].mxu0  ;;  %6638 = vmatpush1.bf16.msra.mxu0 %v6637_v0  ;;  %6840 = vmatpush1.bf16.msra.mxu1 %v6637_v0 }
 0x1aa   : > { %v977_v7 = vadd.f32 %v6120_v6, %v729_v2  ;;  %v971_v8 = vpop.f32.mrb[13].mxu0  ;;  %6639 = vmatprep.subr.bf16.mxu0 %v7006_v13  ;;  %6825 = vmatprep.subr.bf16.mxu1 %v7006_v13  ;;  %v743_v2 = vld [vmem:[%s9304_s0 + $0xd8] sm:$0xff] }
 0x1ab   : > { %v6640_v9 = vpack.c.bf16 %v1081_v3, %v1080_v5  ;;  %v972_v10 = vadd.f32 %v971_v8, %v728_v4  ;;  %v742_v4 = vld [vmem:[%s9304_s0 + $0xd0] sm:$0xff] }
 0x1ac   : > { %v1083_v12 = vmax.f32 %v977_v7, 0.0 }
 0x1ad   : > { %v1082_v15 = vmax.f32 %v972_v10, 0.0  ;;  %v6123_v16 = vpop.f32.mrb[14].mxu0  ;;  %6641 = vmatpush1.bf16.msra.mxu0 %v6640_v9  ;;  %6841 = vmatpush1.bf16.msra.mxu1 %v6640_v9 }
 0x1ae   : > { %v987_v17 = vadd.f32 %v6123_v16, %v731_v11  ;;  %v981_v18 = vpop.f32.mrb[15].mxu0  ;;  %6642 = vmatprep.subr.bf16.mxu0 %v7006_v13  ;;  %6826 = vmatprep.subr.bf16.mxu1 %v7006_v13  ;;  %v745_v11 = vld [vmem:[%s9304_s0 + $0xe8] sm:$0xff] }
 0x1af   : > { %v6643_v19 = vpack.c.bf16 %v1083_v12, %v1082_v15  ;;  %v982_v20 = vadd.f32 %v981_v18, %v730_v14  ;;  %v744_v14 = vld [vmem:[%s9304_s0 + $0xe0] sm:$0xff] }
 0x1b0   : > { %v1085_v22 = vmax.f32 %v987_v17, 0.0 }
 0x1b1   : > { %v1084_v24 = vmax.f32 %v982_v20, 0.0  ;;  %v6126_v25 = vpop.f32.mrb[16].mxu0  ;;  %6644 = vmatpush1.bf16.msra.mxu0 %v6643_v19  ;;  %6842 = vmatpush1.bf16.msra.mxu1 %v6643_v19 }
 0x1b2   : > { %v997_v26 = vadd.f32 %v6126_v25, %v733_v21  ;;  %v991_v27 = vpop.f32.mrb[17].mxu0  ;;  %6645 = vmatprep.subr.bf16.mxu0 %v7006_v13  ;;  %6827 = vmatprep.subr.bf16.mxu1 %v7006_v13  ;;  %v747_v21 = vld [vmem:[%s9304_s0 + $0xf8] sm:$0xff] }
 0x1b3   : > { %v6646_v28 = vpack.c.bf16 %v1085_v22, %v1084_v24  ;;  %v992_v29 = vadd.f32 %v991_v27, %v732_v23  ;;  %v746_v23 = vld [vmem:[%s9304_s0 + $0xf0] sm:$0xff] }
 0x1b4   : > { %v1087_v31 = vmax.f32 %v997_v26, 0.0 }
 0x1b5   : > { %v1086_v33 = vmax.f32 %v992_v29, 0.0  ;;  %v6129_v34 = vpop.f32.mrb[18].mxu0  ;;  %6647 = vmatpush1.bf16.msra.mxu0 %v6646_v28  ;;  %6843 = vmatpush1.bf16.msra.mxu1 %v6646_v28 }
 0x1b6   : > { %v1007_v35 = vadd.f32 %v6129_v34, %v735_v30  ;;  %v1001_v36 = vpop.f32.mrb[19].mxu0  ;;  %6648 = vmatprep.subr.bf16.mxu0 %v7006_v13  ;;  %6828 = vmatprep.subr.bf16.mxu1 %v7006_v13  ;;  %v1111_v34 = vld [vmem:[%s9303_s6 + $0x48] sm:$0xff] }
 0x1b7   : > { %v6649_v37 = vpack.c.bf16 %v1087_v31, %v1086_v33  ;;  %v1002_v38 = vadd.f32 %v1001_v36, %v734_v32  ;;  %v1108_v33 = vld [vmem:[%s9303_s6 + $0x30] sm:$0xff] }
 0x1b8   : > { %v1089_v40 = vmax.f32 %v1007_v35, 0.0  ;;  %v1110_v35 = vld [vmem:[%s9303_s6 + $0x40] sm:$0xff]  ;;  %v1112_v36 = vld [vmem:[%s9303_s6 + $0x50] sm:$0xff] }
 0x1b9   : > { %v1088_v42 = vmax.f32 %v1002_v38, 0.0  ;;  %v6132_v43 = vpop.f32.mrb[20].mxu0  ;;  %6650 = vmatpush1.bf16.msra.mxu0 %v6649_v37  ;;  %6844 = vmatpush1.bf16.msra.mxu1 %v6649_v37  ;;  %v1115_v37 = vld [vmem:[%s9303_s6 + $0x68] sm:$0xff]  ;;  %v1114_v38 = vld [vmem:[%s9303_s6 + $0x60] sm:$0xff] }
 0x1ba   : > { %v1017_v44 = vadd.f32 %v6132_v43, %v737_v39  ;;  %v1011_v45 = vpop.f32.mrb[21].mxu0  ;;  %6651 = vmatprep.subr.bf16.mxu0 %v7006_v13  ;;  %6829 = vmatprep.subr.bf16.mxu1 %v7006_v13  ;;  %v1117_v39 = vld [vmem:[%s9303_s6 + $0x78] sm:$0xff] }
 0x1bb   : > { %v6652_v46 = vpack.c.bf16 %v1089_v40, %v1088_v42  ;;  %v1012_v47 = vadd.f32 %v1011_v45, %v736_v41  ;;  %v1116_v40 = vld [vmem:[%s9303_s6 + $0x70] sm:$0xff]  ;;  %v1119_v41 = vld [vmem:[%s9303_s6 + $0x88] sm:$0xff]  ;;  %v1118_v42 = vld [vmem:[%s9303_s6 + $0x80] sm:$0xff] }
 0x1bc   : > { %v1091_v49 = vmax.f32 %v1017_v44, 0.0  ;;  %v1121_v43 = vld [vmem:[%s9303_s6 + $0x98] sm:$0xff]  ;;  %v1120_v44 = vld [vmem:[%s9303_s6 + $0x90] sm:$0xff]  ;;  %v1123_v45 = vld [vmem:[%s9303_s6 + $0xa8] sm:$0xff] }
 0x1bd   : > { %v1090_v51 = vmax.f32 %v1012_v47, 0.0  ;;  %v6135_v52 = vpop.f32.mrb[22].mxu0  ;;  %6653 = vmatpush1.bf16.msra.mxu0 %v6652_v46  ;;  %6845 = vmatpush1.bf16.msra.mxu1 %v6652_v46  ;;  %v1122_v46 = vld [vmem:[%s9303_s6 + $0xa0] sm:$0xff]  ;;  %v1125_v47 = vld [vmem:[%s9303_s6 + $0xb8] sm:$0xff] }
 0x1be   : > { %v1027_v53 = vadd.f32 %v6135_v52, %v739_v48  ;;  %v1021_v54 = vpop.f32.mrb[23].mxu0  ;;  %6654 = vmatprep.subr.bf16.mxu0 %v7006_v13  ;;  %6830 = vmatprep.subr.bf16.mxu1 %v7006_v13  ;;  %v1124_v48 = vld [vmem:[%s9303_s6 + $0xb0] sm:$0xff] }
 0x1bf   : > { %v6655_v55 = vpack.c.bf16 %v1091_v49, %v1090_v51  ;;  %v1022_v56 = vadd.f32 %v1021_v54, %v738_v50  ;;  %v1127_v49 = vld [vmem:[%s9303_s6 + $0xc8] sm:$0xff]  ;;  %v1126_v50 = vld [vmem:[%s9303_s6 + $0xc0] sm:$0xff]  ;;  %v1129_v51 = vld [vmem:[%s9303_s6 + $0xd8] sm:$0xff] }
 0x1c0   : > { %v1093_v58 = vmax.f32 %v1027_v53, 0.0  ;;  %v1128_v52 = vld [vmem:[%s9303_s6 + $0xd0] sm:$0xff]  ;;  %v1131_v53 = vld [vmem:[%s9303_s6 + $0xe8] sm:$0xff]  ;;  %v1130_v54 = vld [vmem:[%s9303_s6 + $0xe0] sm:$0xff] }
 0x1c1   : > { %v1092_v60 = vmax.f32 %v1022_v56, 0.0  ;;  %v6138_v61 = vpop.f32.mrb[24].mxu0  ;;  %6656 = vmatpush1.bf16.msra.mxu0 %v6655_v55  ;;  %6846 = vmatpush1.bf16.msra.mxu1 %v6655_v55  ;;  %v1133_v55 = vld [vmem:[%s9303_s6 + $0xf8] sm:$0xff]  ;;  %v1132_v56 = vld [vmem:[%s9303_s6 + $0xf0] sm:$0xff] }
 0x1c2   : > { %v1037_v62 = vadd.f32 %v6138_v61, %v741_v57  ;;  %v1031_v63 = vpop.f32.mrb[25].mxu0  ;;  %6657 = vmatprep.subr.bf16.mxu0 %v7006_v13  ;;  %6831 = vmatprep.subr.bf16.mxu1 %v7006_v13  ;;  %v1135_v57 = vld [vmem:[%s9303_s6 + $0x108] sm:$0xff] }
 0x1c3   : > { %v6658_v0 = vpack.c.bf16 %v1093_v58, %v1092_v60  ;;  %v1032_v1 = vadd.f32 %v1031_v63, %v740_v59  ;;  %v1134_v58 = vld [vmem:[%s9303_s6 + $0x100] sm:$0xff]  ;;  %v1137_v59 = vld [vmem:[%s9303_s6 + $0x118] sm:$0xff]  ;;  %v1136_v60 = vld [vmem:[%s9303_s6 + $0x110] sm:$0xff] }
 0x1c4   : > { %v1095_v3 = vmax.f32 %v1037_v62, 0.0  ;;  %v1139_v61 = vld [vmem:[%s9303_s6 + $0x128] sm:$0xff]  ;;  %v1138_v62 = vld [vmem:[%s9303_s6 + $0x120] sm:$0xff]  ;;  %v1141_v63 = vld [vmem:[%s9303_s6 + $0x138] sm:$0xff] }
 0x1c5   : > { %v1094_v5 = vmax.f32 %v1032_v1, 0.0  ;;  %v6141_v6 = vpop.f32.mrb[26].mxu0  ;;  %6659 = vmatpush1.bf16.msra.mxu0 %v6658_v0  ;;  %6847 = vmatpush1.bf16.msra.mxu1 %v6658_v0  ;;  %v1140_v0 = vld [vmem:[%s9303_s6 + $0x130] sm:$0xff]  ;;  %v1143_v1 = vld [vmem:[%s9303_s6 + $0x148] sm:$0xff] }
 0x1c6   : > { %v1047_v7 = vadd.f32 %v6141_v6, %v743_v2  ;;  %v1041_v8 = vpop.f32.mrb[27].mxu0  ;;  %6660 = vmatprep.subr.bf16.mxu0 %v7006_v13  ;;  %6832 = vmatprep.subr.bf16.mxu1 %v7006_v13  ;;  %v1142_v2 = vld [vmem:[%s9303_s6 + $0x140] sm:$0xff] }
 0x1c7   : > { %v6661_v9 = vpack.c.bf16 %v1095_v3, %v1094_v5  ;;  %v1042_v10 = vadd.f32 %v1041_v8, %v742_v4  ;;  %v1145_v3 = vld [vmem:[%s9303_s6 + $0x158] sm:$0xff]  ;;  %v1144_v4 = vld [vmem:[%s9303_s6 + $0x150] sm:$0xff]  ;;  %v1147_v5 = vld [vmem:[%s9303_s6 + $0x168] sm:$0xff] }
 0x1c8   : > { %v1097_v12 = vmax.f32 %v1047_v7, 0.0  ;;  %v1146_v6 = vld [vmem:[%s9303_s6 + $0x160] sm:$0xff]  ;;  %v1149_v7 = vld [vmem:[%s9303_s6 + $0x178] sm:$0xff]  ;;  %v1148_v8 = vld [vmem:[%s9303_s6 + $0x170] sm:$0xff] }
 0x1c9   : > { %v1096_v15 = vmax.f32 %v1042_v10, 0.0  ;;  %v6144_v16 = vpop.f32.mrb[28].mxu0  ;;  %6662 = vmatpush1.bf16.msra.mxu0 %v6661_v9  ;;  %6848 = vmatpush1.bf16.msra.mxu1 %v6661_v9  ;;  %v1151_v9 = vld [vmem:[%s9303_s6 + $0x188] sm:$0xff]  ;;  %v1150_v10 = vld [vmem:[%s9303_s6 + $0x180] sm:$0xff] }
 0x1ca   : > { %v1057_v17 = vadd.f32 %v6144_v16, %v745_v11  ;;  %v1051_v18 = vpop.f32.mrb[29].mxu0  ;;  %6663 = vmatprep.subr.bf16.mxu0 %v7006_v13  ;;  %6833 = vmatprep.subr.bf16.mxu1 %v7006_v13  ;;  %v1153_v11 = vld [vmem:[%s9303_s6 + $0x198] sm:$0xff] }
 0x1cb   : > { %v6664_v19 = vpack.c.bf16 %v1097_v12, %v1096_v15  ;;  %v1052_v20 = vadd.f32 %v1051_v18, %v744_v14  ;;  %v1152_v12 = vld [vmem:[%s9303_s6 + $0x190] sm:$0xff]  ;;  %v1155_v14 = vld [vmem:[%s9303_s6 + $0x1a8] sm:$0xff]  ;;  %v1154_v15 = vld [vmem:[%s9303_s6 + $0x1a0] sm:$0xff] }
 0x1cc   : > { %v1099_v22 = vmax.f32 %v1057_v17, 0.0  ;;  %v1157_v16 = vld [vmem:[%s9303_s6 + $0x1b8] sm:$0xff]  ;;  %v1156_v17 = vld [vmem:[%s9303_s6 + $0x1b0] sm:$0xff]  ;;  %v1159_v18 = vld [vmem:[%s9303_s6 + $0x1c8] sm:$0xff] }
 0x1cd   : > { %v1098_v24 = vmax.f32 %v1052_v20, 0.0  ;;  %v6147_v25 = vpop.f32.mrb[30].mxu0  ;;  %6665 = vmatpush1.bf16.msra.mxu0 %v6664_v19  ;;  %6849 = vmatpush1.bf16.msra.mxu1 %v6664_v19  ;;  %v1158_v19 = vld [vmem:[%s9303_s6 + $0x1c0] sm:$0xff]  ;;  %v1161_v20 = vld [vmem:[%s9303_s6 + $0x1d8] sm:$0xff] }
 0x1ce   : > { %v1067_v26 = vadd.f32 %v6147_v25, %v747_v21  ;;  %v1061_v27 = vpop.f32.mrb[31].mxu0  ;;  %6666 = vmatprep.subr.bf16.mxu0 %v7006_v13  ;;  %6834 = vmatprep.subr.bf16.mxu1 %v7006_v13  ;;  %v1160_v21 = vld [vmem:[%s9303_s6 + $0x1d0] sm:$0xff] }
 0x1cf   : > { %v6667_v28 = vpack.c.bf16 %v1099_v22, %v1098_v24  ;;  %v1062_v29 = vadd.f32 %v1061_v27, %v746_v23  ;;  %v1163_v22 = vld [vmem:[%s9303_s6 + $0x1e8] sm:$0xff]  ;;  %v1162_v23 = vld [vmem:[%s9303_s6 + $0x1e0] sm:$0xff]  ;;  %v1165_v24 = vld [vmem:[%s9303_s6 + $0x1f8] sm:$0xff] }
 0x1d0   : > { %v1101_v30 = vmax.f32 %v1067_v26, 0.0  ;;  %v1164_v25 = vld [vmem:[%s9303_s6 + $0x1f0] sm:$0xff]  ;;  %v1167_v26 = vld [vmem:[%s9303_s6 + $0x208] sm:$0xff]  ;;  %v1166_v27 = vld [vmem:[%s9303_s6 + $0x200] sm:$0xff] }
 0x1d1   : > { %v1100_v31 = vmax.f32 %v1062_v29, 0.0  ;;  %6668 = vmatpush1.bf16.msra.mxu0 %v6667_v28  ;;  %6850 = vmatpush1.bf16.msra.mxu1 %v6667_v28  ;;  %v1169_v28 = vld [vmem:[%s9303_s6 + $0x218] sm:$0xff]  ;;  %v1168_v29 = vld [vmem:[%s9303_s6 + $0x210] sm:$0xff] }
 0x1d2   : > { %6669 = vmatprep.subr.bf16.mxu0 %v7006_v13  ;;  %6835 = vmatprep.subr.bf16.mxu1 %v7006_v13  ;;  %v1113_v13 = vld [vmem:[%s9303_s6 + $0x58] sm:$0xff] }
 0x1d3   : > { %v6670_v32 = vpack.c.bf16 %v1101_v30, %v1100_v31  ;;  %v1171_v30 = vld [vmem:[%s9303_s6 + $0x228] sm:$0xff]  ;;  %v1170_v31 = vld [vmem:[%s9303_s6 + $0x220] sm:$0xff] }
 0x1d5   : > { %6671 = vmatpush1.bf16.msra.mxu0 %v6670_v32  ;;  %6851 = vmatpush1.bf16.msra.mxu1 %v6670_v32  ;;  %v1173_v32 = vld [vmem:[%s9303_s6 + $0x238] sm:$0xff] }
 0x1d8   : > { %1326 = vmatmul.mubr.f32.vlgmr.msra.gmra.mrb[0].mxu1 %v1108_v33  ;;  %v1172_v33 = vld [vmem:[%s9303_s6 + $0x230] sm:$0xff] }
 0x1d9   : > { %1330 = vmatprep.mubr.f32.mxu1 %v1111_v34  ;;  %v1175_v34 = vld [vmem:[%s9303_s6 + $0x248] sm:$0xff] }
 0x1dc   : > { %1331 = vmatmul.mubr.f32.gmra.mrb[2].mxu1 %v1110_v35  ;;  %v1174_v35 = vld [vmem:[%s9303_s6 + $0x240] sm:$0xff] }
 0x1dd   : > { %1335 = vmatprep.mubr.f32.mxu1 %v1113_v13  ;;  %v1177_v13 = vld [vmem:[%s9303_s6 + $0x258] sm:$0xff] }
 0x1e0   : > { %1336 = vmatmul.mubr.f32.gmra.mrb[4].mxu1 %v1112_v36  ;;  %v1176_v36 = vld [vmem:[%s9303_s6 + $0x250] sm:$0xff] }
 0x1e1   : > { %1340 = vmatprep.mubr.f32.mxu1 %v1115_v37  ;;  %v1179_v37 = vld [vmem:[%s9303_s6 + $0x268] sm:$0xff] }
 0x1e4   : > { %1341 = vmatmul.mubr.f32.gmra.mrb[6].mxu1 %v1114_v38  ;;  %v1178_v38 = vld [vmem:[%s9303_s6 + $0x260] sm:$0xff] }
 0x1e5   : > { %1345 = vmatprep.mubr.f32.mxu1 %v1117_v39  ;;  %v1181_v39 = vld [vmem:[%s9303_s6 + $0x278] sm:$0xff] }
 0x1e8   : > { %1346 = vmatmul.mubr.f32.gmra.mrb[8].mxu1 %v1116_v40  ;;  %v1180_v40 = vld [vmem:[%s9303_s6 + $0x270] sm:$0xff] }
 0x1e9   : > { %1350 = vmatprep.mubr.f32.mxu1 %v1119_v41  ;;  %v1183_v41 = vld [vmem:[%s9303_s6 + $0x288] sm:$0xff] }
 0x1ec   : > { %1351 = vmatmul.mubr.f32.gmra.mrb[10].mxu1 %v1118_v42  ;;  %v1182_v42 = vld [vmem:[%s9303_s6 + $0x280] sm:$0xff] }
 0x1ed   : > { %1355 = vmatprep.mubr.f32.mxu1 %v1121_v43  ;;  %v1185_v43 = vld [vmem:[%s9303_s6 + $0x298] sm:$0xff] }
 0x1f0   : > { %1356 = vmatmul.mubr.f32.gmra.mrb[12].mxu1 %v1120_v44  ;;  %v1184_v44 = vld [vmem:[%s9303_s6 + $0x290] sm:$0xff] }
 0x1f1   : > { %1360 = vmatprep.mubr.f32.mxu1 %v1123_v45  ;;  %v1187_v45 = vld [vmem:[%s9303_s6 + $0x2a8] sm:$0xff] }
 0x1f4   : > { %1361 = vmatmul.mubr.f32.gmra.mrb[14].mxu1 %v1122_v46  ;;  %v1186_v46 = vld [vmem:[%s9303_s6 + $0x2a0] sm:$0xff] }
 0x1f5   : > { %1365 = vmatprep.mubr.f32.mxu1 %v1125_v47  ;;  %v1189_v47 = vld [vmem:[%s9303_s6 + $0x2b8] sm:$0xff] }
 0x1f8   : > { %1366 = vmatmul.mubr.f32.gmra.mrb[16].mxu1 %v1124_v48  ;;  %v1188_v48 = vld [vmem:[%s9303_s6 + $0x2b0] sm:$0xff] }
 0x1f9   : > { %1370 = vmatprep.mubr.f32.mxu1 %v1127_v49  ;;  %v1191_v49 = vld [vmem:[%s9303_s6 + $0x2c8] sm:$0xff] }
 0x1fc   : > { %1371 = vmatmul.mubr.f32.gmra.mrb[18].mxu1 %v1126_v50  ;;  %v1190_v50 = vld [vmem:[%s9303_s6 + $0x2c0] sm:$0xff] }
 0x1fd   : > { %1375 = vmatprep.mubr.f32.mxu1 %v1129_v51  ;;  %v1193_v51 = vld [vmem:[%s9303_s6 + $0x2d8] sm:$0xff] }
 0x200   : > { %1376 = vmatmul.mubr.f32.gmra.mrb[20].mxu1 %v1128_v52  ;;  %v1192_v52 = vld [vmem:[%s9303_s6 + $0x2d0] sm:$0xff] }
 0x201   : > { %1380 = vmatprep.mubr.f32.mxu1 %v1131_v53  ;;  %v1195_v53 = vld [vmem:[%s9303_s6 + $0x2e8] sm:$0xff] }
 0x204   : > { %1381 = vmatmul.mubr.f32.gmra.mrb[22].mxu1 %v1130_v54  ;;  %v1194_v54 = vld [vmem:[%s9303_s6 + $0x2e0] sm:$0xff] }
 0x205   : > { %1385 = vmatprep.mubr.f32.mxu1 %v1133_v55  ;;  %v1197_v55 = vld [vmem:[%s9303_s6 + $0x2f8] sm:$0xff] }
 0x208   : > { %1386 = vmatmul.mubr.f32.gmra.mrb[24].mxu1 %v1132_v56  ;;  %v1196_v56 = vld [vmem:[%s9303_s6 + $0x2f0] sm:$0xff] }
 0x209   : > { %1390 = vmatprep.mubr.f32.mxu1 %v1135_v57  ;;  %v1199_v57 = vld [vmem:[%s9303_s6 + $0x308] sm:$0xff] }
 0x20c   : > { %1391 = vmatmul.mubr.f32.gmra.mrb[26].mxu1 %v1134_v58  ;;  %v1198_v58 = vld [vmem:[%s9303_s6 + $0x300] sm:$0xff] }
 0x20d   : > { %1395 = vmatprep.mubr.f32.mxu1 %v1137_v59  ;;  %v1201_v59 = vld [vmem:[%s9303_s6 + $0x318] sm:$0xff] }
 0x210   : > { %1396 = vmatmul.mubr.f32.gmra.mrb[28].mxu1 %v1136_v60  ;;  %v1200_v60 = vld [vmem:[%s9303_s6 + $0x310] sm:$0xff] }
 0x211   : > { %1400 = vmatprep.mubr.f32.mxu1 %v1139_v61  ;;  %v1203_v61 = vld [vmem:[%s9303_s6 + $0x328] sm:$0xff] }
 0x214   : > { %1401 = vmatmul.mubr.f32.gmra.mrb[30].mxu1 %v1138_v62  ;;  %v1202_v62 = vld [vmem:[%s9303_s6 + $0x320] sm:$0xff] }
 0x215   : > { %1405 = vmatprep.mubr.f32.mxu1 %v1141_v63  ;;  %v1205_v63 = vld [vmem:[%s9303_s6 + $0x338] sm:$0xff] }
 0x218   : > { %1406 = vmatmul.mubr.f32.gmra.mrb[32].mxu1 %v1140_v0  ;;  %v1204_v0 = vld [vmem:[%s9303_s6 + $0x330] sm:$0xff] }
 0x219   : > { %1410 = vmatprep.mubr.f32.mxu1 %v1143_v1  ;;  %v1207_v1 = vld [vmem:[%s9303_s6 + $0x348] sm:$0xff] }
 0x21c   : > { %1411 = vmatmul.mubr.f32.gmra.mrb[34].mxu1 %v1142_v2  ;;  %v1206_v2 = vld [vmem:[%s9303_s6 + $0x340] sm:$0xff] }
 0x21d   : > { %1415 = vmatprep.mubr.f32.mxu1 %v1145_v3  ;;  %v1209_v3 = vld [vmem:[%s9303_s6 + $0x358] sm:$0xff] }
 0x220   : > { %1416 = vmatmul.mubr.f32.gmra.mrb[36].mxu1 %v1144_v4  ;;  %v1208_v4 = vld [vmem:[%s9303_s6 + $0x350] sm:$0xff] }
 0x221   : > { %1420 = vmatprep.mubr.f32.mxu1 %v1147_v5  ;;  %v1211_v5 = vld [vmem:[%s9303_s6 + $0x368] sm:$0xff] }
 0x224   : > { %1421 = vmatmul.mubr.f32.gmra.mrb[38].mxu1 %v1146_v6  ;;  %v1210_v6 = vld [vmem:[%s9303_s6 + $0x360] sm:$0xff] }
 0x225   : > { %1425 = vmatprep.mubr.f32.mxu1 %v1149_v7  ;;  %v1213_v7 = vld [vmem:[%s9303_s6 + $0x378] sm:$0xff] }
 0x228   : > { %1426 = vmatmul.mubr.f32.gmra.mrb[40].mxu1 %v1148_v8  ;;  %v1212_v8 = vld [vmem:[%s9303_s6 + $0x370] sm:$0xff] }
 0x229   : > { %1430 = vmatprep.mubr.f32.mxu1 %v1151_v9  ;;  %v1215_v9 = vld [vmem:[%s9303_s6 + $0x388] sm:$0xff] }
 0x22c   : > { %1431 = vmatmul.mubr.f32.gmra.mrb[42].mxu1 %v1150_v10  ;;  %v1214_v10 = vld [vmem:[%s9303_s6 + $0x380] sm:$0xff] }
 0x22d   : > { %1435 = vmatprep.mubr.f32.mxu1 %v1153_v11  ;;  %v1217_v11 = vld [vmem:[%s9303_s6 + $0x398] sm:$0xff] }
 0x230   : > { %1436 = vmatmul.mubr.f32.gmra.mrb[44].mxu1 %v1152_v12 }
 0x231   : > { %1440 = vmatprep.mubr.f32.mxu1 %v1155_v14 }
 0x234   : > { %1441 = vmatmul.mubr.f32.gmra.mrb[46].mxu1 %v1154_v15  ;;  %v1216_v15 = vld [vmem:[%s9303_s6 + $0x390] sm:$0xff] }
 0x235   : > { %1445 = vmatprep.mubr.f32.mxu1 %v1157_v16  ;;  %v1219_v16 = vld [vmem:[%s9303_s6 + $0x3a8] sm:$0xff] }
 0x238   : > { %1446 = vmatmul.mubr.f32.gmra.mrb[48].mxu1 %v1156_v17 }
 0x239   : > { %1450 = vmatprep.mubr.f32.mxu1 %v1159_v18 }
 0x23c   : > { %1451 = vmatmul.mubr.f32.gmra.mrb[50].mxu1 %v1158_v19  ;;  %v1218_v19 = vld [vmem:[%s9303_s6 + $0x3a0] sm:$0xff] }
 0x23d   : > { %1455 = vmatprep.mubr.f32.mxu1 %v1161_v20  ;;  %v1221_v20 = vld [vmem:[%s9303_s6 + $0x3b8] sm:$0xff] }
 0x240   : > { %1456 = vmatmul.mubr.f32.gmra.mrb[52].mxu1 %v1160_v21 }
 0x241   : > { %1460 = vmatprep.mubr.f32.mxu1 %v1163_v22 }
 0x244   : > { %1461 = vmatmul.mubr.f32.gmra.mrb[54].mxu1 %v1162_v23  ;;  %v1103_v23 = vld [vmem:[%s9303_s6 + $0x8] sm:$0xff] }
 0x245   : > { %1465 = vmatprep.mubr.f32.mxu1 %v1165_v24  ;;  %v1220_v24 = vld [vmem:[%s9303_s6 + $0x3b0] sm:$0xff]  ;;  %1310 = vmatprep.mubr.f32.mxu0 %v1103_v23 }
 0x248   : > { %1466 = vmatmul.mubr.f32.gmra.mrb[56].mxu1 %v1164_v25  ;;  %v1223_v25 = vld [vmem:[%s9303_s6 + $0x3c8] sm:$0xff] }
 0x249   : > { %1470 = vmatprep.mubr.f32.mxu1 %v1167_v26 }
 0x24c   : > { %1471 = vmatmul.mubr.f32.gmra.mrb[58].mxu1 %v1166_v27  ;;  %v1102_v27 = vld [vmem:[%s9303_s6] sm:$0xff] }
 0x24d   : > { %1475 = vmatprep.mubr.f32.mxu1 %v1169_v28  ;;  %1311 = vmatmul.mubr.f32.vlgmr.msra.gmra.mrb[32].mxu0 %v1102_v27 }
 0x250   : > { %1476 = vmatmul.mubr.f32.gmra.mrb[60].mxu1 %v1168_v29  ;;  %v1105_v29 = vld [vmem:[%s9303_s6 + $0x18] sm:$0xff] }
 0x251   : > { %1480 = vmatprep.mubr.f32.mxu1 %v1171_v30  ;;  %v1222_v30 = vld [vmem:[%s9303_s6 + $0x3c0] sm:$0xff]  ;;  %1315 = vmatprep.mubr.f32.mxu0 %v1105_v29 }
 0x254   : > { %1481 = vmatmul.mubr.f32.gmra.mrb[62].mxu1 %v1170_v31  ;;  %v1225_v31 = vld [vmem:[%s9303_s6 + $0x3d8] sm:$0xff] }
 0x255   : > { %1485 = vmatprep.mubr.f32.mxu1 %v1173_v32 }
 0x258   : > { %1486 = vmatmul.mubr.f32.gmra.mrb[64].mxu1 %v1172_v33  ;;  %v1104_v33 = vld [vmem:[%s9303_s6 + $0x10] sm:$0xff] }
 0x259   : > { %1490 = vmatprep.mubr.f32.mxu1 %v1175_v34  ;;  %1316 = vmatmul.mubr.f32.gmra.mrb[34].mxu0 %v1104_v33 }
 0x25c   : > { %1491 = vmatmul.mubr.f32.gmra.mrb[66].mxu1 %v1174_v35  ;;  %v1107_v35 = vld [vmem:[%s9303_s6 + $0x28] sm:$0xff] }
 0x25d   : > { %1495 = vmatprep.mubr.f32.mxu1 %v1177_v13  ;;  %v1224_v13 = vld [vmem:[%s9303_s6 + $0x3d0] sm:$0xff]  ;;  %1320 = vmatprep.mubr.f32.mxu0 %v1107_v35 }
 0x260   : > { %1496 = vmatmul.mubr.f32.gmra.mrb[68].mxu1 %v1176_v36  ;;  %v1227_v36 = vld [vmem:[%s9303_s6 + $0x3e8] sm:$0xff] }
 0x261   : > { %1500 = vmatprep.mubr.f32.mxu1 %v1179_v37 }
 0x264   : > { %1501 = vmatmul.mubr.f32.gmra.mrb[70].mxu1 %v1178_v38  ;;  %v1106_v38 = vld [vmem:[%s9303_s6 + $0x20] sm:$0xff] }
 0x265   : > { %1505 = vmatprep.mubr.f32.mxu1 %v1181_v39  ;;  %1321 = vmatmul.mubr.f32.gmra.mrb[36].mxu0 %v1106_v38 }
 0x268   : > { %1506 = vmatmul.mubr.f32.gmra.mrb[72].mxu1 %v1180_v40  ;;  %v1226_v40 = vld [vmem:[%s9303_s6 + $0x3e0] sm:$0xff] }
 0x269   : > { %1510 = vmatprep.mubr.f32.mxu1 %v1183_v41  ;;  %v1229_v41 = vld [vmem:[%s9303_s6 + $0x3f8] sm:$0xff] }
 0x26c   : > { %1511 = vmatmul.mubr.f32.gmra.mrb[74].mxu1 %v1182_v42 }
 0x26d   : > { %1515 = vmatprep.mubr.f32.mxu1 %v1185_v43 }
 0x270   : > { %1516 = vmatmul.mubr.f32.gmra.mrb[76].mxu1 %v1184_v44  ;;  %v1228_v44 = vld [vmem:[%s9303_s6 + $0x3f0] sm:$0xff]  ;;  %s620_s6 = sand.u32 1, %s6995_s22  }
 0x271   : > { %1520 = vmatprep.mubr.f32.mxu1 %v1187_v45  ;;  %s9205_s0 = scalar_lea.sflag [#allocation3], %s620_s6 }
 0x274   : > { %1521 = vmatmul.mubr.f32.gmra.mrb[78].mxu1 %v1186_v46 }
 0x275   : > { %1525 = vmatprep.mubr.f32.mxu1 %v1189_v47 }
 0x278   : > { %1526 = vmatmul.mubr.f32.gmra.mrb[80].mxu1 %v1188_v48 }
 0x279   : > { %1530 = vmatprep.mubr.f32.mxu1 %v1191_v49 }
 0x27c   : > { %1531 = vmatmul.mubr.f32.gmra.mrb[82].mxu1 %v1190_v50 }
 0x27d   : > { %1535 = vmatprep.mubr.f32.mxu1 %v1193_v51 }
 0x280   : > { %1536 = vmatmul.mubr.f32.gmra.mrb[84].mxu1 %v1192_v52 }
 0x281   : > { %1540 = vmatprep.mubr.f32.mxu1 %v1195_v53 }
 0x284   : > { %1541 = vmatmul.mubr.f32.gmra.mrb[86].mxu1 %v1194_v54 }
 0x285   : > { %1545 = vmatprep.mubr.f32.mxu1 %v1197_v55 }
 0x288   : > { %1546 = vmatmul.mubr.f32.gmra.mrb[88].mxu1 %v1196_v56 }
 0x289   : > { %1550 = vmatprep.mubr.f32.mxu1 %v1199_v57 }
 0x28c   : > { %1551 = vmatmul.mubr.f32.gmra.mrb[90].mxu1 %v1198_v58 }
 0x28d   : > { %1555 = vmatprep.mubr.f32.mxu1 %v1201_v59 }
 0x290   : > { %1556 = vmatmul.mubr.f32.gmra.mrb[92].mxu1 %v1200_v60 }
 0x291   : > { %1560 = vmatprep.mubr.f32.mxu1 %v1203_v61 }
 0x294   : > { %1561 = vmatmul.mubr.f32.gmra.mrb[94].mxu1 %v1202_v62 }
 0x295   : > { %1565 = vmatprep.mubr.f32.mxu1 %v1205_v63 }
 0x298   : > { %1566 = vmatmul.mubr.f32.gmra.mrb[96].mxu1 %v1204_v0 }
 0x299   : > { %1570 = vmatprep.mubr.f32.mxu1 %v1207_v1 }
 0x29c   : > { %1571 = vmatmul.mubr.f32.gmra.mrb[98].mxu1 %v1206_v2 }
 0x29d   : > { %1575 = vmatprep.mubr.f32.mxu1 %v1209_v3 }
 0x2a0   : > { %1576 = vmatmul.mubr.f32.gmra.mrb[100].mxu1 %v1208_v4 }
 0x2a1   : > { %1580 = vmatprep.mubr.f32.mxu1 %v1211_v5 }
 0x2a4   : > { %1581 = vmatmul.mubr.f32.gmra.mrb[102].mxu1 %v1210_v6 }
 0x2a5   : > { %1585 = vmatprep.mubr.f32.mxu1 %v1213_v7 }
 0x2a8   : > { %1586 = vmatmul.mubr.f32.gmra.mrb[104].mxu1 %v1212_v8 }
 0x2a9   : > { %1590 = vmatprep.mubr.f32.mxu1 %v1215_v9 }
 0x2ab   : > { %v7825_v12 = vpop.f32.mrb[0].mxu1 }
 0x2ac   : > { %v1329_v14 = vpop.f32.mrb[1].mxu1  ;;  %1591 = vmatmul.mubr.f32.gmra.mrb[106].mxu1 %v1214_v10 }
 0x2ad   : > { %1595 = vmatprep.mubr.f32.mxu1 %v1217_v11 }
 0x2af   : > { %v7833_v17 = vpop.f32.mrb[2].mxu1 }
 0x2b0   : > { %v1334_v18 = vpop.f32.mrb[3].mxu1  ;;  %1596 = vmatmul.mubr.f32.gmra.mrb[108].mxu1 %v1216_v15 }
 0x2b1   : > { %1600 = vmatprep.mubr.f32.mxu1 %v1219_v16 }
 0x2b3   : > { %v7841_v21 = vpop.f32.mrb[4].mxu1 }
 0x2b4   : > { %v1339_v22 = vpop.f32.mrb[5].mxu1  ;;  %1601 = vmatmul.mubr.f32.gmra.mrb[110].mxu1 %v1218_v19 }
 0x2b5   : > { %1605 = vmatprep.mubr.f32.mxu1 %v1221_v20 }
 0x2b7   : > { %v7852_v26 = vpop.f32.mrb[6].mxu1 }
 0x2b8   : > { %v1344_v28 = vpop.f32.mrb[7].mxu1  ;;  %1606 = vmatmul.mubr.f32.gmra.mrb[112].mxu1 %v1220_v24 }
 0x2b9   : > { %1610 = vmatprep.mubr.f32.mxu1 %v1223_v25 }
 0x2bb   : > { %v7866_v32 = vpop.f32.mrb[8].mxu1 }
 0x2bc   : > { %v1349_v34 = vpop.f32.mrb[9].mxu1  ;;  %1611 = vmatmul.mubr.f32.gmra.mrb[114].mxu1 %v1222_v30 }
 0x2bd   : > { %1615 = vmatprep.mubr.f32.mxu1 %v1225_v31 }
 0x2bf   : > { %v7880_v37 = vpop.f32.mrb[10].mxu1 }
 0x2c0   : > { %v1354_v39 = vpop.f32.mrb[11].mxu1  ;;  %1616 = vmatmul.mubr.f32.gmra.mrb[116].mxu1 %v1224_v13 }
 0x2c1   : > { %1620 = vmatprep.mubr.f32.mxu1 %v1227_v36 }
 0x2c3   : > { %v7891_v42 = vpop.f32.mrb[12].mxu1 }
 0x2c4   : > { %v1359_v43 = vpop.f32.mrb[13].mxu1  ;;  %1621 = vmatmul.mubr.f32.gmra.mrb[118].mxu1 %v1226_v40 }
 0x2c5   : > { %1625 = vmatprep.mubr.f32.mxu1 %v1229_v41 }
 0x2c7   : > { %v7896_v45 = vpop.f32.mrb[14].mxu1 }
 0x2c8   : > { %v1364_v46 = vpop.f32.mrb[15].mxu1  ;;  %1626 = vmatmul.mubr.f32.gmra.mrb[120].mxu1 %v1228_v44 }
 0x2cb   : > { %v7898_v47 = vpop.f32.mrb[16].mxu1 }
 0x2cc   : > { %v1369_v48 = vpop.f32.mrb[17].mxu1 }
 0x2cf   : > { %v7900_v49 = vpop.f32.mrb[18].mxu1 }
 0x2d0   : > { %v1374_v50 = vpop.f32.mrb[19].mxu1 }
 0x2d3   : > { %v7902_v51 = vpop.f32.mrb[20].mxu1 }
 0x2d4   : > { %v1379_v52 = vpop.f32.mrb[21].mxu1 }
 0x2d7   : > { %v7904_v53 = vpop.f32.mrb[22].mxu1 }
 0x2d8   : > { %v1384_v54 = vpop.f32.mrb[23].mxu1 }
 0x2db   : > { %v7906_v55 = vpop.f32.mrb[24].mxu1 }
 0x2dc   : > { %v1389_v56 = vpop.f32.mrb[25].mxu1 }
 0x2df   : > { %v7908_v57 = vpop.f32.mrb[26].mxu1 }
 0x2e0   : > { %v1394_v58 = vpop.f32.mrb[27].mxu1 }
 0x2e3   : > { %v7910_v59 = vpop.f32.mrb[28].mxu1 }
 0x2e4   : > { %v1399_v60 = vpop.f32.mrb[29].mxu1 }
 0x2e7   : > { %v7912_v61 = vpop.f32.mrb[30].mxu1 }
 0x2e8   : > { %v1404_v62 = vpop.f32.mrb[31].mxu1 }
 0x2eb   : > { %v7914_v63 = vpop.f32.mrb[32].mxu1 }
 0x2ec   : > { %v1409_v0 = vpop.f32.mrb[33].mxu1 }
 0x2ef   : > { %v7916_v1 = vpop.f32.mrb[34].mxu1 }
 0x2f0   : > { %v1414_v2 = vpop.f32.mrb[35].mxu1 }
 0x2f3   : > { %v7918_v3 = vpop.f32.mrb[36].mxu1 }
 0x2f4   : > { %v1419_v4 = vpop.f32.mrb[37].mxu1 }
 0x2f7   : > { %v7920_v5 = vpop.f32.mrb[38].mxu1 }
 0x2f8   : > { %v1424_v6 = vpop.f32.mrb[39].mxu1 }
 0x2fb   : > { %v7922_v7 = vpop.f32.mrb[40].mxu1 }
 0x2fc   : > { %v1429_v8 = vpop.f32.mrb[41].mxu1 }
 0x2ff   : > { %v7924_v9 = vpop.f32.mrb[42].mxu1 }
 0x300   : > { %v1434_v10 = vpop.f32.mrb[43].mxu1 }
 0x303   : > { %v7926_v11 = vpop.f32.mrb[44].mxu1 }
 0x304   : > { %v1439_v14 = vpop.f32.mrb[45].mxu1 }
 0x307   : > { %v7928_v15 = vpop.f32.mrb[46].mxu1 }
 0x308   : > { %v1444_v16 = vpop.f32.mrb[47].mxu1 }
 0x30b   : > { %v7930_v18 = vpop.f32.mrb[48].mxu1 }
 0x30c   : > { %v1449_v19 = vpop.f32.mrb[49].mxu1 }
 0x30f   : > { %v7932_v20 = vpop.f32.mrb[50].mxu1 }
 0x310   : > { %v1454_v22 = vpop.f32.mrb[51].mxu1 }
 0x311   : > { %v7975_v22 = vld [vmem:[%s9251_s5] sm:$0xff] }
 0x312   : > { %6148 = vmatprep.subr.msk.mxu0 %vm2017_vm1, %v7975_v22 }
 0x313   : > { %v7934_v23 = vpop.f32.mrb[52].mxu1  ;;  %6149 = vmatpush3.msk.msra.mxu0 %vm2017_vm1, %v7975_v22 }
 0x314   : > { %v1459_v24 = vpop.f32.mrb[53].mxu1 }
 0x317   : > { %v7936_v25 = vpop.f32.mrb[54].mxu1 }
 0x318   : > { %v1464_v27 = vpop.f32.mrb[55].mxu1 }
 0x31b   : > { %v7938_v28 = vpop.f32.mrb[56].mxu1 }
 0x31c   : > { %v1469_v29 = vpop.f32.mrb[57].mxu1 }
 0x31f   : > { %v7940_v30 = vpop.f32.mrb[58].mxu1 }
 0x320   : > { %v1474_v31 = vpop.f32.mrb[59].mxu1 }
 0x323   : > { %v7942_v33 = vpop.f32.mrb[60].mxu1 }
 0x324   : > { %v1479_v34 = vpop.f32.mrb[61].mxu1 }
 0x327   : > { %v7944_v35 = vpop.f32.mrb[62].mxu1 }
 0x328   : > { %v1484_v13 = vpop.f32.mrb[63].mxu1 }
 0x32b   : > { %v7946_v36 = vpop.f32.mrb[64].mxu1 }
 0x32c   : > { %v1489_v38 = vpop.f32.mrb[65].mxu1 }
 0x32f   : > { %v7948_v39 = vpop.f32.mrb[66].mxu1 }
 0x330   : > { %v1494_v40 = vpop.f32.mrb[67].mxu1 }
 0x333   : > { %v7950_v41 = vpop.f32.mrb[68].mxu1 }
 0x334   : > { %v1499_v43 = vpop.f32.mrb[69].mxu1 }
 0x337   : > { %v7952_v44 = vpop.f32.mrb[70].mxu1 }
 0x338   : > { %v1504_v46 = vpop.f32.mrb[71].mxu1 }
 0x33b   : > { %v7954_v48 = vpop.f32.mrb[72].mxu1 }
 0x33c   : > { %v1509_v50 = vpop.f32.mrb[73].mxu1 }
 0x33f   : > { %v7956_v52 = vpop.f32.mrb[74].mxu1 }
 0x340   : > { %v1514_v54 = vpop.f32.mrb[75].mxu1 }
 0x343   : > { %v7958_v56 = vpop.f32.mrb[76].mxu1 }
 0x344   : > { %v1519_v58 = vpop.f32.mrb[77].mxu1 }
 0x347   : > { %v7960_v60 = vpop.f32.mrb[78].mxu1 }
 0x348   : > { %v1524_v62 = vpop.f32.mrb[79].mxu1 }
 0x34b   : > { %v7962_v0 = vpop.f32.mrb[80].mxu1 }
 0x34c   : > { %v1529_v2 = vpop.f32.mrb[81].mxu1 }
 0x34f   : > { %v7964_v4 = vpop.f32.mrb[82].mxu1 }
 0x350   : > { %v1534_v6 = vpop.f32.mrb[83].mxu1 }
 0x353   : > { %v7966_v8 = vpop.f32.mrb[84].mxu1 }
 0x354   : > { %v1539_v10 = vpop.f32.mrb[85].mxu1 }
 0x357   : > { %v7968_v14 = vpop.f32.mrb[86].mxu1 }
 0x358   : > { %v1544_v16 = vpop.f32.mrb[87].mxu1 }
 0x35b   : > { %v7970_v19 = vpop.f32.mrb[88].mxu1 }
 0x35c   : > { %v1549_v24 = vpop.f32.mrb[89].mxu1 }
 0x35f   : > { %v1552_v27 = vpop.f32.mrb[90].mxu1 }
 0x360   : > { %1840 = vrot.lane.b32.xlu1 %v1552_v27, %s9278_s23  ;;  %v1554_v29 = vpop.f32.mrb[91].mxu1 }
 0x363   : > { %v1557_v31 = vpop.f32.mrb[92].mxu1 }
 0x364   : > { %1842 = vrot.lane.b32.xlu1 %v1557_v31, %s9278_s23  ;;  %v1559_v34 = vpop.f32.mrb[93].mxu1 }
 0x367   : > { %v1562_v13 = vpop.f32.mrb[94].mxu1 }
 0x368   : > { %1844 = vrot.lane.b32.xlu1 %v1562_v13, %s9278_s23  ;;  %v1564_v38 = vpop.f32.mrb[95].mxu1 }
 0x36b   : > { %v1567_v40 = vpop.f32.mrb[96].mxu1 }
 0x36c   : > { %1846 = vrot.lane.b32.xlu1 %v1567_v40, %s9278_s23  ;;  %v1569_v43 = vpop.f32.mrb[97].mxu1  ;;  %v7993_v40 = vpop.f32.mrb[32].mxu0 }
 0x36d   : > { %v1314_v43 = vpop.f32.mrb[33].mxu0 }
 0x36f   : > { %v1572_v46 = vpop.f32.mrb[98].mxu1 }
 0x370   : > { %1848 = vrot.lane.b32.xlu1 %v1572_v46, %s9278_s23  ;;  %v1574_v50 = vpop.f32.mrb[99].mxu1 }
 0x373   : > { %v1577_v54 = vpop.f32.mrb[100].mxu1 }
 0x374   : > { %1850 = vrot.lane.b32.xlu1 %v1577_v54, %s9278_s23  ;;  %v1579_v58 = vpop.f32.mrb[101].mxu1  ;;  %v7996_v54 = vpop.f32.mrb[34].mxu0 }
 0x375   : > { %v1319_v58 = vpop.f32.mrb[35].mxu0 }
 0x377   : > { %v1582_v62 = vpop.f32.mrb[102].mxu1 }
 0x378   : > { %1852 = vrot.lane.b32.xlu1 %v1582_v62, %s9278_s23  ;;  %v1584_v2 = vpop.f32.mrb[103].mxu1 }
 0x379   : > { %v7998_v2 = vpop.f32.mrb[36].mxu0 }
 0x37b   : > { %v1587_v6 = vpop.f32.mrb[104].mxu1 }
 0x37c   : > { %1854 = vrot.lane.b32.xlu1 %v1587_v6, %s9278_s23  ;;  %v1589_v10 = vpop.f32.mrb[105].mxu1 }
 0x37d   : > { %v1324_v10 = vpop.f32.mrb[37].mxu0 }
 0x37f   : > { %v1592_v16 = vpop.f32.mrb[106].mxu1 }
 0x380   : > { %1856 = vrot.lane.b32.xlu1 %v1592_v16, %s9278_s23  ;;  %v1594_v24 = vpop.f32.mrb[107].mxu1 }
 0x381   : > { %v8004_v24 = vld [vmem:[%s9305_s28] sm:$0xff] }
 0x382   : > { %6174 = vmatprep.subr.msk.mxu0 %vm2017_vm1, %v8004_v24 }
 0x383   : > { %v1597_v27 = vpop.f32.mrb[108].mxu1 }
 0x384   : > { %1858 = vrot.lane.b32.xlu1 %v1597_v27, %s9278_s23  ;;  %v1599_v29 = vpop.f32.mrb[109].mxu1 }
 0x387   : > { %v1602_v31 = vpop.f32.mrb[110].mxu1 }
 0x388   : > { %1860 = vrot.lane.b32.xlu1 %v1602_v31, %s9278_s23  ;;  %v1604_v34 = vpop.f32.mrb[111].mxu1 }
 0x38b   : > { %v1607_v13 = vpop.f32.mrb[112].mxu1 }
 0x38c   : > { %1862 = vrot.lane.b32.xlu1 %v1607_v13, %s9278_s23  ;;  %v1609_v38 = vpop.f32.mrb[113].mxu1 }
 0x38f   : > { %v1612_v46 = vpop.f32.mrb[114].mxu1 }
 0x390   : > { %1864 = vrot.lane.b32.xlu1 %v1612_v46, %s9278_s23  ;;  %v1614_v50 = vpop.f32.mrb[115].mxu1 }
 0x393   : > { %v1617_v62 = vpop.f32.mrb[116].mxu1 }
 0x394   : > { %1866 = vrot.lane.b32.xlu1 %v1617_v62, %s9278_s23  ;;  %v1619_v6 = vpop.f32.mrb[117].mxu1 }
 0x397   : > { %v1622_v16 = vpop.f32.mrb[118].mxu1 }
 0x398   : > { %1868 = vrot.lane.b32.xlu0 %v1622_v16, %s9278_s23  ;;  %v1624_v27 = vpop.f32.mrb[119].mxu1 }
 0x39b   : > { %v1627_v29 = vpop.f32.mrb[120].mxu1 }
 0x39c   : > { %1647 = vrot.lane.b32.xlu0 %v7908_v57, %s9280_s29  ;;  %1870 = vrot.lane.b32.xlu1 %v1627_v29, %s9278_s23  ;;  %v1629_v31 = vpop.f32.mrb[121].mxu1  ;;  %v8032_v57 = vpop.permute.xlu0 %1730 }
 0x3a0   : > { %1651 = vrot.lane.b32.xlu0 %v7912_v61, %s9280_s29  ;;  %1649 = vrot.lane.b32.xlu1 %v7910_v59, %s9280_s29  ;;  %v8038_v59 = vpop.permute.xlu0 %1740  ;;  %v2394_v61 = vld [vmem:[%s9255_s9] sm:$0xff] }
 0x3a4   : > { %1655 = vrot.lane.b32.xlu0 %v7916_v1, %s9280_s29  ;;  %1653 = vrot.lane.b32.xlu1 %v7914_v63, %s9280_s29  ;;  %v2396_v63 = vld [vmem:[%s9255_s9 + $0x10] sm:$0xff]  ;;  %v2395_v1 = vld [vmem:[%s9255_s9 + $0x8] sm:$0xff] }
 0x3a8   : > { %1659 = vrot.lane.b32.xlu0 %v7920_v5, %s9280_s29  ;;  %1657 = vrot.lane.b32.xlu1 %v7918_v3, %s9280_s29  ;;  %v8055_v3 = vpop.permute.xlu0 %1745  ;;  %v2397_v5 = vld [vmem:[%s9255_s9 + $0x18] sm:$0xff] }
 0x3ac   : > { %1663 = vrot.lane.b32.xlu0 %v7924_v9, %s9280_s29  ;;  %1661 = vrot.lane.b32.xlu1 %v7922_v7, %s9280_s29  ;;  %v8060_v7 = vpop.permute.xlu0 %1750  ;;  %v2398_v9 = vld [vmem:[%s9255_s9 + $0x20] sm:$0xff] }
 0x3b0   : > { %1667 = vrot.lane.b32.xlu0 %v7928_v15, %s9280_s29  ;;  %1665 = vrot.lane.b32.xlu1 %v7926_v11, %s9280_s29  ;;  %v2399_v11 = vld [vmem:[%s9255_s9 + $0x28] sm:$0xff]  ;;  %v8068_v15 = vpop.permute.xlu0 %1755 }
 0x3b4   : > { %1671 = vrot.lane.b32.xlu0 %v7932_v20, %s9280_s29  ;;  %1669 = vrot.lane.b32.xlu1 %v7930_v18, %s9280_s29  ;;  %v2400_v18 = vld [vmem:[%s9255_s9 + $0x30] sm:$0xff]  ;;  %v8073_v20 = vpop.permute.xlu1 %1735 }
 0x3b8   : > { %1675 = vrot.lane.b32.xlu0 %v7936_v25, %s9280_s29  ;;  %1673 = vrot.lane.b32.xlu1 %v7934_v23, %s9280_s29  ;;  %v8075_v23 = vpop.permute.xlu0 %1760  ;;  %v2401_v25 = vld [vmem:[%s9255_s9 + $0x38] sm:$0xff] }
 0x3bc   : > { %2677 = vperm.xlu0 %6937, %v2394_v61   ;;  %1677 = vrot.lane.b32.xlu1 %v7938_v28, %s9280_s29  ;;  %v8082_v38 = vpop.permute.xlu0 %1765  ;;  %s5550_s29 = sshll.u32 %s620_s6, 4 }
 0x3bd   : > { %s622_s7 = scalar_lea.vmem [#allocation2], %s5550_s29 }
 0x3c0   : > { %2687 = vperm.xlu0 %6937, %v2396_v63   ;;  %2682 = vperm.xlu1 %6938, %v2395_v1  }
 0x3c4   : > { %2692 = vperm.xlu0 %6937, %v2397_v5  }
 0x3c8   : > { %2697 = vperm.xlu0 %6937, %v2398_v9  }
 0x3cc   : > { %2702 = vperm.xlu0 %6937, %v2399_v11  }
 0x3d0   : > { %2707 = vperm.xlu0 %6937, %v2400_v18  }
 0x3d2   : > { %v1841_v28 = vpop.permute.xlu1 %1840 }
 0x3d3   : > { %v1888_v34 = vsel %vm1695_vm2, %v1841_v28, 0.0 }
 0x3d4   : > { %v1904_v13 = vadd.f32 %v1888_v34, %v7940_v30  ;;  %2712 = vperm.xlu0 %6937, %v2401_v25   ;;  %v8090_v30 = vpop.permute.xlu0 %1770 }
 0x3d6   : > { %v1920_v43 = vadd.f32 %v1904_v13, %v8032_v57  ;;  %v1843_v46 = vpop.permute.xlu1 %1842 }
 0x3d7   : > { %v1889_v50 = vsel %vm1695_vm2, %v1843_v46, 0.0 }
 0x3d8   : > { %v1952_v58 = vmax.f32 %v1920_v43, 0.0  ;;  %v1905_v62 = vadd.f32 %v1889_v50, %v7942_v33  ;;  %v8099_v5 = vpop.permute.xlu0 %1775 }
 0x3da   : > { %v1921_v6 = vadd.f32 %v1905_v62, %v8073_v20  ;;  %v1845_v10 = vpop.permute.xlu1 %1844  ;;  %6150 = vmatprep.mubr.msk.f32.mxu0 %vm1968_vm3, %v1952_v58 }
 0x3db   : > { %v1890_v16 = vsel %vm1695_vm2, %v1845_v10, 0.0 }
 0x3dc   : > { %v1953_v27 = vmax.f32 %v1921_v6, 0.0  ;;  %v1906_v29 = vadd.f32 %v1890_v16, %v7944_v35 }
 0x3de   : > { %v1922_v31 = vadd.f32 %v1906_v29, %v8038_v59  ;;  %v1847_v61 = vpop.permute.xlu1 %1846  ;;  %6151 = vmatmul.mubr.msk.f32.vlgmr.msra.gmra.mrb[38].mxu0 %vm1968_vm3, %v1953_v27 }
 0x3df   : > { %v1891_v63 = vsel %vm1695_vm2, %v1847_v61, 0.0  ;;  %6175 = vmatpush3.msk.msra.mxu0 %vm2017_vm1, %v8004_v24 }
 0x3e0   : > { %v1954_v33 = vmax.f32 %v1922_v31, 0.0  ;;  %v1907_v1 = vadd.f32 %v1891_v63, %v7946_v36  ;;  %v8108_v36 = vpop.permute.xlu0 %1780 }
 0x3e2   : > { %v1923_v9 = vadd.f32 %v1907_v1, %v8055_v3  ;;  %v1849_v11 = vpop.permute.xlu1 %1848  ;;  %6153 = vmatprep.mubr.msk.f32.mxu0 %vm1968_vm3, %v1954_v33 }
 0x3e3   : > { %v1892_v35 = vsel %vm1695_vm2, %v1849_v11, 0.0 }
 0x3e4   : > { %v1955_v18 = vmax.f32 %v1923_v9, 0.0  ;;  %v1908_v25 = vadd.f32 %v1892_v35, %v7948_v39  ;;  %v8115_v10 = vpop.permute.xlu0 %1785 }
 0x3e6   : > { %v1924_v28 = vadd.f32 %v1908_v25, %v8060_v7  ;;  %v1851_v34 = vpop.permute.xlu1 %1850  ;;  %6154 = vmatmul.mubr.msk.f32.gmra.mrb[40].mxu0 %vm1968_vm3, %v1955_v18 }
 0x3e7   : > { %v1893_v13 = vsel %vm1695_vm2, %v1851_v34, 0.0 }
 0x3e8   : > { %v1956_v43 = vmax.f32 %v1924_v28, 0.0  ;;  %v1909_v46 = vadd.f32 %v1893_v13, %v7950_v41 }
 0x3ea   : > { %v1925_v50 = vadd.f32 %v1909_v46, %v8068_v15  ;;  %v1853_v58 = vpop.permute.xlu1 %1852  ;;  %6156 = vmatprep.mubr.msk.f32.mxu0 %vm1968_vm3, %v1956_v43 }
 0x3eb   : > { %v1894_v62 = vsel %vm1695_vm2, %v1853_v58, 0.0 }
 0x3ec   : > { %v1957_v39 = vmax.f32 %v1925_v50, 0.0  ;;  %v1910_v6 = vadd.f32 %v1894_v62, %v7952_v44  ;;  %v8124_v44 = vpop.permute.xlu0 %1790 }
 0x3ee   : > { %v1926_v16 = vadd.f32 %v1910_v6, %v8075_v23  ;;  %v1855_v27 = vpop.permute.xlu1 %1854  ;;  %6157 = vmatmul.mubr.msk.f32.gmra.mrb[42].mxu0 %vm1968_vm3, %v1957_v39 }
 0x3ef   : > { %v1895_v29 = vsel %vm1695_vm2, %v1855_v27, 0.0 }
 0x3f0   : > { %v1958_v41 = vmax.f32 %v1926_v16, 0.0  ;;  %v1911_v31 = vadd.f32 %v1895_v29, %v7954_v48  ;;  %v8131_v28 = vpop.permute.xlu0 %1795 }
 0x3f2   : > { %v1927_v61 = vadd.f32 %v1911_v31, %v8082_v38  ;;  %v1857_v63 = vpop.permute.xlu1 %1856  ;;  %6159 = vmatprep.mubr.msk.f32.mxu0 %vm1968_vm3, %v1958_v41 }
 0x3f3   : > { %v1896_v33 = vsel %vm1695_vm2, %v1857_v63, 0.0 }
 0x3f4   : > { %v1959_v1 = vmax.f32 %v1927_v61, 0.0  ;;  %v1912_v9 = vadd.f32 %v1896_v33, %v7956_v52 }
 0x3f6   : > { %v1928_v11 = vadd.f32 %v1912_v9, %v8090_v30  ;;  %v1859_v35 = vpop.permute.xlu1 %1858  ;;  %6160 = vmatmul.mubr.msk.f32.gmra.mrb[44].mxu0 %vm1968_vm3, %v1959_v1 }
 0x3f7   : > { %v1897_v18 = vsel %vm1695_vm2, %v1859_v35, 0.0 }
 0x3f8   : > { %v1960_v48 = vmax.f32 %v1928_v11, 0.0  ;;  %v1913_v25 = vadd.f32 %v1897_v18, %v7958_v56  ;;  %v8140_v56 = vpop.permute.xlu0 %1800 }
 0x3fa   : > { %v1929_v34 = vadd.f32 %v1913_v25, %v8099_v5  ;;  %v1861_v13 = vpop.permute.xlu1 %1860  ;;  %6162 = vmatprep.mubr.msk.f32.mxu0 %vm1968_vm3, %v1960_v48 }
 0x3fb   : > { %v1898_v43 = vsel %vm1695_vm2, %v1861_v13, 0.0 }
 0x3fc   : > { %v1961_v52 = vmax.f32 %v1929_v34, 0.0  ;;  %v1914_v46 = vadd.f32 %v1898_v43, %v7960_v60  ;;  %v8147_v31 = vpop.permute.xlu0 %1805 }
 0x3fe   : > { %v1930_v50 = vadd.f32 %v1914_v46, %v8108_v36  ;;  %v1863_v58 = vpop.permute.xlu1 %1862  ;;  %6163 = vmatmul.mubr.msk.f32.gmra.mrb[46].mxu0 %vm1968_vm3, %v1961_v52 }
 0x3ff   : > { %v1899_v62 = vsel %vm1695_vm2, %v1863_v58, 0.0 }
 0x400   : > { %v1962_v39 = vmax.f32 %v1930_v50, 0.0  ;;  %v1915_v6 = vadd.f32 %v1899_v62, %v7962_v0 }
 0x402   : > { %v1931_v16 = vadd.f32 %v1915_v6, %v8115_v10  ;;  %v1865_v27 = vpop.permute.xlu1 %1864  ;;  %6165 = vmatprep.mubr.msk.f32.mxu0 %vm1968_vm3, %v1962_v39 }
 0x403   : > { %v1900_v29 = vsel %vm1695_vm2, %v1865_v27, 0.0 }
 0x404   : > { %v1963_v60 = vmax.f32 %v1931_v16, 0.0  ;;  %v1916_v41 = vadd.f32 %v1900_v29, %v7964_v4 }
 0x406   : > { %v1932_v61 = vadd.f32 %v1916_v41, %v8124_v44  ;;  %v1867_v63 = vpop.permute.xlu1 %1866  ;;  %6166 = vmatmul.mubr.msk.f32.gmra.mrb[48].mxu0 %vm1968_vm3, %v1963_v60 }
 0x407   : > { %v1901_v33 = vsel %vm1695_vm2, %v1867_v63, 0.0 }
 0x408   : > { %v1964_v0 = vmax.f32 %v1932_v61, 0.0  ;;  %v1917_v1 = vadd.f32 %v1901_v33, %v7966_v8 }
 0x40a   : > { %v1933_v9 = vadd.f32 %v1917_v1, %v8131_v28  ;;  %6168 = vmatprep.mubr.msk.f32.mxu0 %vm1968_vm3, %v1964_v0  ;;  %v1869_v11 = vpop.permute.xlu0 %1868 }
 0x40b   : > { %v1902_v35 = vsel %vm1695_vm2, %v1869_v11, 0.0 }
 0x40c   : > { %v1965_v4 = vmax.f32 %v1933_v9, 0.0  ;;  %v1918_v18 = vadd.f32 %v1902_v35, %v7968_v14 }
 0x40e   : > { %v1934_v48 = vadd.f32 %v1918_v18, %v8140_v56  ;;  %v1871_v25 = vpop.permute.xlu1 %1870  ;;  %6169 = vmatmul.mubr.msk.f32.gmra.mrb[50].mxu0 %vm1968_vm3, %v1965_v4  ;;  %v1648_v34 = vpop.permute.xlu0 %1647 }
 0x40f   : > { %v1903_v13 = vsel %vm1695_vm2, %v1871_v25, 0.0  ;;  %v1696_v8 = vsel %vm1695_vm2, 0.0, %v1648_v34 }
 0x410   : > { %v1966_v43 = vmax.f32 %v1934_v48, 0.0  ;;  %v1919_v52 = vadd.f32 %v1903_v13, %v7970_v19  ;;  %v1712_v46 = vadd.f32 %v1696_v8, %v7993_v40 }
 0x412   : > { %v1935_v50 = vadd.f32 %v1919_v52, %v8147_v31  ;;  %v1808_v58 = vadd.f32 %v8032_v57, %v1712_v46  ;;  %v1650_v14 = vpop.permute.xlu1 %1649  ;;  %6171 = vmatprep.mubr.msk.f32.mxu0 %vm1968_vm3, %v1966_v43  ;;  %v1652_v62 = vpop.permute.xlu0 %1651 }
 0x413   : > { %v1697_v39 = vsel %vm1695_vm2, 0.0, %v1650_v14  ;;  %v1698_v6 = vsel %vm1695_vm2, 0.0, %v1652_v62 }
 0x414   : > { %v1967_v16 = vmax.f32 %v1935_v50, 0.0  ;;  %v1936_v27 = vmax.f32 %v1808_v58, 0.0  ;;  %v1713_v29 = vadd.f32 %v1697_v39, %v7996_v54  ;;  %v1714_v19 = vadd.f32 %v1698_v6, %v7998_v2 }
 0x416   : > { %v1809_v40 = vadd.f32 %v8073_v20, %v1713_v29  ;;  %v1810_v60 = vadd.f32 %v8038_v59, %v1714_v19  ;;  %v1654_v41 = vpop.permute.xlu1 %1653  ;;  %6172 = vmatmul.mubr.msk.f32.gmra.mrb[52].mxu0 %vm1968_vm3, %v1967_v16  ;;  %v1656_v57 = vpop.permute.xlu0 %1655 }
 0x417   : > { %v1699_v61 = vsel %vm1695_vm2, 0.0, %v1654_v41  ;;  %v1700_v63 = vsel %vm1695_vm2, 0.0, %v1656_v57  ;;  %6176 = vmatprep.mubr.msk.f32.mxu0 %vm1968_vm3, %v1936_v27 }
 0x418   : > { %v1937_v33 = vmax.f32 %v1809_v40, 0.0  ;;  %v1938_v0 = vmax.f32 %v1810_v60, 0.0  ;;  %v1715_v54 = vadd.f32 %v1699_v61, %v7825_v12  ;;  %v1716_v2 = vadd.f32 %v1700_v63, %v7833_v17 }
 0x41a   : > { %v1811_v20 = vadd.f32 %v8055_v3, %v1715_v54  ;;  %v1812_v59 = vadd.f32 %v8060_v7, %v1716_v2  ;;  %v1658_v1 = vpop.permute.xlu1 %1657  ;;  %6177 = vmatmul.mubr.msk.f32.vlgmr.msra.gmra.mrb[38].mxu0 %vm1968_vm3, %v1937_v33  ;;  %v1660_v9 = vpop.permute.xlu0 %1659 }
 0x41b   : > { %v1701_v11 = vsel %vm1695_vm2, 0.0, %v1658_v1  ;;  %v1702_v35 = vsel %vm1695_vm2, 0.0, %v1660_v9  ;;  %6179 = vmatprep.mubr.msk.f32.mxu0 %vm1968_vm3, %v1938_v0 }
 0x41c   : > { %v1939_v4 = vmax.f32 %v1811_v20, 0.0  ;;  %v1940_v18 = vmax.f32 %v1812_v59, 0.0  ;;  %v1717_v12 = vadd.f32 %v1701_v11, %v7841_v21  ;;  %v1718_v17 = vadd.f32 %v1702_v35, %v7852_v26 }
 0x41e   : > { %v1813_v3 = vadd.f32 %v8068_v15, %v1717_v12  ;;  %v1814_v7 = vadd.f32 %v8075_v23, %v1718_v17  ;;  %v1662_v48 = vpop.permute.xlu1 %1661  ;;  %6180 = vmatmul.mubr.msk.f32.gmra.mrb[40].mxu0 %vm1968_vm3, %v1939_v4  ;;  %v1664_v25 = vpop.permute.xlu0 %1663 }
 0x41f   : > { %v1703_v34 = vsel %vm1695_vm2, 0.0, %v1662_v48  ;;  %v1704_v13 = vsel %vm1695_vm2, 0.0, %v1664_v25  ;;  %6182 = vmatprep.mubr.msk.f32.mxu0 %vm1968_vm3, %v1940_v18 }
 0x420   : > { %v1941_v8 = vmax.f32 %v1813_v3, 0.0  ;;  %v1942_v43 = vmax.f32 %v1814_v7, 0.0  ;;  %v1719_v21 = vadd.f32 %v1703_v34, %v7866_v32  ;;  %v1720_v26 = vadd.f32 %v1704_v13, %v7880_v37 }
 0x422   : > { %v1815_v15 = vadd.f32 %v8082_v38, %v1719_v21  ;;  %v1816_v23 = vadd.f32 %v8090_v30, %v1720_v26  ;;  %v1666_v52 = vpop.permute.xlu1 %1665  ;;  %6183 = vmatmul.mubr.msk.f32.gmra.mrb[42].mxu0 %vm1968_vm3, %v1941_v8  ;;  %v1668_v46 = vpop.permute.xlu0 %1667 }
 0x423   : > { %v1705_v50 = vsel %vm1695_vm2, 0.0, %v1666_v52  ;;  %v1706_v58 = vsel %vm1695_vm2, 0.0, %v1668_v46  ;;  %6185 = vmatprep.mubr.msk.f32.mxu0 %vm1968_vm3, %v1942_v43  ;;  %v2363_v52 = vld [vmem:[%s9306_s8 + $0x8] sm:$0xff]  ;;  %v2364_v46 = vld [vmem:[%s9306_s8 + $0x10] sm:$0xff] }
 0x424   : > { %v1943_v14 = vmax.f32 %v1815_v15, 0.0  ;;  %v1944_v62 = vmax.f32 %v1816_v23, 0.0  ;;  %v1721_v32 = vadd.f32 %v1705_v50, %v7891_v42  ;;  %v1722_v37 = vadd.f32 %v1706_v58, %v7896_v45  ;;  %v2365_v50 = vld [vmem:[%s9306_s8 + $0x18] sm:$0xff]  ;;  %v2366_v58 = vld [vmem:[%s9306_s8 + $0x20] sm:$0xff] }
 0x426   : > { %v1817_v38 = vadd.f32 %v8099_v5, %v1721_v32  ;;  %v1818_v30 = vadd.f32 %v8108_v36, %v1722_v37  ;;  %v1670_v39 = vpop.permute.xlu1 %1669  ;;  %6186 = vmatmul.mubr.msk.f32.gmra.mrb[44].mxu0 %vm1968_vm3, %v1943_v14  ;;  %v1672_v6 = vpop.permute.xlu0 %1671  ;;  %v2367_v14 = vld [vmem:[%s9306_s8 + $0x28] sm:$0xff]  ;;  %v2369_v32 = vld [vmem:[%s9306_s8 + $0x38] sm:$0xff]  ;;  %v2370_v37 = vld [vmem:[%s9306_s8 + $0x40] sm:$0xff] }
 0x427   : > { %v1707_v16 = vsel %vm1695_vm2, 0.0, %v1670_v39  ;;  %v1708_v27 = vsel %vm1695_vm2, 0.0, %v1672_v6  ;;  %6188 = vmatprep.mubr.msk.f32.mxu0 %vm1968_vm3, %v1944_v62  ;;  %v2368_v62 = vld [vmem:[%s9306_s8 + $0x30] sm:$0xff]  ;;  %v2373_v39 = vld [vmem:[%s9306_s8 + $0x58] sm:$0xff]  ;;  %v2374_v6 = vld [vmem:[%s9306_s8 + $0x60] sm:$0xff] }
 0x428   : > { %v1945_v29 = vmax.f32 %v1817_v38, 0.0  ;;  %v1946_v19 = vmax.f32 %v1818_v30, 0.0  ;;  %v1723_v42 = vadd.f32 %v1707_v16, %v7898_v47  ;;  %v1724_v45 = vadd.f32 %v1708_v27, %v7900_v49  ;;  %v2371_v38 = vld [vmem:[%s9306_s8 + $0x48] sm:$0xff]  ;;  %v2372_v30 = vld [vmem:[%s9306_s8 + $0x50] sm:$0xff] }
 0x429   : > { %v2375_v16 = vld [vmem:[%s9306_s8 + $0x68] sm:$0xff]  ;;  %v2376_v27 = vld [vmem:[%s9306_s8 + $0x70] sm:$0xff] }
 0x42a   : > { %v1819_v5 = vadd.f32 %v8115_v10, %v1723_v42  ;;  %v1820_v36 = vadd.f32 %v8124_v44, %v1724_v45  ;;  %v1674_v40 = vpop.permute.xlu1 %1673  ;;  %6189 = vmatmul.mubr.msk.f32.gmra.mrb[46].mxu0 %vm1968_vm3, %v1945_v29  ;;  %v1676_v60 = vpop.permute.xlu0 %1675  ;;  %v2377_v29 = vld [vmem:[%s9306_s8 + $0x78] sm:$0xff]  ;;  %v2379_v42 = vld [vmem:[%s9306_s8 + $0x88] sm:$0xff]  ;;  %v2380_v45 = vld [vmem:[%s9306_s8 + $0x90] sm:$0xff] }
 0x42b   : > { %v1709_v41 = vsel %vm1695_vm2, 0.0, %v1674_v40  ;;  %v1710_v57 = vsel %vm1695_vm2, 0.0, %v1676_v60  ;;  %6191 = vmatprep.mubr.msk.f32.mxu0 %vm1968_vm3, %v1946_v19  ;;  %v2378_v19 = vld [vmem:[%s9306_s8 + $0x80] sm:$0xff]  ;;  %v2383_v40 = vld [vmem:[%s9306_s8 + $0xa8] sm:$0xff]  ;;  %v2384_v60 = vld [vmem:[%s9306_s8 + $0xb0] sm:$0xff] }
 0x42c   : > { %v1947_v61 = vmax.f32 %v1819_v5, 0.0  ;;  %v1948_v63 = vmax.f32 %v1820_v36, 0.0  ;;  %v1725_v47 = vadd.f32 %v1709_v41, %v7902_v51  ;;  %v1726_v49 = vadd.f32 %v1710_v57, %v7904_v53  ;;  %v2362_v53 = vld [vmem:[%s9306_s8] sm:$0xff]  ;;  %v2381_v5 = vld [vmem:[%s9306_s8 + $0x98] sm:$0xff] }
 0x42d   : > { %v2382_v36 = vld [vmem:[%s9306_s8 + $0xa0] sm:$0xff]  ;;  %v2385_v41 = vld [vmem:[%s9306_s8 + $0xb8] sm:$0xff] }
 0x42e   : > { %v1821_v10 = vadd.f32 %v8131_v28, %v1725_v47  ;;  %v1822_v44 = vadd.f32 %v8140_v56, %v1726_v49  ;;  %v1678_v33 = vpop.permute.xlu1 %1677  ;;  %6192 = vmatmul.mubr.msk.f32.gmra.mrb[48].mxu0 %vm1968_vm3, %v1947_v61  ;;  %v2386_v57 = vld [vmem:[%s9306_s8 + $0xc0] sm:$0xff]  ;;  %v2387_v61 = vld [vmem:[%s9306_s8 + $0xc8] sm:$0xff]  ;;  %v2389_v47 = vld [vmem:[%s9306_s8 + $0xd8] sm:$0xff] }
 0x42f   : > { %v1711_v0 = vsel %vm1695_vm2, 0.0, %v1678_v33  ;;  %6194 = vmatprep.mubr.msk.f32.mxu0 %vm1968_vm3, %v1948_v63  ;;  %v2388_v63 = vld [vmem:[%s9306_s8 + $0xd0] sm:$0xff]  ;;  %v2390_v49 = vld [vmem:[%s9306_s8 + $0xe0] sm:$0xff]  ;;  %v2393_v33 = vld [vmem:[%s9306_s8 + $0xf8] sm:$0xff] }
 0x430   : > { %v1949_v54 = vmax.f32 %v1821_v10, 0.0  ;;  %v1950_v2 = vmax.f32 %v1822_v44, 0.0  ;;  %v1727_v20 = vadd.f32 %v1711_v0, %v7906_v55  ;;  %v2391_v10 = vld [vmem:[%s9306_s8 + $0xe8] sm:$0xff]  ;;  %v2392_v44 = vld [vmem:[%s9306_s8 + $0xf0] sm:$0xff]  ;;  %s5484_s8 = sshll.u32 %s622_s7, 4  ;;  %s9198_s8 = int_to_ptr.vmem [resolvable:$true] %s5484_s8 }
 0x431   : > { %s6941_s21 = scalar_lea.vmem %s9198_s8, 256 }
 0x432   : > { %v1823_v59 = vadd.f32 %v8147_v31, %v1727_v20  ;;  %6195 = vmatmul.mubr.msk.f32.gmra.mrb[50].mxu0 %vm1968_vm3, %v1949_v54  ;;  %p6942_p11 = scmp.ne.s32.totalorder %s9198_s8, %s6941_s21 }
 0x433   : > { %6197 = vmatprep.mubr.msk.f32.mxu0 %vm1968_vm3, %v1950_v2 }
 0x434   : > { %v1951_v51 = vmax.f32 %v1823_v59, 0.0  ;;  %p6943_p12 = pnand %p6942_p11, %p7155_p5 }
 0x436   : > { %6198 = vmatmul.mubr.msk.f32.gmra.mrb[52].mxu0 %vm1968_vm3, %v1951_v51  ;;  %p6944_p13 = pneg %p6943_p12 }
 0x437   : > { %6232 = vmatprep.mubr.f32.mxu0 %v2362_v53 }
 0x4ed   : > { %v6178_v28 = vpop.f32.mrb[38].mxu0 }
 0x4ee   : > { %v2283_v56 = vpop.f32.mrb[39].mxu0 }
 0x4ef   : > { %v6672_v1 = vpack.c.bf16 %v6178_v28, %v2283_v56 }
 0x4f1   : > { %v6181_v9 = vpop.f32.mrb[40].mxu0  ;;  %6673 = vmatprep.subr.bf16.mxu0 %v6672_v1 }
 0x4f2   : > { %v2293_v55 = vpop.f32.mrb[41].mxu0  ;;  %6675 = vmatpush3.bf16.msra.mxu0 %v6672_v1 }
 0x4f3   : > { %v6676_v31 = vpack.c.bf16 %v6181_v9, %v2293_v55 }
 0x4f5   : > { %v6184_v11 = vpop.f32.mrb[42].mxu0  ;;  %6677 = vmatprep.subr.bf16.mxu0 %v6676_v31 }
 0x4f6   : > { %v2303_v35 = vpop.f32.mrb[43].mxu0  ;;  %6679 = vmatpush3.bf16.msra.mxu0 %v6676_v31 }
 0x4f7   : > { %v6680_v4 = vpack.c.bf16 %v6184_v11, %v2303_v35 }
 0x4f9   : > { %v6187_v18 = vpop.f32.mrb[44].mxu0  ;;  %6681 = vmatprep.subr.bf16.mxu0 %v6680_v4 }
 0x4fa   : > { %v2313_v12 = vpop.f32.mrb[45].mxu0  ;;  %6683 = vmatpush3.bf16.msra.mxu0 %v6680_v4 }
 0x4fb   : > { %v6684_v17 = vpack.c.bf16 %v6187_v18, %v2313_v12 }
 0x4fd   : > { %v6190_v3 = vpop.f32.mrb[46].mxu0  ;;  %6685 = vmatprep.subr.bf16.mxu0 %v6684_v17 }
 0x4fe   : > { %v2323_v7 = vpop.f32.mrb[47].mxu0  ;;  %6687 = vmatpush3.bf16.msra.mxu0 %v6684_v17 }
 0x4ff   : > { %v6688_v48 = vpack.c.bf16 %v6190_v3, %v2323_v7 }
 0x501   : > { %v6193_v25 = vpop.f32.mrb[48].mxu0  ;;  %6689 = vmatprep.subr.bf16.mxu0 %v6688_v48 }
 0x502   : > { %v2333_v34 = vpop.f32.mrb[49].mxu0  ;;  %6691 = vmatpush3.bf16.msra.mxu0 %v6688_v48 }
 0x503   : > { %v6692_v13 = vpack.c.bf16 %v6193_v25, %v2333_v34 }
 0x505   : > { %v6196_v8 = vpop.f32.mrb[50].mxu0  ;;  %6693 = vmatprep.subr.bf16.mxu0 %v6692_v13 }
 0x506   : > { %v2343_v43 = vpop.f32.mrb[51].mxu0  ;;  %6695 = vmatpush3.bf16.msra.mxu0 %v6692_v13 }
 0x507   : > { %v6696_v21 = vpack.c.bf16 %v6196_v8, %v2343_v43 }
 0x509   : > { %v6199_v26 = vpop.f32.mrb[52].mxu0  ;;  %6697 = vmatprep.subr.bf16.mxu0 %v6696_v21 }
 0x50a   : > { %v2353_v15 = vpop.f32.mrb[53].mxu0  ;;  %6699 = vmatpush3.bf16.msra.mxu0 %v6696_v21 }
 0x50b   : > { %v6700_v23 = vpack.c.bf16 %v6199_v26, %v2353_v15 }
 0x50d   : > { %6701 = vmatprep.subr.bf16.mxu0 %v6700_v23 }
 0x50e   : > { %6703 = vmatpush3.bf16.msra.mxu0 %v6700_v23 }
 0x50f   : > { %6280 = vmatprep.subr.msk.mxu0 %vm2821_vm4, %v7975_v22 }
 0x511   : > { %6233 = vmatmul.mubr.f32.vlgmr.msra.gmra.mrb[54].mxu0 %v2363_v52 }
 0x512   : > { %6235 = vmatprep.mubr.f32.mxu0 %v2364_v46  ;;  %6281 = vmatpush3.msk.msra.mxu0 %vm2821_vm4, %v7975_v22  ;;  %v3092_v22 = vld [vmem:[%s9257_s11] sm:$0xff]  ;;  %v3094_v46 = vld [vmem:[%s9257_s11 + $0x10] sm:$0xff] }
 0x513   : > { %6294 = vmatprep.subr.msk.mxu0 %vm2821_vm4, %v8004_v24 }
 0x515   : > { %6236 = vmatmul.mubr.f32.gmra.mrb[56].mxu0 %v2365_v50  ;;  %v3095_v50 = vld [vmem:[%s9257_s11 + $0x18] sm:$0xff] }
 0x516   : > { %6238 = vmatprep.mubr.f32.mxu0 %v2366_v58  ;;  %v3093_v58 = vld [vmem:[%s9257_s11 + $0x8] sm:$0xff] }
 0x519   : > { %6239 = vmatmul.mubr.f32.gmra.mrb[58].mxu0 %v2367_v14  ;;  %v3096_v14 = vld [vmem:[%s9257_s11 + $0x20] sm:$0xff] }
 0x51a   : > { %6241 = vmatprep.mubr.f32.mxu0 %v2368_v62  ;;  %v3097_v62 = vld [vmem:[%s9257_s11 + $0x28] sm:$0xff] }
 0x51d   : > { %6242 = vmatmul.mubr.f32.gmra.mrb[60].mxu0 %v2369_v32  ;;  %v3098_v32 = vld [vmem:[%s9257_s11 + $0x30] sm:$0xff] }
 0x51e   : > { %6244 = vmatprep.mubr.f32.mxu0 %v2370_v37  ;;  %v3099_v37 = vld [vmem:[%s9257_s11 + $0x38] sm:$0xff] }
 0x521   : > { %6245 = vmatmul.mubr.f32.gmra.mrb[62].mxu0 %v2371_v38  ;;  %v2678_v38 = vpop.permute.xlu0 %2677 }
 0x522   : > { %6247 = vmatprep.mubr.f32.mxu0 %v2372_v30 }
 0x525   : > { %6248 = vmatmul.mubr.f32.gmra.mrb[64].mxu0 %v2373_v39  ;;  %v8400_v30 = vpop.permute.xlu0 %2687 }
 0x526   : > { %6250 = vmatprep.mubr.f32.mxu0 %v2374_v6 }
 0x529   : > { %6251 = vmatmul.mubr.f32.gmra.mrb[66].mxu0 %v2375_v16  ;;  %v8402_v39 = vpop.permute.xlu0 %2692  ;;  %v8406_v16 = vpop.permute.xlu1 %2682 }
 0x52a   : > { %6253 = vmatprep.mubr.f32.mxu0 %v2376_v27 }
 0x52d   : > { %6254 = vmatmul.mubr.f32.gmra.mrb[68].mxu0 %v2377_v29  ;;  %v8404_v6 = vpop.permute.xlu0 %2697 }
 0x52e   : > { %6256 = vmatprep.mubr.f32.mxu0 %v2378_v19 }
 0x531   : > { %6257 = vmatmul.mubr.f32.gmra.mrb[70].mxu0 %v2379_v42  ;;  %v8408_v27 = vpop.permute.xlu0 %2702 }
 0x532   : > { %6259 = vmatprep.mubr.f32.mxu0 %v2380_v45 }
 0x535   : > { %6260 = vmatmul.mubr.f32.gmra.mrb[72].mxu0 %v2381_v5  ;;  %v8411_v42 = vpop.permute.xlu0 %2707 }
 0x536   : > { %6262 = vmatprep.mubr.f32.mxu0 %v2382_v36 }
 0x539   : > { %6263 = vmatmul.mubr.f32.gmra.mrb[74].mxu0 %v2383_v40 }
 0x53a   : > { %6265 = vmatprep.mubr.f32.mxu0 %v2384_v60 }
 0x53d   : > { %6266 = vmatmul.mubr.f32.gmra.mrb[76].mxu0 %v2385_v41 }
 0x53e   : > { %6268 = vmatprep.mubr.f32.mxu0 %v2386_v57 }
 0x541   : > { %6269 = vmatmul.mubr.f32.gmra.mrb[78].mxu0 %v2387_v61  ;;  %v8416_v61 = vpop.permute.xlu0 %2712 }
 0x542   : > { %6271 = vmatprep.mubr.f32.mxu0 %v2388_v63 }
 0x545   : > { %6272 = vmatmul.mubr.f32.gmra.mrb[80].mxu0 %v2389_v47 }
 0x546   : > { %6274 = vmatprep.mubr.f32.mxu0 %v2390_v49 }
 0x549   : > { %6275 = vmatmul.mubr.f32.gmra.mrb[82].mxu0 %v2391_v10 }
 0x54a   : > { %6277 = vmatprep.mubr.f32.mxu0 %v2392_v44 }
 0x54d   : > { %6278 = vmatmul.mubr.f32.gmra.mrb[84].mxu0 %v2393_v33 }
 0x5e4   : > { %v8324_v0 = vpop.f32.mrb[54].mxu0 }
 0x5e5   : > { %v8326_v54 = vpop.f32.mrb[55].mxu0 }
 0x5e8   : > { %v8328_v2 = vpop.f32.mrb[56].mxu0 }
 0x5e9   : > { %v8330_v20 = vpop.f32.mrb[57].mxu0 }
 0x5ec   : > { %v8332_v59 = vpop.f32.mrb[58].mxu0 }
 0x5ed   : > { %v8334_v51 = vpop.f32.mrb[59].mxu0 }
 0x5f0   : > { %v8336_v53 = vpop.f32.mrb[60].mxu0 }
 0x5f1   : > { %v8338_v28 = vpop.f32.mrb[61].mxu0 }
 0x5f4   : > { %v6246_v56 = vpop.f32.mrb[62].mxu0 }
 0x5f5   : > { %v2508_v1 = vpop.f32.mrb[63].mxu0 }
 0x5f8   : > { %v6249_v9 = vpop.f32.mrb[64].mxu0 }
 0x5f9   : > { %v2518_v55 = vpop.f32.mrb[65].mxu0 }
 0x5fc   : > { %v6252_v31 = vpop.f32.mrb[66].mxu0 }
 0x5fd   : > { %v2528_v11 = vpop.f32.mrb[67].mxu0 }
 0x600   : > { %v6255_v35 = vpop.f32.mrb[68].mxu0 }
 0x601   : > { %v2538_v4 = vpop.f32.mrb[69].mxu0 }
 0x604   : > { %v6258_v18 = vpop.f32.mrb[70].mxu0 }
 0x605   : > { %v8340_v12 = vpop.f32.mrb[71].mxu0 }
 0x608   : > { %v8342_v17 = vpop.f32.mrb[72].mxu0 }
 0x609   : > { %v8344_v3 = vpop.f32.mrb[73].mxu0 }
 0x60c   : > { %v8346_v7 = vpop.f32.mrb[74].mxu0 }
 0x60d   : > { %v8348_v48 = vpop.f32.mrb[75].mxu0 }
 0x610   : > { %v8350_v25 = vpop.f32.mrb[76].mxu0 }
 0x611   : > { %v8352_v34 = vpop.f32.mrb[77].mxu0 }
 0x614   : > { %v6270_v13 = vpop.f32.mrb[78].mxu0 }
 0x615   : > { %2733 = vrot.lane.b32.xlu1 %v6270_v13, %s9307_s1  ;;  %v2588_v8 = vpop.f32.mrb[79].mxu0 }
 0x618   : > { %v6273_v43 = vpop.f32.mrb[80].mxu0 }
 0x619   : > { %2731 = vrot.lane.b32.xlu1 %v2588_v8, %s9307_s1  ;;  %v2598_v21 = vpop.f32.mrb[81].mxu0 }
 0x61c   : > { %v6276_v26 = vpop.f32.mrb[82].mxu0 }
 0x61d   : > { %2737 = vrot.lane.b32.xlu1 %v6273_v43, %s9307_s1  ;;  %v2608_v15 = vpop.f32.mrb[83].mxu0 }
 0x620   : > { %v6279_v23 = vpop.f32.mrb[84].mxu0 }
 0x621   : > { %2735 = vrot.lane.b32.xlu1 %v2598_v21, %s9307_s1  ;;  %v2618_v52 = vpop.f32.mrb[85].mxu0 }
 0x622   : > { %2743 = vrot.lane.b32.xlu0 %v2618_v52, %s9307_s1 }
 0x625   : > { %2739 = vrot.lane.b32.xlu1 %v2608_v15, %s9307_s1 }
 0x626   : > { %2635 = vrot.lane.b32.xlu0 %v2508_v1, %s9308_s3 }
 0x629   : > { %2741 = vrot.lane.b32.xlu1 %v6276_v26, %s9307_s1 }
 0x62a   : > { %2639 = vrot.lane.b32.xlu0 %v2518_v55, %s9308_s3 }
 0x62d   : > { %2745 = vrot.lane.b32.xlu1 %v6279_v23, %s9307_s1 }
 0x62e   : > { %2643 = vrot.lane.b32.xlu0 %v2528_v11, %s9308_s3 }
 0x631   : > { %2637 = vrot.lane.b32.xlu1 %v6246_v56, %s9308_s3 }
 0x632   : > { %2647 = vrot.lane.b32.xlu0 %v2538_v4, %s9308_s3 }
 0x635   : > { %2641 = vrot.lane.b32.xlu1 %v6249_v9, %s9308_s3 }
 0x636   : > { %3471 = vperm.xlu0 %6937, %v3092_v22  }
 0x639   : > { %2645 = vrot.lane.b32.xlu1 %v6252_v31, %s9308_s3 }
 0x63a   : > { %3481 = vperm.xlu0 %6937, %v3094_v46  }
 0x63d   : > { %2649 = vrot.lane.b32.xlu1 %v6255_v35, %s9308_s3 }
 0x63e   : > { %3486 = vperm.xlu0 %6937, %v3095_v50  }
 0x641   : > { %3476 = vperm.xlu1 %6938, %v3093_v58  }
 0x642   : > { %3491 = vperm.xlu0 %6937, %v3096_v14  }
 0x646   : > { %3496 = vperm.xlu0 %6937, %v3097_v62  }
 0x64a   : > { %3501 = vperm.xlu0 %6937, %v3098_v32  }
 0x64e   : > { %3506 = vperm.xlu0 %6937, %v3099_v37  }
 0x687   : > { %v2734_v29 = vpop.permute.xlu1 %2733 }
 0x688   : > { %v2757_v19 = vsel %vm2755_vm5, %v2734_v29, 0.0 }
 0x689   : > { %v2765_v45 = vadd.f32 %v6258_v18, %v2757_v19 }
 0x68b   : > { %v2732_v5 = vpop.permute.xlu1 %2731  ;;  %v2773_v60 = vadd.f32 %v2765_v45, %v8406_v16 }
 0x68c   : > { %v2756_v36 = vsel %vm2755_vm5, %v2732_v5, 0.0 }
 0x68d   : > { %v2764_v40 = vadd.f32 %v2756_v36, %v8340_v12  ;;  %v2789_v49 = vmax.f32 %v2773_v60, 0.0 }
 0x68f   : > { %v2772_v41 = vadd.f32 %v2764_v40, %v2678_v38  ;;  %v2738_v57 = vpop.permute.xlu1 %2737 }
 0x690   : > { %v2759_v63 = vsel %vm2755_vm5, %v2738_v57, 0.0 }
 0x691   : > { %v2788_v47 = vmax.f32 %v2772_v41, 0.0  ;;  %v2767_v10 = vadd.f32 %v8342_v17, %v2759_v63 }
 0x693   : > { %v2736_v44 = vpop.permute.xlu1 %2735  ;;  %6282 = vmatprep.mubr.msk.f32.mxu0 %vm2796_vm6, %v2788_v47  ;;  %v2775_v9 = vadd.f32 %v2767_v10, %v8402_v39 }
 0x694   : > { %v2758_v33 = vsel %vm2755_vm5, %v2736_v44, 0.0  ;;  %6283 = vmatmul.mubr.msk.f32.vlgmr.msra.gmra.mrb[86].mxu0 %vm2796_vm6, %v2789_v49  ;;  %v2744_v56 = vpop.permute.xlu0 %2743 }
 0x695   : > { %v2766_v1 = vadd.f32 %v2758_v33, %v8344_v3  ;;  %6295 = vmatpush3.msk.msra.mxu0 %vm2821_vm4, %v8004_v24  ;;  %v2762_v31 = vsel %vm2755_vm5, %v2744_v56, 0.0  ;;  %v2791_v17 = vmax.f32 %v2775_v9, 0.0 }
 0x696   : > { %v2770_v13 = vadd.f32 %v2762_v31, %v8352_v34 }
 0x697   : > { %v2774_v55 = vadd.f32 %v2766_v1, %v8400_v30  ;;  %v2740_v11 = vpop.permute.xlu1 %2739 }
 0x698   : > { %v2760_v35 = vsel %vm2755_vm5, %v2740_v11, 0.0  ;;  %v2636_v4 = vpop.permute.xlu0 %2635 }
 0x699   : > { %v2790_v18 = vmax.f32 %v2774_v55, 0.0  ;;  %v2768_v12 = vadd.f32 %v2760_v35, %v8348_v48  ;;  %v2659_v24 = vsel %vm1695_vm2, 0.0, %v2636_v4  ;;  %v2778_v48 = vadd.f32 %v2770_v13, %v8411_v42 }
 0x69a   : > { %v2667_v23 = vadd.f32 %v2659_v24, %v8326_v54 }
 0x69b   : > { %v2776_v3 = vadd.f32 %v2768_v12, %v8404_v6  ;;  %v2742_v8 = vpop.permute.xlu1 %2741  ;;  %6285 = vmatprep.mubr.msk.f32.mxu0 %vm2796_vm6, %v2790_v18  ;;  %v2794_v62 = vmax.f32 %v2778_v48, 0.0  ;;  %v8505_v48 = vld [vmem:[%s9305_s28] sm:$0xff] }
 0x69c   : > { %v2761_v43 = vsel %vm2755_vm5, %v2742_v8, 0.0  ;;  %6286 = vmatmul.mubr.msk.f32.gmra.mrb[88].mxu0 %vm2796_vm6, %v2791_v17  ;;  %v2640_v21 = vpop.permute.xlu0 %2639  ;;  %v2715_v32 = vadd.f32 %v2678_v38, %v2667_v23  ;;  %v3061_v8 = vld [vmem:[%s9256_s10 + $0x8] sm:$0xff] }
 0x69d   : > { %v2792_v26 = vmax.f32 %v2776_v3, 0.0  ;;  %v2769_v15 = vadd.f32 %v8346_v7, %v2761_v43  ;;  %v2661_v52 = vsel %vm1695_vm2, 0.0, %v2640_v21  ;;  %v3062_v43 = vld [vmem:[%s9256_s10 + $0x10] sm:$0xff]  ;;  %v8490_v21 = vld [vmem:[%s9251_s5] sm:$0xff]  ;;  %v3065_v23 = vld [vmem:[%s9256_s10 + $0x28] sm:$0xff] }
 0x69e   : > { %v2669_v7 = vadd.f32 %v2661_v52, %v8330_v20  ;;  %v3067_v52 = vld [vmem:[%s9256_s10 + $0x38] sm:$0xff] }
 0x69f   : > { %v2777_v34 = vadd.f32 %v2769_v15, %v8408_v27  ;;  %v2746_v22 = vpop.permute.xlu1 %2745  ;;  %6288 = vmatprep.mubr.msk.f32.mxu0 %vm2796_vm6, %v2792_v26  ;;  %v3063_v26 = vld [vmem:[%s9256_s10 + $0x18] sm:$0xff]  ;;  %v3064_v15 = vld [vmem:[%s9256_s10 + $0x20] sm:$0xff] }
 0x6a0   : > { %v2763_v46 = vsel %vm2755_vm5, %v2746_v22, 0.0  ;;  %v2644_v50 = vpop.permute.xlu0 %2643  ;;  %v2717_v38 = vadd.f32 %v8400_v30, %v2669_v7  ;;  %v3068_v22 = vld [vmem:[%s9256_s10 + $0x40] sm:$0xff]  ;;  %v3075_v7 = vld [vmem:[%s9256_s10 + $0x78] sm:$0xff] }
 0x6a1   : > { %v2793_v58 = vmax.f32 %v2777_v34, 0.0  ;;  %v2771_v14 = vadd.f32 %v8350_v25, %v2763_v46  ;;  %v2663_v54 = vsel %vm1695_vm2, 0.0, %v2644_v50  ;;  %v2780_v25 = vmax.f32 %v2715_v32, 0.0  ;;  %v3066_v34 = vld [vmem:[%s9256_s10 + $0x30] sm:$0xff]  ;;  %v3069_v46 = vld [vmem:[%s9256_s10 + $0x48] sm:$0xff] }
 0x6a2   : > { %v2671_v20 = vadd.f32 %v2663_v54, %v8334_v51  ;;  %v3070_v50 = vld [vmem:[%s9256_s10 + $0x50] sm:$0xff]  ;;  %v3077_v54 = vld [vmem:[%s9256_s10 + $0x88] sm:$0xff] }
 0x6a3   : > { %v2779_v37 = vadd.f32 %v2771_v14, %v8416_v61  ;;  %v2638_v29 = vpop.permute.xlu1 %2637  ;;  %6289 = vmatmul.mubr.msk.f32.gmra.mrb[90].mxu0 %vm2796_vm6, %v2793_v58  ;;  %v3071_v58 = vld [vmem:[%s9256_s10 + $0x58] sm:$0xff]  ;;  %v3072_v14 = vld [vmem:[%s9256_s10 + $0x60] sm:$0xff]  ;;  %v3074_v32 = vld [vmem:[%s9256_s10 + $0x70] sm:$0xff] }
 0x6a4   : > { %v2660_v19 = vsel %vm1695_vm2, 0.0, %v2638_v29  ;;  %6291 = vmatprep.mubr.msk.f32.mxu0 %vm2796_vm6, %v2794_v62  ;;  %v2648_v45 = vpop.permute.xlu0 %2647  ;;  %v2719_v49 = vadd.f32 %v8404_v6, %v2671_v20  ;;  %v3073_v62 = vld [vmem:[%s9256_s10 + $0x68] sm:$0xff]  ;;  %v3078_v29 = vld [vmem:[%s9256_s10 + $0x90] sm:$0xff] }
 0x6a5   : > { %v2795_v5 = vmax.f32 %v2779_v37, 0.0  ;;  %v2668_v36 = vadd.f32 %v8324_v0, %v2660_v19  ;;  %v2665_v60 = vsel %vm1695_vm2, 0.0, %v2648_v45  ;;  %v2782_v0 = vmax.f32 %v2717_v38, 0.0  ;;  %v3076_v37 = vld [vmem:[%s9256_s10 + $0x80] sm:$0xff]  ;;  %v3079_v19 = vld [vmem:[%s9256_s10 + $0x98] sm:$0xff]  ;;  %v3085_v20 = vld [vmem:[%s9256_s10 + $0xc8] sm:$0xff] }
 0x6a6   : > { %v2673_v30 = vadd.f32 %v2665_v60, %v8338_v28  ;;  %v2784_v56 = vmax.f32 %v2719_v49, 0.0  ;;  %v3080_v45 = vld [vmem:[%s9256_s10 + $0xa0] sm:$0xff]  ;;  %v3087_v60 = vld [vmem:[%s9256_s10 + $0xd8] sm:$0xff] }
 0x6a7   : > { %v2716_v40 = vadd.f32 %v8406_v16, %v2668_v36  ;;  %v2642_v41 = vpop.permute.xlu1 %2641  ;;  %6292 = vmatmul.mubr.msk.f32.gmra.mrb[92].mxu0 %vm2796_vm6, %v2795_v5  ;;  %v3081_v5 = vld [vmem:[%s9256_s10 + $0xa8] sm:$0xff]  ;;  %v3082_v36 = vld [vmem:[%s9256_s10 + $0xb0] sm:$0xff]  ;;  %v3084_v38 = vld [vmem:[%s9256_s10 + $0xc0] sm:$0xff] }
 0x6a8   : > { %v2662_v57 = vsel %vm1695_vm2, 0.0, %v2642_v41  ;;  %6296 = vmatprep.mubr.msk.f32.mxu0 %vm2796_vm6, %v2780_v25  ;;  %v3083_v25 = vld [vmem:[%s9256_s10 + $0xb8] sm:$0xff]  ;;  %v3088_v41 = vld [vmem:[%s9256_s10 + $0xe0] sm:$0xff] }
 0x6a9   : > { %v2781_v63 = vmax.f32 %v2716_v40, 0.0  ;;  %v2670_v47 = vadd.f32 %v8328_v2, %v2662_v57  ;;  %v2721_v2 = vadd.f32 %v8411_v42, %v2673_v30  ;;  %v3086_v40 = vld [vmem:[%s9256_s10 + $0xd0] sm:$0xff]  ;;  %v3089_v57 = vld [vmem:[%s9256_s10 + $0xe8] sm:$0xff] }
 0x6ab   : > { %v2718_v51 = vadd.f32 %v8402_v39, %v2670_v47  ;;  %v2646_v16 = vpop.permute.xlu1 %2645  ;;  %6297 = vmatmul.mubr.msk.f32.vlgmr.msra.gmra.mrb[86].mxu0 %vm2796_vm6, %v2781_v63  ;;  %v2786_v55 = vmax.f32 %v2721_v2, 0.0  ;;  %v3090_v63 = vld [vmem:[%s9256_s10 + $0xf0] sm:$0xff]  ;;  %v3091_v47 = vld [vmem:[%s9256_s10 + $0xf8] sm:$0xff] }
 0x6ac   : > { %v2664_v10 = vsel %vm1695_vm2, 0.0, %v2646_v16  ;;  %6299 = vmatprep.mubr.msk.f32.mxu0 %vm2796_vm6, %v2782_v0 }
 0x6ad   : > { %v2783_v44 = vmax.f32 %v2718_v51, 0.0  ;;  %v2672_v33 = vadd.f32 %v8332_v59, %v2664_v10 }
 0x6af   : > { %v2720_v1 = vadd.f32 %v8408_v27, %v2672_v33  ;;  %v2650_v6 = vpop.permute.xlu1 %2649  ;;  %6300 = vmatmul.mubr.msk.f32.gmra.mrb[88].mxu0 %vm2796_vm6, %v2783_v44  ;;  %v3060_v27 = vld [vmem:[%s9256_s10] sm:$0xff] }
 0x6b0   : > { %v2666_v28 = vsel %vm1695_vm2, 0.0, %v2650_v6  ;;  %6302 = vmatprep.mubr.msk.f32.mxu0 %vm2796_vm6, %v2784_v56 }
 0x6b1   : > { %v2785_v39 = vmax.f32 %v2720_v1, 0.0  ;;  %v2674_v9 = vadd.f32 %v8336_v53, %v2666_v28 }
 0x6b3   : > { %v2722_v31 = vadd.f32 %v8416_v61, %v2674_v9  ;;  %6303 = vmatmul.mubr.msk.f32.gmra.mrb[90].mxu0 %vm2796_vm6, %v2785_v39 }
 0x6b4   : > { %6305 = vmatprep.mubr.msk.f32.mxu0 %vm2796_vm6, %v2786_v55 }
 0x6b5   : > { %v2787_v59 = vmax.f32 %v2722_v31, 0.0 }
 0x6b7   : > { %6306 = vmatmul.mubr.msk.f32.gmra.mrb[92].mxu0 %vm2796_vm6, %v2787_v59 }
 0x6b8   : > { %6324 = vmatprep.mubr.msk.f32.mxu0 %vm748_vm0, %v3060_v27 }
 0x77e   : > { %v6298_v42 = vpop.f32.mrb[86].mxu0 }
 0x77f   : > { %v3021_v11 = vpop.f32.mrb[87].mxu0 }
 0x780   : > { %v6704_v35 = vpack.c.bf16 %v6298_v42, %v3021_v11 }
 0x782   : > { %v6301_v53 = vpop.f32.mrb[88].mxu0  ;;  %6705 = vmatprep.subr.bf16.mxu0 %v6704_v35 }
 0x783   : > { %v3031_v4 = vpop.f32.mrb[89].mxu0  ;;  %6707 = vmatpush3.bf16.msra.mxu0 %v6704_v35 }
 0x784   : > { %v6708_v61 = vpack.c.bf16 %v6301_v53, %v3031_v4 }
 0x786   : > { %v6304_v18 = vpop.f32.mrb[90].mxu0  ;;  %6709 = vmatprep.subr.bf16.mxu0 %v6708_v61 }
 0x787   : > { %v3041_v12 = vpop.f32.mrb[91].mxu0  ;;  %6711 = vmatpush3.bf16.msra.mxu0 %v6708_v61 }
 0x788   : > { %v6712_v17 = vpack.c.bf16 %v6304_v18, %v3041_v12 }
 0x78a   : > { %v6307_v13 = vpop.f32.mrb[92].mxu0  ;;  %6713 = vmatprep.subr.bf16.mxu0 %v6712_v17 }
 0x78b   : > { %v3051_v3 = vpop.f32.mrb[93].mxu0  ;;  %6715 = vmatpush3.bf16.msra.mxu0 %v6712_v17 }
 0x78c   : > { %v6716_v24 = vpack.c.bf16 %v6307_v13, %v3051_v3 }
 0x78e   : > { %6717 = vmatprep.subr.bf16.mxu0 %v6716_v24 }
 0x78f   : > { %6719 = vmatpush3.bf16.msra.mxu0 %v6716_v24 }
 0x790   : > { %6372 = vmatprep.subr.mxu0 %v8490_v21 }
 0x792   : > { %6325 = vmatmul.mubr.msk.f32.vlgmr.msra.gmra.mrb[94].mxu0 %vm748_vm0, %v3061_v8 }
 0x793   : > { %6327 = vmatprep.mubr.msk.f32.mxu0 %vm748_vm0, %v3062_v43  ;;  %6373 = vmatpush3.msra.mxu0 %v8490_v21  ;;  %v3873_v43 = vld [vmem:[%s9259_s13] sm:$0xff] }
 0x794   : > { %6386 = vmatprep.subr.mxu0 %v8505_v48 }
 0x796   : > { %6328 = vmatmul.mubr.msk.f32.gmra.mrb[96].mxu0 %vm748_vm0, %v3063_v26  ;;  %v3875_v26 = vld [vmem:[%s9259_s13 + $0x10] sm:$0xff] }
 0x797   : > { %6330 = vmatprep.mubr.msk.f32.mxu0 %vm748_vm0, %v3064_v15  ;;  %v3877_v15 = vld [vmem:[%s9259_s13 + $0x20] sm:$0xff] }
 0x79a   : > { %6331 = vmatmul.mubr.msk.f32.gmra.mrb[98].mxu0 %vm748_vm0, %v3065_v23  ;;  %v3874_v23 = vld [vmem:[%s9259_s13 + $0x8] sm:$0xff] }
 0x79b   : > { %6333 = vmatprep.mubr.msk.f32.mxu0 %vm748_vm0, %v3066_v34  ;;  %v3879_v34 = vld [vmem:[%s9259_s13 + $0x30] sm:$0xff] }
 0x79e   : > { %6334 = vmatmul.mubr.msk.f32.gmra.mrb[100].mxu0 %vm748_vm0, %v3067_v52  ;;  %v3876_v52 = vld [vmem:[%s9259_s13 + $0x18] sm:$0xff] }
 0x79f   : > { %6336 = vmatprep.mubr.msk.f32.mxu0 %vm748_vm0, %v3068_v22  ;;  %v3878_v22 = vld [vmem:[%s9259_s13 + $0x28] sm:$0xff] }
 0x7a2   : > { %6337 = vmatmul.mubr.msk.f32.gmra.mrb[102].mxu0 %vm748_vm0, %v3069_v46  ;;  %v3880_v46 = vld [vmem:[%s9259_s13 + $0x38] sm:$0xff] }
 0x7a3   : > { %6339 = vmatprep.mubr.msk.f32.mxu0 %vm748_vm0, %v3070_v50  ;;  %v3472_v50 = vpop.permute.xlu0 %3471 }
 0x7a6   : > { %6340 = vmatmul.mubr.msk.f32.gmra.mrb[104].mxu0 %vm748_vm0, %v3071_v58 }
 0x7a7   : > { %6342 = vmatprep.mubr.msk.f32.mxu0 %vm748_vm0, %v3072_v14  ;;  %v8686_v58 = vpop.permute.xlu0 %3481 }
 0x7aa   : > { %6343 = vmatmul.mubr.msk.f32.gmra.mrb[106].mxu0 %vm748_vm0, %v3073_v62 }
 0x7ab   : > { %6345 = vmatprep.mubr.msk.f32.mxu0 %vm748_vm0, %v3074_v32  ;;  %v8688_v14 = vpop.permute.xlu0 %3486  ;;  %v8692_v32 = vpop.permute.xlu1 %3476 }
 0x7ae   : > { %6346 = vmatmul.mubr.msk.f32.gmra.mrb[108].mxu0 %vm748_vm0, %v3075_v7 }
 0x7af   : > { %6348 = vmatprep.mubr.msk.f32.mxu0 %vm748_vm0, %v3076_v37  ;;  %v8690_v62 = vpop.permute.xlu0 %3491 }
 0x7b2   : > { %6349 = vmatmul.mubr.msk.f32.gmra.mrb[110].mxu0 %vm748_vm0, %v3077_v54 }
 0x7b3   : > { %6351 = vmatprep.mubr.msk.f32.mxu0 %vm748_vm0, %v3078_v29  ;;  %v8694_v7 = vpop.permute.xlu0 %3496 }
 0x7b6   : > { %6352 = vmatmul.mubr.msk.f32.gmra.mrb[112].mxu0 %vm748_vm0, %v3079_v19 }
 0x7b7   : > { %6354 = vmatprep.mubr.msk.f32.mxu0 %vm748_vm0, %v3080_v45  ;;  %v8697_v29 = vpop.permute.xlu0 %3501 }
 0x7ba   : > { %6355 = vmatmul.mubr.msk.f32.gmra.mrb[114].mxu0 %vm748_vm0, %v3081_v5 }
 0x7bb   : > { %6357 = vmatprep.mubr.msk.f32.mxu0 %vm748_vm0, %v3082_v36 }
 0x7be   : > { %6358 = vmatmul.mubr.msk.f32.gmra.mrb[116].mxu0 %vm748_vm0, %v3083_v25 }
 0x7bf   : > { %6360 = vmatprep.mubr.msk.f32.mxu0 %vm748_vm0, %v3084_v38 }
 0x7c2   : > { %6361 = vmatmul.mubr.msk.f32.gmra.mrb[118].mxu0 %vm748_vm0, %v3085_v20 }
 0x7c3   : > { %6363 = vmatprep.mubr.msk.f32.mxu0 %vm748_vm0, %v3086_v40  ;;  %v8701_v40 = vpop.permute.xlu0 %3506 }
 0x7c6   : > { %6364 = vmatmul.mubr.msk.f32.gmra.mrb[120].mxu0 %vm748_vm0, %v3087_v60 }
 0x7c7   : > { %6366 = vmatprep.mubr.msk.f32.mxu0 %vm748_vm0, %v3088_v41 }
 0x7ca   : > { %6367 = vmatmul.mubr.msk.f32.gmra.mrb[122].mxu0 %vm748_vm0, %v3089_v57 }
 0x7cb   : > { %6369 = vmatprep.mubr.msk.f32.mxu0 %vm748_vm0, %v3090_v63 }
 0x7ce   : > { %6370 = vmatmul.mubr.msk.f32.gmra.mrb[124].mxu0 %vm748_vm0, %v3091_v47 }
 0x865   : > { %v8618_v0 = vpop.f32.mrb[94].mxu0 }
 0x866   : > { %v8620_v49 = vpop.f32.mrb[95].mxu0 }
 0x869   : > { %v8622_v30 = vpop.f32.mrb[96].mxu0 }
 0x86a   : > { %v8624_v51 = vpop.f32.mrb[97].mxu0 }
 0x86d   : > { %v8626_v16 = vpop.f32.mrb[98].mxu0 }
 0x86e   : > { %v8628_v10 = vpop.f32.mrb[99].mxu0 }
 0x871   : > { %v8630_v44 = vpop.f32.mrb[100].mxu0 }
 0x872   : > { %v8632_v33 = vpop.f32.mrb[101].mxu0 }
 0x875   : > { %v6338_v56 = vpop.f32.mrb[102].mxu0 }
 0x876   : > { %v3302_v2 = vpop.f32.mrb[103].mxu0 }
 0x879   : > { %v6341_v1 = vpop.f32.mrb[104].mxu0 }
 0x87a   : > { %v3312_v6 = vpop.f32.mrb[105].mxu0 }
 0x87d   : > { %v6344_v28 = vpop.f32.mrb[106].mxu0 }
 0x87e   : > { %v3322_v39 = vpop.f32.mrb[107].mxu0 }
 0x881   : > { %v6347_v9 = vpop.f32.mrb[108].mxu0 }
 0x882   : > { %v3332_v55 = vpop.f32.mrb[109].mxu0 }
 0x885   : > { %v6350_v31 = vpop.f32.mrb[110].mxu0 }
 0x886   : > { %v3342_v59 = vpop.f32.mrb[111].mxu0 }
 0x889   : > { %v8634_v27 = vpop.f32.mrb[112].mxu0 }
 0x88a   : > { %v8636_v42 = vpop.f32.mrb[113].mxu0 }
 0x88d   : > { %v8638_v11 = vpop.f32.mrb[114].mxu0 }
 0x88e   : > { %v8640_v35 = vpop.f32.mrb[115].mxu0 }
 0x891   : > { %v8642_v53 = vpop.f32.mrb[116].mxu0 }
 0x892   : > { %v8644_v4 = vpop.f32.mrb[117].mxu0 }
 0x895   : > { %v6362_v61 = vpop.f32.mrb[118].mxu0 }
 0x896   : > { %3527 = vrot.lane.b32.xlu1 %v6362_v61, %s9307_s1  ;;  %v3382_v18 = vpop.f32.mrb[119].mxu0 }
 0x899   : > { %v6365_v12 = vpop.f32.mrb[120].mxu0 }
 0x89a   : > { %3525 = vrot.lane.b32.xlu1 %v3382_v18, %s9307_s1  ;;  %v3392_v17 = vpop.f32.mrb[121].mxu0 }
 0x89d   : > { %v6368_v13 = vpop.f32.mrb[122].mxu0 }
 0x89e   : > { %3531 = vrot.lane.b32.xlu1 %v6365_v12, %s9307_s1  ;;  %v3402_v3 = vpop.f32.mrb[123].mxu0 }
 0x8a1   : > { %v6371_v24 = vpop.f32.mrb[124].mxu0 }
 0x8a2   : > { %3529 = vrot.lane.b32.xlu1 %v3392_v17, %s9307_s1  ;;  %v3412_v8 = vpop.f32.mrb[125].mxu0 }
 0x8a3   : > { %3537 = vrot.lane.b32.xlu0 %v3412_v8, %s9307_s1 }
 0x8a6   : > { %3533 = vrot.lane.b32.xlu1 %v3402_v3, %s9307_s1 }
 0x8a7   : > { %3429 = vrot.lane.b32.xlu0 %v3302_v2, %s9308_s3 }
 0x8aa   : > { %3535 = vrot.lane.b32.xlu1 %v6368_v13, %s9307_s1 }
 0x8ab   : > { %3433 = vrot.lane.b32.xlu0 %v3312_v6, %s9308_s3 }
 0x8ae   : > { %3539 = vrot.lane.b32.xlu1 %v6371_v24, %s9307_s1 }
 0x8af   : > { %3437 = vrot.lane.b32.xlu0 %v3322_v39, %s9308_s3 }
 0x8b2   : > { %3431 = vrot.lane.b32.xlu1 %v6338_v56, %s9308_s3 }
 0x8b3   : > { %3441 = vrot.lane.b32.xlu0 %v3332_v55, %s9308_s3 }
 0x8b6   : > { %3435 = vrot.lane.b32.xlu1 %v6341_v1, %s9308_s3 }
 0x8b7   : > { %4237 = vperm.xlu0 %6937, %v3873_v43  }
 0x8ba   : > { %3439 = vrot.lane.b32.xlu1 %v6344_v28, %s9308_s3 }
 0x8bb   : > { %4247 = vperm.xlu0 %6937, %v3875_v26  }
 0x8be   : > { %3443 = vrot.lane.b32.xlu1 %v6347_v9, %s9308_s3 }
 0x8bf   : > { %4257 = vperm.xlu0 %6937, %v3877_v15  }
 0x8c2   : > { %4242 = vperm.xlu1 %6938, %v3874_v23  }
 0x8c3   : > { %4267 = vperm.xlu0 %6937, %v3879_v34  }
 0x8c6   : > { %4252 = vperm.xlu1 %6938, %v3876_v52  }
 0x8ca   : > { %4262 = vperm.xlu1 %6938, %v3878_v22  }
 0x8ce   : > { %4272 = vperm.xlu1 %6938, %v3880_v46  }
 0x908   : > { %v3528_v37 = vpop.permute.xlu1 %3527 }
 0x909   : > { %v3551_v54 = vsel %vm3549_vm7, %v3528_v37, 0.0 }
 0x90a   : > { %v3559_v19 = vadd.f32 %v6350_v31, %v3551_v54 }
 0x90c   : > { %v3526_v45 = vpop.permute.xlu1 %3525  ;;  %v3567_v25 = vadd.f32 %v3559_v19, %v8692_v32 }
 0x90d   : > { %v3550_v5 = vsel %vm3549_vm7, %v3526_v45, 0.0 }
 0x90e   : > { %v3558_v36 = vadd.f32 %v3550_v5, %v3342_v59  ;;  %v3583_v57 = vmax.f32 %v3567_v25, 0.0 }
 0x910   : > { %v3566_v38 = vadd.f32 %v3558_v36, %v3472_v50  ;;  %v3532_v20 = vpop.permute.xlu1 %3531 }
 0x911   : > { %v3553_v60 = vsel %vm3549_vm7, %v3532_v20, 0.0 }
 0x912   : > { %v3582_v41 = vmax.f32 %v3566_v38, 0.0  ;;  %v3561_v63 = vadd.f32 %v8634_v27, %v3553_v60 }
 0x914   : > { %v3530_v47 = vpop.permute.xlu1 %3529  ;;  %6374 = vmatprep.mubr.msk.f32.mxu0 %vm3590_vm8, %v3582_v41  ;;  %v3569_v6 = vadd.f32 %v3561_v63, %v8688_v14 }
 0x915   : > { %v3552_v56 = vsel %vm3549_vm7, %v3530_v47, 0.0  ;;  %6375 = vmatmul.mubr.msk.f32.vlgmr.msra.gmra.mrb[126].mxu0 %vm3590_vm8, %v3583_v57  ;;  %v3538_v2 = vpop.permute.xlu0 %3537 }
 0x916   : > { %v3560_v1 = vadd.f32 %v3552_v56, %v8636_v42  ;;  %6387 = vmatpush3.msra.mxu0 %v8505_v48  ;;  %v3556_v39 = vsel %vm3549_vm7, %v3538_v2, 0.0  ;;  %v3585_v61 = vmax.f32 %v3569_v6, 0.0 }
 0x917   : > { %v3564_v18 = vadd.f32 %v3556_v39, %v8644_v4 }
 0x918   : > { %v3568_v28 = vadd.f32 %v3560_v1, %v8686_v58  ;;  %v3534_v9 = vpop.permute.xlu1 %3533 }
 0x919   : > { %v3554_v55 = vsel %vm3549_vm7, %v3534_v9, 0.0  ;;  %v3430_v31 = vpop.permute.xlu0 %3429 }
 0x91a   : > { %v3584_v59 = vmax.f32 %v3568_v28, 0.0  ;;  %v3562_v27 = vadd.f32 %v3554_v55, %v8640_v35  ;;  %v3453_v12 = vsel %vm1695_vm2, 0.0, %v3430_v31  ;;  %v3572_v35 = vadd.f32 %v3564_v18, %v8697_v29 }
 0x91b   : > { %v3461_v43 = vadd.f32 %v3453_v12, %v8620_v49 }
 0x91c   : > { %v3570_v42 = vadd.f32 %v3562_v27, %v8690_v62  ;;  %v3536_v17 = vpop.permute.xlu1 %3535  ;;  %6377 = vmatprep.mubr.msk.f32.mxu0 %vm3590_vm8, %v3584_v59  ;;  %v3588_v46 = vmax.f32 %v3572_v35, 0.0  ;;  %v3853_v35 = vld [vmem:[%s9258_s12 + $0x20] sm:$0xff] }
 0x91d   : > { %v3555_v13 = vsel %vm3549_vm7, %v3536_v17, 0.0  ;;  %6378 = vmatmul.mubr.msk.f32.gmra.mrb[128].mxu0 %vm3590_vm8, %v3585_v61  ;;  %v3434_v3 = vpop.permute.xlu0 %3433  ;;  %v3509_v37 = vadd.f32 %v3472_v50, %v3461_v43  ;;  %v3854_v43 = vld [vmem:[%s9258_s12 + $0x28] sm:$0xff] }
 0x91e   : > { %v3586_v24 = vmax.f32 %v3570_v42, 0.0  ;;  %v3563_v8 = vadd.f32 %v8638_v11, %v3555_v13  ;;  %v3455_v26 = vsel %vm1695_vm2, 0.0, %v3434_v3  ;;  %v3850_v3 = vld [vmem:[%s9258_s12 + $0x8] sm:$0xff] }
 0x91f   : > { %v3463_v11 = vadd.f32 %v3455_v26, %v8624_v51  ;;  %v3856_v26 = vld [vmem:[%s9258_s12 + $0x38] sm:$0xff] }
 0x920   : > { %v3571_v4 = vadd.f32 %v3563_v8, %v8694_v7  ;;  %v3540_v15 = vpop.permute.xlu1 %3539  ;;  %6380 = vmatprep.mubr.msk.f32.mxu0 %vm3590_vm8, %v3586_v24  ;;  %v3851_v24 = vld [vmem:[%s9258_s12 + $0x10] sm:$0xff]  ;;  %v3852_v8 = vld [vmem:[%s9258_s12 + $0x18] sm:$0xff] }
 0x921   : > { %v3557_v23 = vsel %vm3549_vm7, %v3540_v15, 0.0  ;;  %v3438_v34 = vpop.permute.xlu0 %3437  ;;  %v3511_v50 = vadd.f32 %v8686_v58, %v3463_v11  ;;  %v3857_v15 = vld [vmem:[%s9258_s12 + $0x40] sm:$0xff]  ;;  %v3864_v11 = vld [vmem:[%s9258_s12 + $0x78] sm:$0xff] }
 0x922   : > { %v3587_v52 = vmax.f32 %v3571_v4, 0.0  ;;  %v3565_v22 = vadd.f32 %v8642_v53, %v3557_v23  ;;  %v3457_v49 = vsel %vm1695_vm2, 0.0, %v3438_v34  ;;  %v3574_v53 = vmax.f32 %v3509_v37, 0.0  ;;  %v3855_v4 = vld [vmem:[%s9258_s12 + $0x30] sm:$0xff]  ;;  %v3858_v23 = vld [vmem:[%s9258_s12 + $0x48] sm:$0xff] }
 0x923   : > { %v3465_v51 = vadd.f32 %v3457_v49, %v8628_v10  ;;  %v3859_v34 = vld [vmem:[%s9258_s12 + $0x50] sm:$0xff]  ;;  %v3866_v49 = vld [vmem:[%s9258_s12 + $0x88] sm:$0xff] }
 0x924   : > { %v3573_v54 = vadd.f32 %v3565_v22, %v8701_v40  ;;  %v3432_v19 = vpop.permute.xlu1 %3431  ;;  %6381 = vmatmul.mubr.msk.f32.gmra.mrb[130].mxu0 %vm3590_vm8, %v3587_v52  ;;  %v3860_v52 = vld [vmem:[%s9258_s12 + $0x58] sm:$0xff]  ;;  %v3861_v22 = vld [vmem:[%s9258_s12 + $0x60] sm:$0xff]  ;;  %v3863_v37 = vld [vmem:[%s9258_s12 + $0x70] sm:$0xff] }
 0x925   : > { %v3454_v45 = vsel %vm1695_vm2, 0.0, %v3432_v19  ;;  %6383 = vmatprep.mubr.msk.f32.mxu0 %vm3590_vm8, %v3588_v46  ;;  %v3442_v5 = vpop.permute.xlu0 %3441  ;;  %v3513_v47 = vadd.f32 %v8690_v62, %v3465_v51  ;;  %v3862_v46 = vld [vmem:[%s9258_s12 + $0x68] sm:$0xff]  ;;  %v3867_v19 = vld [vmem:[%s9258_s12 + $0x90] sm:$0xff] }
 0x926   : > { %v3589_v36 = vmax.f32 %v3573_v54, 0.0  ;;  %v3462_v25 = vadd.f32 %v8618_v0, %v3454_v45  ;;  %v3459_v20 = vsel %vm1695_vm2, 0.0, %v3442_v5  ;;  %v3576_v0 = vmax.f32 %v3511_v50, 0.0  ;;  %v3865_v54 = vld [vmem:[%s9258_s12 + $0x80] sm:$0xff]  ;;  %v3868_v45 = vld [vmem:[%s9258_s12 + $0x98] sm:$0xff] }
 0x927   : > { %v3467_v58 = vadd.f32 %v3459_v20, %v8632_v33  ;;  %v3578_v6 = vmax.f32 %v3513_v47, 0.0  ;;  %v3869_v5 = vld [vmem:[%s9258_s12 + $0xa0] sm:$0xff] }
 0x928   : > { %v3510_v38 = vadd.f32 %v8692_v32, %v3462_v25  ;;  %v3436_v60 = vpop.permute.xlu1 %3435  ;;  %6384 = vmatmul.mubr.msk.f32.gmra.mrb[132].mxu0 %vm3590_vm8, %v3589_v36  ;;  %v3870_v36 = vld [vmem:[%s9258_s12 + $0xa8] sm:$0xff]  ;;  %v3871_v25 = vld [vmem:[%s9258_s12 + $0xb0] sm:$0xff] }
 0x929   : > { %v3456_v41 = vsel %vm1695_vm2, 0.0, %v3436_v60  ;;  %6388 = vmatprep.mubr.msk.f32.mxu0 %vm3590_vm8, %v3574_v53  ;;  %v3872_v53 = vld [vmem:[%s9258_s12 + $0xb8] sm:$0xff] }
 0x92a   : > { %v3575_v57 = vmax.f32 %v3510_v38, 0.0  ;;  %v3464_v63 = vadd.f32 %v8622_v30, %v3456_v41  ;;  %v3515_v30 = vadd.f32 %v8697_v29, %v3467_v58 }
 0x92c   : > { %v3512_v10 = vadd.f32 %v8688_v14, %v3464_v63  ;;  %v3440_v32 = vpop.permute.xlu1 %3439  ;;  %6389 = vmatmul.mubr.msk.f32.vlgmr.msra.gmra.mrb[126].mxu0 %vm3590_vm8, %v3575_v57  ;;  %v3580_v9 = vmax.f32 %v3515_v30, 0.0 }
 0x92d   : > { %v3458_v56 = vsel %vm1695_vm2, 0.0, %v3440_v32  ;;  %6391 = vmatprep.mubr.msk.f32.mxu0 %vm3590_vm8, %v3576_v0 }
 0x92e   : > { %v3577_v2 = vmax.f32 %v3512_v10, 0.0  ;;  %v3466_v1 = vadd.f32 %v8626_v16, %v3458_v56 }
 0x930   : > { %v3514_v28 = vadd.f32 %v8694_v7, %v3466_v1  ;;  %v3444_v62 = vpop.permute.xlu1 %3443  ;;  %6392 = vmatmul.mubr.msk.f32.gmra.mrb[128].mxu0 %vm3590_vm8, %v3577_v2  ;;  %v3849_v7 = vld [vmem:[%s9258_s12] sm:$0xff] }
 0x931   : > { %v3460_v33 = vsel %vm1695_vm2, 0.0, %v3444_v62  ;;  %6394 = vmatprep.mubr.msk.f32.mxu0 %vm3590_vm8, %v3578_v6  ;;  %6416 = vmatprep.mubr.msk.f32.mxu1 %vm748_vm0, %v3849_v7  ;;  %v4307_v7 = vld [vmem:[%s9261_s15] sm:$0xff] }
 0x932   : > { %v3579_v14 = vmax.f32 %v3514_v28, 0.0  ;;  %v3468_v39 = vadd.f32 %v8630_v44, %v3460_v33 }
 0x934   : > { %v3516_v55 = vadd.f32 %v8701_v40, %v3468_v39  ;;  %6395 = vmatmul.mubr.msk.f32.gmra.mrb[130].mxu0 %vm3590_vm8, %v3579_v14  ;;  %v4291_v39 = vld [vmem:[%s9260_s14] sm:$0xff] }
 0x935   : > { %6397 = vmatprep.mubr.msk.f32.mxu0 %vm3590_vm8, %v3580_v9 }
 0x936   : > { %v3581_v16 = vmax.f32 %v3516_v55, 0.0 }
 0x938   : > { %6398 = vmatmul.mubr.msk.f32.gmra.mrb[132].mxu0 %vm3590_vm8, %v3581_v16  ;;  %v4308_v16 = vld [vmem:[%s9261_s15 + $0x8] sm:$0xff] }
 0x939   : > { %6468 = vmatprep.mubr.msk.f32.mxu0 %vm748_vm0, %v4291_v39 }
 0x9ff   : > { %v6390_v29 = vpop.f32.mrb[126].mxu0 }
 0xa00   : > { %v3810_v31 = vpop.f32.mrb[127].mxu0 }
 0xa01   : > { %v6720_v59 = vpack.c.bf16 %v6390_v29, %v3810_v31  ;;  %v4309_v29 = vld [vmem:[%s9261_s15 + $0x10] sm:$0xff]  ;;  %v4310_v31 = vld [vmem:[%s9261_s15 + $0x18] sm:$0xff] }
 0xa03   : > { %v6393_v44 = vpop.f32.mrb[128].mxu0  ;;  %6721 = vmatprep.subr.bf16.mxu1 %v6720_v59 }
 0xa04   : > { %v3820_v27 = vpop.f32.mrb[129].mxu0  ;;  %6723 = vmatpush3.bf16.msra.mxu1 %v6720_v59  ;;  %v4243_v59 = vpop.permute.xlu1 %4242 }
 0xa05   : > { %v6724_v40 = vpack.c.bf16 %v6393_v44, %v3820_v27  ;;  %v4238_v44 = vpop.permute.xlu0 %4237 }
 0xa07   : > { %v6396_v61 = vpop.f32.mrb[130].mxu0  ;;  %6725 = vmatprep.subr.bf16.mxu1 %v6724_v40 }
 0xa08   : > { %v3830_v18 = vpop.f32.mrb[131].mxu0  ;;  %6727 = vmatpush3.bf16.msra.mxu1 %v6724_v40  ;;  %v4253_v27 = vpop.permute.xlu1 %4252 }
 0xa09   : > { %v6728_v42 = vpack.c.bf16 %v6396_v61, %v3830_v18  ;;  %v4248_v40 = vpop.permute.xlu0 %4247 }
 0xa0b   : > { %v6399_v12 = vpop.f32.mrb[132].mxu0  ;;  %6729 = vmatprep.subr.bf16.mxu1 %v6728_v42 }
 0xa0c   : > { %v3840_v17 = vpop.f32.mrb[133].mxu0  ;;  %6731 = vmatpush3.bf16.msra.mxu1 %v6728_v42  ;;  %v4263_v61 = vpop.permute.xlu1 %4262 }
 0xa0d   : > { %v6732_v13 = vpack.c.bf16 %v6399_v12, %v3840_v17  ;;  %v4258_v18 = vpop.permute.xlu0 %4257 }
 0xa0f   : > { %6733 = vmatprep.subr.bf16.mxu1 %v6732_v13 }
 0xa10   : > { %6735 = vmatpush3.bf16.msra.mxu1 %v6732_v13  ;;  %v8905_v42 = vpop.permute.xlu1 %4272 }
 0xa11   : > { %v8907_v12 = vpop.permute.xlu0 %4267 }
 0xa13   : > { %6417 = vmatmul.mubr.msk.f32.vlgmr.msra.gmra.mrb[122].mxu1 %vm748_vm0, %v3850_v3 }
 0xa14   : > { %6419 = vmatprep.mubr.msk.f32.mxu1 %vm748_vm0, %v3851_v24 }
 0xa17   : > { %6420 = vmatmul.mubr.msk.f32.gmra.mrb[124].mxu1 %vm748_vm0, %v3852_v8 }
 0xa18   : > { %6422 = vmatprep.mubr.msk.f32.mxu1 %vm748_vm0, %v3853_v35 }
 0xa1b   : > { %6423 = vmatmul.mubr.msk.f32.gmra.mrb[126].mxu1 %vm748_vm0, %v3854_v43 }
 0xa1c   : > { %6425 = vmatprep.mubr.msk.f32.mxu1 %vm748_vm0, %v3855_v4 }
 0xa1f   : > { %6426 = vmatmul.mubr.msk.f32.gmra.mrb[128].mxu1 %vm748_vm0, %v3856_v26 }
 0xa20   : > { %6428 = vmatprep.mubr.msk.f32.mxu1 %vm748_vm0, %v3857_v15 }
 0xa23   : > { %6429 = vmatmul.mubr.msk.f32.gmra.mrb[130].mxu1 %vm748_vm0, %v3858_v23 }
 0xa24   : > { %6431 = vmatprep.mubr.msk.f32.mxu1 %vm748_vm0, %v3859_v34 }
 0xa27   : > { %6432 = vmatmul.mubr.msk.f32.gmra.mrb[132].mxu1 %vm748_vm0, %v3860_v52 }
 0xa28   : > { %6434 = vmatprep.mubr.msk.f32.mxu1 %vm748_vm0, %v3861_v22 }
 0xa2b   : > { %6435 = vmatmul.mubr.msk.f32.gmra.mrb[134].mxu1 %vm748_vm0, %v3862_v46 }
 0xa2c   : > { %6437 = vmatprep.mubr.msk.f32.mxu1 %vm748_vm0, %v3863_v37 }
 0xa2f   : > { %6438 = vmatmul.mubr.msk.f32.gmra.mrb[136].mxu1 %vm748_vm0, %v3864_v11 }
 0xa30   : > { %6440 = vmatprep.mubr.msk.f32.mxu1 %vm748_vm0, %v3865_v54 }
 0xa33   : > { %6441 = vmatmul.mubr.msk.f32.gmra.mrb[138].mxu1 %vm748_vm0, %v3866_v49 }
 0xa34   : > { %6443 = vmatprep.mubr.msk.f32.mxu1 %vm748_vm0, %v3867_v19 }
 0xa37   : > { %6444 = vmatmul.mubr.msk.f32.gmra.mrb[140].mxu1 %vm748_vm0, %v3868_v45 }
 0xa38   : > { %6446 = vmatprep.mubr.msk.f32.mxu1 %vm748_vm0, %v3869_v5 }
 0xa3b   : > { %6447 = vmatmul.mubr.msk.f32.gmra.mrb[142].mxu1 %vm748_vm0, %v3870_v36 }
 0xa3c   : > { %6449 = vmatprep.mubr.msk.f32.mxu1 %vm748_vm0, %v3871_v25 }
 0xa3f   : > { %6450 = vmatmul.mubr.msk.f32.gmra.mrb[144].mxu1 %vm748_vm0, %v3872_v53 }
 0xae6   : > { %v8857_v50 = vpop.f32.mrb[122].mxu1 }
 0xae7   : > { %v8859_v51 = vpop.f32.mrb[123].mxu1 }
 0xaea   : > { %v8861_v38 = vpop.f32.mrb[124].mxu1 }
 0xaeb   : > { %v8863_v20 = vpop.f32.mrb[125].mxu1 }
 0xaee   : > { %v8865_v60 = vpop.f32.mrb[126].mxu1 }
 0xaef   : > { %v8867_v41 = vpop.f32.mrb[127].mxu1 }
 0xaf2   : > { %v8869_v57 = vpop.f32.mrb[128].mxu1 }
 0xaf3   : > { %v8871_v63 = vpop.f32.mrb[129].mxu1 }
 0xaf6   : > { %v6430_v0 = vpop.f32.mrb[130].mxu1 }
 0xaf7   : > { %4148 = vrot.lane.b32.xlu1 %v6430_v0, %s9308_s3  ;;  %v4059_v47 = vpop.f32.mrb[131].mxu1 }
 0xaf8   : > { %4146 = vrot.lane.b32.xlu0 %v4059_v47, %s9308_s3 }
 0xafa   : > { %v6433_v58 = vpop.f32.mrb[132].mxu1 }
 0xafb   : > { %4152 = vrot.lane.b32.xlu1 %v6433_v58, %s9308_s3  ;;  %v4069_v10 = vpop.f32.mrb[133].mxu1 }
 0xafc   : > { %4150 = vrot.lane.b32.xlu0 %v4069_v10, %s9308_s3 }
 0xafe   : > { %v6436_v32 = vpop.f32.mrb[134].mxu1 }
 0xaff   : > { %4156 = vrot.lane.b32.xlu1 %v6436_v32, %s9308_s3  ;;  %v4079_v56 = vpop.f32.mrb[135].mxu1 }
 0xb00   : > { %4154 = vrot.lane.b32.xlu0 %v4079_v56, %s9308_s3 }
 0xb02   : > { %v6439_v2 = vpop.f32.mrb[136].mxu1 }
 0xb03   : > { %4160 = vrot.lane.b32.xlu1 %v6439_v2, %s9308_s3  ;;  %v4089_v1 = vpop.f32.mrb[137].mxu1 }
 0xb04   : > { %4158 = vrot.lane.b32.xlu0 %v4089_v1, %s9308_s3 }
 0xb06   : > { %v6442_v6 = vpop.f32.mrb[138].mxu1 }
 0xb07   : > { %4196 = vrot.lane.b32.xlu1 %v6442_v6, %s9307_s1  ;;  %v4099_v30 = vpop.f32.mrb[139].mxu1 }
 0xb08   : > { %4194 = vrot.lane.b32.xlu0 %v4099_v30, %s9307_s1 }
 0xb0a   : > { %v6445_v28 = vpop.f32.mrb[140].mxu1 }
 0xb0b   : > { %4200 = vrot.lane.b32.xlu1 %v6445_v28, %s9307_s1  ;;  %v4109_v62 = vpop.f32.mrb[141].mxu1 }
 0xb0c   : > { %4198 = vrot.lane.b32.xlu0 %v4109_v62, %s9307_s1 }
 0xb0e   : > { %v6448_v33 = vpop.f32.mrb[142].mxu1 }
 0xb0f   : > { %4204 = vrot.lane.b32.xlu1 %v6448_v33, %s9307_s1  ;;  %v4119_v14 = vpop.f32.mrb[143].mxu1 }
 0xb10   : > { %4202 = vrot.lane.b32.xlu0 %v4119_v14, %s9307_s1 }
 0xb12   : > { %v6451_v9 = vpop.f32.mrb[144].mxu1 }
 0xb13   : > { %4208 = vrot.lane.b32.xlu1 %v6451_v9, %s9307_s1  ;;  %v4129_v55 = vpop.f32.mrb[145].mxu1 }
 0xb14   : > { %4206 = vrot.lane.b32.xlu0 %v4129_v55, %s9307_s1 }
 0xb17   : > { %4535 = vperm.xlu1 %6938, %v4308_v16  }
 0xb18   : > { %4530 = vperm.xlu0 %6937, %v4307_v7  }
 0xb1c   : > { %4540 = vperm.xlu0 %6937, %v4309_v29  }
 0xb20   : > { %4545 = vperm.xlu0 %6937, %v4310_v31  }
 0xb69   : > { %v4149_v17 = vpop.permute.xlu1 %4148 }
 0xb6a   : > { %v4147_v13 = vpop.permute.xlu0 %4146  ;;  %v4171_v4 = vsel %vm1695_vm2, 0.0, %v4149_v17 }
 0xb6b   : > { %v4170_v15 = vsel %vm1695_vm2, 0.0, %v4147_v13  ;;  %v4179_v23 = vadd.f32 %v8857_v50, %v4171_v4 }
 0xb6c   : > { %v4178_v52 = vadd.f32 %v4170_v15, %v8859_v51  ;;  %v4293_v15 = vld [vmem:[%s9260_s14 + $0x10] sm:$0xff] }
 0xb6d   : > { %v4153_v3 = vpop.permute.xlu1 %4152 }
 0xb6e   : > { %v4151_v24 = vpop.permute.xlu0 %4150  ;;  %v4173_v22 = vsel %vm1695_vm2, 0.0, %v4153_v3 }
 0xb6f   : > { %v4172_v46 = vsel %vm1695_vm2, 0.0, %v4151_v24  ;;  %v4181_v45 = vadd.f32 %v8861_v38, %v4173_v22  ;;  %v4299_v22 = vld [vmem:[%s9260_s14 + $0x40] sm:$0xff] }
 0xb70   : > { %v4180_v5 = vadd.f32 %v4172_v46, %v8863_v20  ;;  %v4300_v46 = vld [vmem:[%s9260_s14 + $0x48] sm:$0xff] }
 0xb71   : > { %v4157_v8 = vpop.permute.xlu1 %4156 }
 0xb72   : > { %v4155_v35 = vpop.permute.xlu0 %4154  ;;  %v4175_v53 = vsel %vm1695_vm2, 0.0, %v4157_v8 }
 0xb73   : > { %v4174_v50 = vsel %vm1695_vm2, 0.0, %v4155_v35  ;;  %v4183_v38 = vadd.f32 %v8865_v60, %v4175_v53 }
 0xb74   : > { %v4182_v20 = vadd.f32 %v4174_v50, %v8867_v41 }
 0xb75   : > { %v4161_v43 = vpop.permute.xlu1 %4160 }
 0xb76   : > { %v4159_v26 = vpop.permute.xlu0 %4158  ;;  %v4177_v30 = vsel %vm1695_vm2, 0.0, %v4161_v43 }
 0xb77   : > { %v4176_v39 = vsel %vm1695_vm2, 0.0, %v4159_v26  ;;  %v4185_v60 = vadd.f32 %v8869_v57, %v4177_v30  ;;  %v4292_v26 = vld [vmem:[%s9260_s14 + $0x8] sm:$0xff] }
 0xb79   : > { %v4197_v34 = vpop.permute.xlu1 %4196 }
 0xb7a   : > { %v4220_v37 = vsel %vm4218_vm9, %v4197_v34, 0.0  ;;  %v4195_v11 = vpop.permute.xlu0 %4194  ;;  %v4297_v34 = vld [vmem:[%s9260_s14 + $0x30] sm:$0xff] }
 0xb7b   : > { %v4228_v54 = vadd.f32 %v4220_v37, %v4179_v23  ;;  %v4219_v49 = vsel %vm4218_vm9, %v4195_v11, 0.0  ;;  %v4296_v23 = vld [vmem:[%s9260_s14 + $0x28] sm:$0xff]  ;;  %v4301_v37 = vld [vmem:[%s9260_s14 + $0x50] sm:$0xff]  ;;  %v4302_v11 = vld [vmem:[%s9260_s14 + $0x58] sm:$0xff] }
 0xb7c   : > { %v4227_v19 = vadd.f32 %v4219_v49, %v4178_v52  ;;  %v4298_v52 = vld [vmem:[%s9260_s14 + $0x38] sm:$0xff]  ;;  %v4304_v49 = vld [vmem:[%s9260_s14 + $0x68] sm:$0xff] }
 0xb7d   : > { %v4276_v36 = vadd.f32 %v4243_v59, %v4228_v54  ;;  %v4201_v25 = vpop.permute.xlu1 %4200  ;;  %v4184_v59 = vadd.f32 %v4176_v39, %v8871_v63  ;;  %v4303_v54 = vld [vmem:[%s9260_s14 + $0x60] sm:$0xff] }
 0xb7e   : > { %v4275_v51 = vadd.f32 %v4238_v44, %v4227_v19  ;;  %v4222_v0 = vsel %vm4218_vm9, %v4201_v25, 0.0  ;;  %v4199_v47 = vpop.permute.xlu0 %4198  ;;  %v4305_v19 = vld [vmem:[%s9260_s14 + $0x70] sm:$0xff] }
 0xb7f   : > { %v4284_v58 = vmax.f32 %v4276_v36, 0.0  ;;  %v4230_v10 = vadd.f32 %v4222_v0, %v4181_v45  ;;  %v4221_v32 = vsel %vm4218_vm9, %v4199_v47, 0.0  ;;  %v4306_v45 = vld [vmem:[%s9260_s14 + $0x78] sm:$0xff] }
 0xb80   : > { %v4283_v56 = vmax.f32 %v4275_v51, 0.0  ;;  %v4229_v2 = vadd.f32 %v4221_v32, %v4180_v5  ;;  %v637_v32 = vld [vmem:[%s9251_s5 + $0x10] sm:$0xff] }
 0xb81   : > { %v4278_v1 = vadd.f32 %v4253_v27, %v4230_v10  ;;  %v4205_v6 = vpop.permute.xlu1 %4204 }
 0xb82   : > { %v4277_v28 = vadd.f32 %v4248_v40, %v4229_v2  ;;  %v4224_v62 = vsel %vm4218_vm9, %v4205_v6, 0.0  ;;  %v4203_v33 = vpop.permute.xlu0 %4202  ;;  %v6736_v14 = vpack.c.bf16 %v4284_v58, %v4283_v56  ;;  %v9005_v56 = vpack.c.bf16 %v637_v32, %v8490_v21  ;;  %v629_v6 = vld [vmem:[%s9305_s28 + $0x10] sm:$0xff] }
 0xb83   : > { %v4286_v9 = vmax.f32 %v4278_v1, 0.0  ;;  %v4232_v55 = vadd.f32 %v4224_v62, %v4183_v38  ;;  %v4223_v16 = vsel %vm4218_vm9, %v4203_v33, 0.0  ;;  %v9014_v30 = vpack.c.bf16 %v629_v6, %v8505_v48  ;;  %v4791_v48 = vld [vmem:[%s9263_s17] sm:$0xff]  ;;  %v4792_v62 = vld [vmem:[%s9263_s17 + $0x8] sm:$0xff]  ;;  %v4785_v32 = vld [vmem:[%s9262_s16 + $0x10] sm:$0xff] }
 0xb84   : > { %v4285_v7 = vmax.f32 %v4277_v28, 0.0  ;;  %v4231_v29 = vadd.f32 %v4223_v16, %v4182_v20  ;;  %6737 = vmatprep.subr.bf16.mxu0 %v6736_v14  ;;  %v4790_v6 = vld [vmem:[%s9262_s16 + $0x38] sm:$0xff] }
 0xb85   : > { %v4280_v41 = vadd.f32 %v4263_v61, %v4232_v55  ;;  %v4209_v31 = vpop.permute.xlu1 %4208  ;;  %6739 = vmatpush3.bf16.msra.mxu0 %v6736_v14 }
 0xb86   : > { %v4279_v44 = vadd.f32 %v4258_v18, %v4231_v29  ;;  %v4226_v27 = vsel %vm4218_vm9, %v4209_v31, 0.0  ;;  %v4207_v40 = vpop.permute.xlu0 %4206  ;;  %v6740_v17 = vpack.c.bf16 %v4286_v9, %v4285_v7 }
 0xb87   : > { %v4288_v13 = vmax.f32 %v4280_v41, 0.0  ;;  %v4234_v3 = vadd.f32 %v4226_v27, %v4185_v60  ;;  %v4225_v24 = vsel %vm4218_vm9, %v4207_v40, 0.0 }
 0xb88   : > { %v4287_v8 = vmax.f32 %v4279_v44, 0.0  ;;  %v4233_v35 = vadd.f32 %v4225_v24, %v4184_v59  ;;  %6741 = vmatprep.subr.bf16.mxu0 %v6740_v17 }
 0xb89   : > { %v4282_v43 = vadd.f32 %v8905_v42, %v4234_v3  ;;  %6743 = vmatpush3.bf16.msra.mxu0 %v6740_v17  ;;  %v4294_v42 = vld [vmem:[%s9260_s14 + $0x18] sm:$0xff] }
 0xb8a   : > { %v4281_v57 = vadd.f32 %v8907_v12, %v4233_v35  ;;  %v6744_v61 = vpack.c.bf16 %v4288_v13, %v4287_v8  ;;  %v4295_v12 = vld [vmem:[%s9260_s14 + $0x20] sm:$0xff] }
 0xb8b   : > { %v4290_v4 = vmax.f32 %v4282_v43, 0.0 }
 0xb8c   : > { %v4289_v63 = vmax.f32 %v4281_v57, 0.0  ;;  %6745 = vmatprep.subr.bf16.mxu0 %v6744_v61 }
 0xb8d   : > { %6747 = vmatpush3.bf16.msra.mxu0 %v6744_v61 }
 0xb8e   : > { %v6748_v18 = vpack.c.bf16 %v4290_v4, %v4289_v63 }
 0xb90   : > { %6749 = vmatprep.subr.bf16.mxu0 %v6748_v18 }
 0xb91   : > { %6751 = vmatpush3.bf16.msra.mxu0 %v6748_v18 }
 0xb92   : > { %6753 = vmatprep.subr.bf16.mxu0 %v9005_v56 }
 0xb94   : > { %6469 = vmatmul.mubr.msk.f32.vlgmr.msra.gmra.mrb[134].mxu0 %vm748_vm0, %v4292_v26 }
 0xb95   : > { %6471 = vmatprep.mubr.msk.f32.mxu0 %vm748_vm0, %v4293_v15  ;;  %6755 = vmatpush3.bf16.msra.mxu0 %v9005_v56 }
 0xb96   : > { %6757 = vmatprep.subr.bf16.mxu0 %v9014_v30  ;;  %v4536_v39 = vpop.permute.xlu1 %4535 }
 0xb97   : > { %v4531_v33 = vpop.permute.xlu0 %4530 }
 0xb98   : > { %6472 = vmatmul.mubr.msk.f32.gmra.mrb[136].mxu0 %vm748_vm0, %v4294_v42 }
 0xb99   : > { %6474 = vmatprep.mubr.msk.f32.mxu0 %vm748_vm0, %v4295_v12 }
 0xb9b   : > { %v4541_v14 = vpop.permute.xlu0 %4540 }
 0xb9c   : > { %6475 = vmatmul.mubr.msk.f32.gmra.mrb[138].mxu0 %vm748_vm0, %v4296_v23 }
 0xb9d   : > { %6477 = vmatprep.mubr.msk.f32.mxu0 %vm748_vm0, %v4297_v34 }
 0xb9f   : > { %v4546_v9 = vpop.permute.xlu0 %4545 }
 0xba0   : > { %6478 = vmatmul.mubr.msk.f32.gmra.mrb[140].mxu0 %vm748_vm0, %v4298_v52 }
 0xba1   : > { %6480 = vmatprep.mubr.msk.f32.mxu0 %vm748_vm0, %v4299_v22 }
 0xba4   : > { %6481 = vmatmul.mubr.msk.f32.gmra.mrb[142].mxu0 %vm748_vm0, %v4300_v46 }
 0xba5   : > { %6483 = vmatprep.mubr.msk.f32.mxu0 %vm748_vm0, %v4301_v37 }
 0xba8   : > { %6484 = vmatmul.mubr.msk.f32.gmra.mrb[144].mxu0 %vm748_vm0, %v4302_v11 }
 0xba9   : > { %6486 = vmatprep.mubr.msk.f32.mxu0 %vm748_vm0, %v4303_v54 }
 0xbac   : > { %6487 = vmatmul.mubr.msk.f32.gmra.mrb[146].mxu0 %vm748_vm0, %v4304_v49 }
 0xbad   : > { %6489 = vmatprep.mubr.msk.f32.mxu0 %vm748_vm0, %v4305_v19 }
 0xbb0   : > { %6490 = vmatmul.mubr.msk.f32.gmra.mrb[148].mxu0 %vm748_vm0, %v4306_v45 }
 0xc67   : > { %v8995_v5 = vpop.f32.mrb[134].mxu0 }
 0xc68   : > { %v4425_v36 = vpop.f32.mrb[135].mxu0 }
 0xc6b   : > { %v8997_v25 = vpop.f32.mrb[136].mxu0 }
 0xc6c   : > { %v8999_v53 = vpop.f32.mrb[137].mxu0 }
 0xc6f   : > { %v6476_v50 = vpop.f32.mrb[138].mxu0 }
 0xc70   : > { %v4445_v51 = vpop.f32.mrb[139].mxu0 }
 0xc73   : > { %v6479_v0 = vpop.f32.mrb[140].mxu0 }
 0xc74   : > { %v4455_v47 = vpop.f32.mrb[141].mxu0 }
 0xc77   : > { %v6482_v58 = vpop.f32.mrb[142].mxu0 }
 0xc78   : > { %v4465_v10 = vpop.f32.mrb[143].mxu0 }
 0xc7b   : > { %v6485_v2 = vpop.f32.mrb[144].mxu0 }
 0xc7c   : > { %v4475_v38 = vpop.f32.mrb[145].mxu0 }
 0xc7f   : > { %v6488_v20 = vpop.f32.mrb[146].mxu0 }
 0xc80   : > { %v4485_v1 = vpop.f32.mrb[147].mxu0 }
 0xc81   : > { %4556 = vrot.lane.b32.xlu1 %v4485_v1, %s9307_s1  ;;  %v4789_v1 = vld [vmem:[%s9262_s16 + $0x30] sm:$0xff] }
 0xc83   : > { %v6491_v28 = vpop.f32.mrb[148].mxu0 }
 0xc84   : > { %v4495_v21 = vpop.f32.mrb[149].mxu0 }
 0xc85   : > { %4558 = vrot.lane.b32.xlu1 %v6488_v20, %s9307_s1  ;;  %4560 = vrot.lane.b32.xlu0 %v4495_v21, %s9307_s1  ;;  %v4788_v20 = vld [vmem:[%s9262_s16 + $0x28] sm:$0xff] }
 0xc89   : > { %4562 = vrot.lane.b32.xlu1 %v6491_v28, %s9307_s1  ;;  %4508 = vrot.lane.b32.xlu0 %v4445_v51, %s9308_s3 }
 0xc8d   : > { %4510 = vrot.lane.b32.xlu1 %v6476_v50, %s9308_s3  ;;  %4512 = vrot.lane.b32.xlu0 %v4455_v47, %s9308_s3 }
 0xc91   : > { %4514 = vrot.lane.b32.xlu1 %v6479_v0, %s9308_s3  ;;  %4937 = vperm.xlu0 %6937, %v4791_v48   ;;  %v638_v48 = vld [vmem:[%s9251_s5 + $0x20] sm:$0xff] }
 0xc95   : > { %4942 = vperm.xlu1 %6938, %v4792_v62   ;;  %v639_v62 = vld [vmem:[%s9251_s5 + $0x30] sm:$0xff] }
 0xcf3   : > { %v4557_v55 = vpop.permute.xlu1 %4556 }
 0xcf4   : > { %v4568_v16 = vsel %vm4218_vm9, %v4557_v55, 0.0 }
 0xcf5   : > { %v4572_v7 = vadd.f32 %v4568_v16, %v4465_v10  ;;  %v4784_v10 = vld [vmem:[%s9262_s16 + $0x8] sm:$0xff] }
 0xcf7   : > { %v4576_v29 = vadd.f32 %v4572_v7, %v4531_v33  ;;  %v4559_v60 = vpop.permute.xlu1 %4558  ;;  %v4561_v41 = vpop.permute.xlu0 %4560 }
 0xcf8   : > { %v4569_v31 = vsel %vm4218_vm9, %v4559_v60, 0.0  ;;  %v4570_v59 = vsel %vm4218_vm9, %v4561_v41, 0.0  ;;  %v5136_v60 = vld [vmem:[%s9265_s19] sm:$0xff] }
 0xcf9   : > { %v4584_v44 = vmax.f32 %v4576_v29, 0.0  ;;  %v4573_v27 = vadd.f32 %v6482_v58, %v4569_v31  ;;  %v4574_v40 = vadd.f32 %v4570_v59, %v4475_v38  ;;  %v4787_v38 = vld [vmem:[%s9262_s16 + $0x20] sm:$0xff]  ;;  %v5137_v29 = vld [vmem:[%s9265_s19 + $0x8] sm:$0xff] }
 0xcfb   : > { %v4577_v17 = vadd.f32 %v4573_v27, %v4536_v39  ;;  %v4578_v13 = vadd.f32 %v4574_v40, %v4541_v14  ;;  %v4563_v3 = vpop.permute.xlu1 %4562  ;;  %6496 = vmatprep.mubr.msk.f32.mxu0 %vm4588_vm10, %v4584_v44  ;;  %v4509_v24 = vpop.permute.xlu0 %4508 }
 0xcfc   : > { %v4571_v8 = vsel %vm4218_vm9, %v4563_v3, 0.0  ;;  %v4520_v35 = vsel %vm1695_vm2, 0.0, %v4509_v24 }
 0xcfd   : > { %v4585_v43 = vmax.f32 %v4577_v17, 0.0  ;;  %v4586_v57 = vmax.f32 %v4578_v13, 0.0  ;;  %v4575_v61 = vadd.f32 %v6485_v2, %v4571_v8  ;;  %v4524_v4 = vadd.f32 %v4520_v35, %v4425_v36  ;;  %v4786_v2 = vld [vmem:[%s9262_s16 + $0x18] sm:$0xff] }
 0xcff   : > { %v4579_v63 = vadd.f32 %v4575_v61, %v4546_v9  ;;  %v4548_v18 = vadd.f32 %v4531_v33, %v4524_v4  ;;  %v4511_v26 = vpop.permute.xlu1 %4510  ;;  %6497 = vmatmul.mubr.msk.f32.vlgmr.msra.gmra.mrb[150].mxu0 %vm4588_vm10, %v4585_v43  ;;  %v4513_v15 = vpop.permute.xlu0 %4512  ;;  %v9090_v33 = vpack.c.bf16 %v639_v62, %v638_v48  ;;  %v631_v61 = vld [vmem:[%s9305_s28 + $0x30] sm:$0xff] }
 0xd00   : > { %v4521_v42 = vsel %vm1695_vm2, 0.0, %v4511_v26  ;;  %v4522_v12 = vsel %vm1695_vm2, 0.0, %v4513_v15  ;;  %6499 = vmatprep.mubr.msk.f32.mxu0 %vm4588_vm10, %v4586_v57  ;;  %6759 = vmatpush3.bf16.msra.mxu0 %v9014_v30  ;;  %v630_v57 = vld [vmem:[%s9305_s28 + $0x20] sm:$0xff] }
 0xd01   : > { %v4587_v23 = vmax.f32 %v4579_v63, 0.0  ;;  %v4580_v34 = vmax.f32 %v4548_v18, 0.0  ;;  %v4525_v52 = vadd.f32 %v8995_v5, %v4521_v42  ;;  %v4526_v22 = vadd.f32 %v4522_v12, %v8999_v53  ;;  %6769 = vmatprep.subr.bf16.mxu0 %v9005_v56  ;;  %v4783_v53 = vld [vmem:[%s9262_s16] sm:$0xff] }
 0xd02   : > { %6520 = vmatprep.mubr.msk.f32.mxu1 %vm4793_vm11, %v4783_v53  ;;  %v9113_v42 = vpack.c.bf16 %v631_v61, %v630_v57  ;;  %v640_v53 = vld [vmem:[%s9251_s5 + $0x40] sm:$0xff] }
 0xd03   : > { %v4549_v46 = vadd.f32 %v4536_v39, %v4525_v52  ;;  %v4550_v37 = vadd.f32 %v4541_v14, %v4526_v22  ;;  %v4515_v11 = vpop.permute.xlu1 %4514  ;;  %6500 = vmatmul.mubr.msk.f32.gmra.mrb[152].mxu0 %vm4588_vm10, %v4587_v23  ;;  %v5128_v22 = vld [vmem:[%s9264_s18] sm:$0xff] }
 0xd04   : > { %v4523_v54 = vsel %vm1695_vm2, 0.0, %v4515_v11  ;;  %6506 = vmatprep.mubr.msk.f32.mxu0 %vm4588_vm10, %v4580_v34 }
 0xd05   : > { %v4581_v49 = vmax.f32 %v4549_v46, 0.0  ;;  %v4582_v19 = vmax.f32 %v4550_v37, 0.0  ;;  %v4527_v45 = vadd.f32 %v8997_v25, %v4523_v54  ;;  %v5129_v54 = vld [vmem:[%s9264_s18 + $0x8] sm:$0xff] }
 0xd07   : > { %v4551_v36 = vadd.f32 %v4546_v9, %v4527_v45  ;;  %6507 = vmatmul.mubr.msk.f32.vlgmr.msra.gmra.mrb[150].mxu0 %vm4588_vm10, %v4581_v49  ;;  %v5130_v49 = vld [vmem:[%s9264_s18 + $0x10] sm:$0xff]  ;;  %v5132_v45 = vld [vmem:[%s9264_s18 + $0x20] sm:$0xff] }
 0xd08   : > { %6509 = vmatprep.mubr.msk.f32.mxu0 %vm4588_vm10, %v4582_v19  ;;  %6771 = vmatpush3.bf16.msra.mxu0 %v9005_v56  ;;  %v5131_v19 = vld [vmem:[%s9264_s18 + $0x18] sm:$0xff] }
 0xd09   : > { %v4583_v5 = vmax.f32 %v4551_v36, 0.0  ;;  %6773 = vmatprep.subr.bf16.mxu0 %v9090_v33  ;;  %v5133_v36 = vld [vmem:[%s9264_s18 + $0x28] sm:$0xff] }
 0xd0b   : > { %6510 = vmatmul.mubr.msk.f32.gmra.mrb[152].mxu0 %vm4588_vm10, %v4583_v5  ;;  %v5135_v5 = vld [vmem:[%s9264_s18 + $0x38] sm:$0xff] }
 0xd0c   : > { %6775 = vmatpush3.bf16.msra.mxu0 %v9090_v33 }
 0xd0d   : > { %6777 = vmatprep.subr.bf16.mxu0 %v9014_v30 }
 0xd10   : > { %v4938_v31 = vpop.permute.xlu0 %4937 }
 0xd14   : > { %v4943_v41 = vpop.permute.xlu1 %4942 }
 0xdda   : > { %v6508_v50 = vpop.f32.mrb[150].mxu0 }
 0xddb   : > { %v4764_v51 = vpop.f32.mrb[151].mxu0 }
 0xddc   : > { %v6760_v25 = vpack.c.bf16 %v6508_v50, %v4764_v51  ;;  %v641_v50 = vld [vmem:[%s9251_s5 + $0x50] sm:$0xff] }
 0xddd   : > { %v6796_v51 = vpack.c.bf16 %v641_v50, %v640_v53 }
 0xdde   : > { %v6511_v0 = vpop.f32.mrb[152].mxu0  ;;  %6761 = vmatprep.subr.bf16.mxu1 %v6760_v25 }
 0xddf   : > { %v4774_v47 = vpop.f32.mrb[153].mxu0  ;;  %6763 = vmatpush3.bf16.msra.mxu1 %v6760_v25  ;;  %v642_v25 = vld [vmem:[%s9251_s5 + $0x60] sm:$0xff] }
 0xde0   : > { %v6764_v58 = vpack.c.bf16 %v6511_v0, %v4774_v47  ;;  %v643_v0 = vld [vmem:[%s9251_s5 + $0x70] sm:$0xff] }
 0xde2   : > { %6765 = vmatprep.subr.bf16.mxu1 %v6764_v58 }
 0xde3   : > { %6767 = vmatpush3.bf16.msra.mxu1 %v6764_v58  ;;  %v6800_v58 = vpack.c.bf16 %v643_v0, %v642_v25 }
 0xde6   : > { %6521 = vmatmul.mubr.msk.f32.vlgmr.msra.gmra.mrb[146].mxu1 %vm4793_vm11, %v4784_v10 }
 0xde7   : > { %6523 = vmatprep.mubr.msk.f32.mxu1 %vm4793_vm11, %v4785_v32 }
 0xdea   : > { %6524 = vmatmul.mubr.msk.f32.gmra.mrb[148].mxu1 %vm4793_vm11, %v4786_v2 }
 0xdeb   : > { %6526 = vmatprep.mubr.msk.f32.mxu1 %vm4793_vm11, %v4787_v38 }
 0xdee   : > { %6527 = vmatmul.mubr.msk.f32.gmra.mrb[150].mxu1 %vm4793_vm11, %v4788_v20 }
 0xdef   : > { %6529 = vmatprep.mubr.msk.f32.mxu1 %vm4793_vm11, %v4789_v1 }
 0xdf2   : > { %6530 = vmatmul.mubr.msk.f32.gmra.mrb[152].mxu1 %vm4793_vm11, %v4790_v6 }
 0xdf3   : > { %6558 = vmatprep.mubr.msk.f32.mxu1 %vm4588_vm10, %v5128_v22 }
 0xeb9   : > { %v6522_v28 = vpop.f32.mrb[146].mxu1 }
 0xeba   : > { %v4884_v21 = vpop.f32.mrb[147].mxu1 }
 0xebd   : > { %v6525_v14 = vpop.f32.mrb[148].mxu1 }
 0xebe   : > { %v4894_v39 = vpop.f32.mrb[149].mxu1 }
 0xec1   : > { %v6528_v9 = vpop.f32.mrb[150].mxu1 }
 0xec2   : > { %v4904_v55 = vpop.f32.mrb[151].mxu1 }
 0xec5   : > { %v6531_v16 = vpop.f32.mrb[152].mxu1 }
 0xec6   : > { %4951 = vrot.lane.b32.xlu1 %v6531_v16, %s9307_s1  ;;  %v4914_v7 = vpop.f32.mrb[153].mxu1 }
 0xec7   : > { %4949 = vrot.lane.b32.xlu0 %v4914_v7, %s9307_s1 }
 0xeca   : > { %4927 = vrot.lane.b32.xlu1 %v6525_v14, %s9308_s3 }
 0xecb   : > { %4925 = vrot.lane.b32.xlu0 %v4894_v39, %s9308_s3 }
 0xece   : > { %5286 = vperm.xlu1 %6938, %v5137_v29  }
 0xecf   : > { %5281 = vperm.xlu0 %6937, %v5136_v60  }
 0xf38   : > { %v4952_v59 = vpop.permute.xlu1 %4951 }
 0xf39   : > { %v4957_v44 = vsel %vm4955_vm12, %v4952_v59, 0.0  ;;  %v4950_v27 = vpop.permute.xlu0 %4949 }
 0xf3a   : > { %v4959_v40 = vadd.f32 %v6528_v9, %v4957_v44  ;;  %v4956_v17 = vsel %vm4955_vm12, %v4950_v27, 0.0  ;;  %v634_v27 = vld [vmem:[%s9305_s28 + $0x60] sm:$0xff] }
 0xf3b   : > { %v4958_v13 = vadd.f32 %v4956_v17, %v4904_v55 }
 0xf3c   : > { %v4961_v3 = vadd.f32 %v4959_v40, %v4943_v41  ;;  %v4928_v24 = vpop.permute.xlu1 %4927  ;;  %v635_v40 = vld [vmem:[%s9305_s28 + $0x70] sm:$0xff] }
 0xf3d   : > { %v4960_v8 = vadd.f32 %v4958_v13, %v4938_v31  ;;  %v4932_v35 = vsel %vm1695_vm2, 0.0, %v4928_v24  ;;  %v4926_v43 = vpop.permute.xlu0 %4925 }
 0xf3e   : > { %v4931_v4 = vsel %vm1695_vm2, 0.0, %v4926_v43  ;;  %v4965_v26 = vmax.f32 %v4961_v3, 0.0  ;;  %v4934_v15 = vadd.f32 %v6522_v28, %v4932_v35 }
 0xf3f   : > { %v4964_v63 = vmax.f32 %v4960_v8, 0.0  ;;  %v4933_v18 = vadd.f32 %v4931_v4, %v4884_v21 }
 0xf40   : > { %v4946_v34 = vadd.f32 %v4943_v41, %v4934_v15  ;;  %v632_v41 = vld [vmem:[%s9305_s28 + $0x40] sm:$0xff] }
 0xf41   : > { %v4945_v12 = vadd.f32 %v4938_v31, %v4933_v18  ;;  %6540 = vmatprep.mubr.msk.f32.mxu0 %vm4793_vm11, %v4964_v63  ;;  %v633_v31 = vld [vmem:[%s9305_s28 + $0x50] sm:$0xff] }
 0xf42   : > { %6541 = vmatmul.mubr.msk.f32.vlgmr.msra.gmra.mrb[154].mxu0 %vm4793_vm11, %v4965_v26  ;;  %v4963_v52 = vmax.f32 %v4946_v34, 0.0  ;;  %v6812_v44 = vpack.c.bf16 %v633_v31, %v632_v41 }
 0xf43   : > { %v4962_v23 = vmax.f32 %v4945_v12, 0.0  ;;  %6779 = vmatpush3.bf16.msra.mxu0 %v9014_v30 }
 0xf44   : > { %6781 = vmatprep.subr.bf16.mxu0 %v9113_v42 }
 0xf45   : > { %6551 = vmatprep.mubr.msk.f32.mxu0 %vm4793_vm11, %v4962_v23 }
 0xf47   : > { %6783 = vmatpush3.bf16.msra.mxu0 %v9113_v42 }
 0xf4a   : > { %6552 = vmatmul.mubr.msk.f32.vlgmr.msra.gmra.mrb[154].mxu0 %vm4793_vm11, %v4963_v52 }
 0xf4d   : > { %v5287_v28 = vpop.permute.xlu1 %5286 }
 0xf4e   : > { %v5282_v21 = vpop.permute.xlu0 %5281 }
0x101d   : > { %v6553_v46 = vpop.f32.mrb[154].mxu0 }
0x101e   : > { %v5119_v37 = vpop.f32.mrb[155].mxu0 }
0x101f   : > { %v6784_v11 = vpack.c.bf16 %v6553_v46, %v5119_v37 }
0x1021   : > { %6785 = vmatprep.subr.bf16.mxu1 %v6784_v11 }
0x1022   : > { %6787 = vmatpush3.bf16.msra.mxu1 %v6784_v11 }
0x1023   : > { %6789 = vmatprep.subr.bf16.mxu1 %v9005_v56 }
0x1025   : > { %6559 = vmatmul.mubr.msk.f32.vlgmr.msra.gmra.mrb[154].mxu1 %vm4588_vm10, %v5129_v54 }
0x1026   : > { %6561 = vmatprep.mubr.msk.f32.mxu1 %vm4588_vm10, %v5130_v49  ;;  %6791 = vmatpush3.bf16.msra.mxu1 %v9005_v56  ;;  %v5134_v56 = vld [vmem:[%s9264_s18 + $0x30] sm:$0xff] }
0x1027   : > { %6793 = vmatprep.subr.bf16.mxu1 %v9090_v33 }
0x1029   : > { %6562 = vmatmul.mubr.msk.f32.gmra.mrb[156].mxu1 %vm4588_vm10, %v5131_v19 }
0x102a   : > { %6564 = vmatprep.mubr.msk.f32.mxu1 %vm4588_vm10, %v5132_v45  ;;  %6795 = vmatpush3.bf16.msra.mxu1 %v9090_v33 }
0x102b   : > { %6797 = vmatprep.subr.bf16.mxu1 %v6796_v51 }
0x102d   : > { %6565 = vmatmul.mubr.msk.f32.gmra.mrb[158].mxu1 %vm4588_vm10, %v5133_v36 }
0x102e   : > { %6567 = vmatprep.mubr.msk.f32.mxu1 %vm4588_vm10, %v5134_v56  ;;  %6799 = vmatpush3.bf16.msra.mxu1 %v6796_v51 }
0x102f   : > { %6801 = vmatprep.subr.bf16.mxu1 %v6800_v58 }
0x1031   : > { %6568 = vmatmul.mubr.msk.f32.gmra.mrb[160].mxu1 %vm4588_vm10, %v5135_v5 }
0x1032   : > { %6803 = vmatpush3.bf16.msra.mxu1 %v6800_v58 }
0x1033   : > { %6805 = vmatprep.subr.bf16.mxu1 %v9014_v30 }
0x10f8   : > { %v6560_v47 = vpop.f32.mrb[154].mxu1 }
0x10f9   : > { %v5228_v10 = vpop.f32.mrb[155].mxu1 }
0x10fc   : > { %v6563_v32 = vpop.f32.mrb[156].mxu1 }
0x10fd   : > { %v5238_v2 = vpop.f32.mrb[157].mxu1 }
0x1100   : > { %v6566_v38 = vpop.f32.mrb[158].mxu1 }
0x1101   : > { %v5248_v20 = vpop.f32.mrb[159].mxu1 }
0x1104   : > { %v6569_v1 = vpop.f32.mrb[160].mxu1 }
0x1105   : > { %5295 = vrot.lane.b32.xlu1 %v6569_v1, %s9307_s1  ;;  %v5258_v6 = vpop.f32.mrb[161].mxu1 }
0x1106   : > { %5293 = vrot.lane.b32.xlu0 %v5258_v6, %s9307_s1  ;;  %s5763_s1 = sshll.u32 %s7138_s2, 8  ;;  %s7009_s2 = smov [#allocation2]  }
0x1107   : > { %s9203_s23 = scalar_lea.hbm %s9309_s27, %s5763_s1  ;;  %s6945_s25 = sshll.u32 %s7009_s2, 4  ;;  %s6946_s25 = int_to_ptr.vmem [resolvable:$false] %s6945_s25 }
0x1108   : > { %s6947_s29 = scalar_lea.vmem %s6946_s25, 512  ;;  %p6948_p0 = scmp.lt.s32.totalorder %s9198_s8, %s6946_s25 }
0x1109   : > { %5271 = vrot.lane.b32.xlu1 %v6563_v32, %s9308_s3  ;;  %p6949_p1 = scmp.lt.s32.totalorder %s6947_s29, %s6941_s21 }
0x110a   : > { %5269 = vrot.lane.b32.xlu0 %v5238_v2, %s9308_s3 }
0x110b   : > { %p6950_p2 = por %p6949_p1, %p6948_p0 }
0x110d   : > { %p6951_p3 = pnand %p6950_p2, %p6944_p13 }
0x1177   : > { %v5296_v48 = vpop.permute.xlu1 %5295 }
0x1178   : > { %v5301_v62 = vsel %vm5299_vm13, %v5296_v48, 0.0  ;;  %v5294_v33 = vpop.permute.xlu0 %5293 }
0x1179   : > { %v5303_v14 = vadd.f32 %v6566_v38, %v5301_v62  ;;  %v5300_v39 = vsel %vm5299_vm13, %v5294_v33, 0.0 }
0x117a   : > { %v5302_v9 = vadd.f32 %v5300_v39, %v5248_v20 }
0x117b   : > { %v5305_v7 = vadd.f32 %v5303_v14, %v5287_v28  ;;  %v5272_v17 = vpop.permute.xlu1 %5271 }
0x117c   : > { %v5304_v55 = vadd.f32 %v5302_v9, %v5282_v21  ;;  %v5270_v16 = vpop.permute.xlu0 %5269  ;;  %v5276_v13 = vsel %vm1695_vm2, 0.0, %v5272_v17 }
0x117d   : > { %v5275_v29 = vsel %vm1695_vm2, 0.0, %v5270_v16  ;;  %v5278_v3 = vadd.f32 %v6560_v47, %v5276_v13 }
0x117e   : > { %v5277_v60 = vadd.f32 %v5275_v29, %v5228_v10  ;;  %6586 = vmatprep.mubr.msk.f32.mxu1 %vm748_vm0, %v5304_v55 }
0x117f   : > { %6587 = vmatmul.mubr.msk.f32.vlgmr.msra.gmra.mrb[162].mxu1 %vm748_vm0, %v5305_v7  ;;  %v5290_v24 = vadd.f32 %v5287_v28, %v5278_v3 }
0x1180   : > { %v5289_v59 = vadd.f32 %v5282_v21, %v5277_v60  ;;  %6807 = vmatpush3.bf16.msra.mxu1 %v9014_v30  ;;  %v6816_v30 = vpack.c.bf16 %v635_v40, %v634_v27 }
0x1181   : > { %6809 = vmatprep.subr.bf16.mxu1 %v9113_v42 }
0x1182   : > { %6605 = vmatprep.mubr.msk.f32.mxu1 %vm748_vm0, %v5289_v59 }
0x1184   : > { %6811 = vmatpush3.bf16.msra.mxu1 %v9113_v42 }
0x1185   : > { %6813 = vmatprep.subr.bf16.mxu1 %v6812_v44 }
0x1188   : > { %6815 = vmatpush3.bf16.msra.mxu1 %v6812_v44 }
0x1189   : > { %6817 = vmatprep.subr.bf16.mxu1 %v6816_v30 }
0x118c   : > { %6819 = vmatpush3.bf16.msra.mxu1 %v6816_v30 }
0x118f   : > { %6606 = vmatmul.mubr.msk.f32.vlgmr.msra.gmra.mrb[162].mxu1 %vm748_vm0, %v5290_v24 }
0x1262   : > { %v6607_v8 = vpop.f32.mrb[162].mxu1 }
0x1263   : > { %5469 = vst [vmem:[%s622_s7 + $0x8] sm:$0xff] %v6607_v8  ;;  %v5459_v35 = vpop.f32.mrb[163].mxu1 }
0x1264   : > { %5468 = vst [vmem:[%s622_s7] sm:$0xff] %v5459_v35 }
0x1265   : > { %6954 = shalt.err (!%p6951_p3)
}
0x1266   : > { %s6955_s6 = scalar_lea.hbm %s9203_s23, 256  ;;  %s6959_s26 = scalar_lea.hbm %s9309_s27, 512 }
0x1267   : > { %p6956_p4 = scmp.ne.s32.totalorder %s9203_s23, %s6955_s6  ;;  %p6960_p9 = scmp.lt.u32.totalorder %s9203_s23, %s9309_s27 }
0x1268   : > { %p6961_p10 = scmp.lt.u32.totalorder %s6959_s26, %s6955_s6  ;;  %p6963_p12 = scmp.lt.u32.totalorder %s6955_s6, %s9203_s23 }
0x1269   : > { %p6957_p7 = pnand %p6956_p4, %p7155_p5 }
0x126a   : > { %p6962_p11 = por %p6961_p10, %p6960_p9 }
0x126b   : > { %p6958_p8 = pneg %p6957_p7 }
0x126c   : > { %p6964_p13 = por %p6963_p12, %p6962_p11 }
0x126e   : > { %p6965_p0 = pnand %p6964_p13, %p6958_p8 }
0x1270   : > { %6968 = shalt.err (!%p6965_p0)
}
0x1271   : > { %s7010_s21 = smov 128   ;;  %s7011_s25 = smov 8  }
0x1272   : > { %6892 = dma.vmem_to_hbm [thread:$0]  (%p7155_p5), %s9198_s8, 256, %s9203_s23, %s9205_s0, %s7010_s21, %s7010_s21, %s7011_s25  }
0x1273 PF: > { %s9310_s29 = sld [smem:[#allocation5_spill]]  ;;  %p6898_p1 = scmp.ge.s32.totalorder %s7003_s24, 2 }
0x1275   : > { %p6895_p2 = pnand %p6898_p1, %p7159_p6 }
0x1279   : > { %s5499_s1 = sand.u32 1, %s9310_s29  }
0x127a   : > { %s5500_s6 = scalar_lea.sflag [#allocation3], %s5499_s1 }
0x127b   : > { %6986 = dma.done.wait (!%p6895_p2), %s5500_s6, 256  }
0x127c   : > { %6988 = vsyncadd (!%p6895_p2), %s5500_s6, 4294967040  ;;  %s9312_s24 = sld [smem:[#allocation7_spill]]  ;;  %s9313_s26 = sld [smem:[#allocation6_spill]] }
0x127d   : > { %s9314_s23 = sld [smem:[#allocation8_spill]]  ;;  %s9315_s1 = smov %s6995_s22 }
0x1282   : > { %p30_p3 = scmp.ge.s32.totalorder %s9312_s24, 4   ;;  %s9316_s22 = smov %s9313_s26 }
0x1284   :  { %32 = sbr.rel (!%p30_p3) target bundleno = 13 (0xd), region = 135 }
0x128b   :  { %5505 = vsyncpa [#allocation3], 1 }
0x128c   :  { %5507 = vsyncpa [#allocation3 + $0x1], 1 }

</bundles_post_ra>
